<compile_context>
chip_gen: v7x
topology: tpu7x:2x2x1
jax: 0.10.0
libtpu: 0.0.40
codegen_flags: <defaults>
</compile_context>

<pallas_src>
import functools

import jax
import jax.numpy as jnp
from jax import lax
from jax.experimental import pallas as pl
from jax.experimental.pallas import tpu as pltpu

KSIZE = 5
OUT_CH = 2


def _nearest_indices(out_size, in_size):
    # F.interpolate(..., mode='nearest'): src = floor(dst * in / out).
    return tuple((i * in_size) // out_size for i in range(out_size))


def _index_runs(idx):
    """Compress a static index list into ('asc'|'const', start, length) runs."""
    runs = []
    i, n = 0, len(idx)
    while i < n:
        j = i + 1
        if j < n and idx[j] == idx[i] + 1:          # consecutive ascending run
            while j < n and idx[j] == idx[j - 1] + 1:
                j += 1
            runs.append(("asc", idx[i], j - i))
        elif j < n and idx[j] == idx[i]:            # repeated (upsampling) run
            while j < n and idx[j] == idx[i]:
                j += 1
            runs.append(("const", idx[i], j - i))
        else:
            runs.append(("asc", idx[i], 1))
        i = j
    return tuple(runs)


def _gather_static(x, runs, axis):
    """Gather rows (axis=0) or columns (axis=1) of a 2-D value at static runs."""
    parts = []
    for kind, start, length in runs:
        if kind == "asc":
            part = x[start:start + length, :] if axis == 0 else x[:, start:start + length]
        else:  # repeated index -> slice once, broadcast
            if axis == 0:
                part = jnp.broadcast_to(x[start:start + 1, :], (length, x.shape[1]))
            else:
                part = jnp.broadcast_to(x[:, start:start + 1], (x.shape[0], length))
        parts.append(part)
    return parts[0] if len(parts) == 1 else jnp.concatenate(parts, axis=axis)


def _sigmoid_stable(x):
    # x >= 0 : 1 / (1 + exp(-x)) ; x < 0 : exp(x) / (1 + exp(x)).
    # exp -> EUP; reciprocal -> EUP approx + one Newton step (2 cheap VPU ops),
    # so no full f32 divide on the VALU and no inf is ever formed.
    p = jnp.exp(-jnp.abs(x))
    d = 1.0 + p
    r = pl.reciprocal(d, approx=True)
    r = r * (2.0 - d * r)            # Newton refinement -> ~f32 accuracy
    return jnp.where(x >= 0, r, p * r)


def _calcnn_kernel(row_runs, col_runs, w_ref, b_ref, x_ref, o_ref):
    # w_ref : SMEM (OUT_CH*C*25,) f32   scalar-prefetched, flattened OIHW weights
    # b_ref : SMEM (OUT_CH,)      f32
    # x_ref : VMEM (B, C, H, W)   f32   un-padded block (last two dims = full array)
    # o_ref : VMEM (B, 2, OH, OW) f32   final resized map for these B images
    bsz, c, h, w = x_ref.shape
    ho, wo = h - (KSIZE - 1), w - (KSIZE - 1)
    taps = KSIZE * KSIZE

    def accumulate(ic, accs, b):
        a0, a1 = accs
        chan = x_ref[b, ic, :, :]                       # (H, W) slab of one channel
        for kh in range(KSIZE):
            for kw in range(KSIZE):
                tap = chan[kh:kh + ho, kw:kw + wo]      # static slice, one tap
                base = ic * taps + kh * KSIZE + kw
                a0 = a0 + tap * w_ref[base]
                a1 = a1 + tap * w_ref[c * taps + base]
        return a0, a1

    for b in range(bsz):                                # static, small (<= 8)
        init = (jnp.zeros((ho, wo), jnp.float32),
                jnp.zeros((ho, wo), jnp.float32))
        if c <= 8:
            acc0, acc1 = init
            for ic in range(c):
                acc0, acc1 = accumulate(ic, (acc0, acc1), b)
        else:
            # bounded code size / live ranges for larger channel counts
            acc0, acc1 = lax.fori_loop(
                0, c, lambda ic, accs: accumulate(ic, accs, b), init)

        # Fused nearest resize with static runs, then bias + sigmoid on the
        # small (OH, OW) result only.
        acc0 = _gather_static(_gather_static(acc0, row_runs, 0), col_runs, 1)
        acc1 = _gather_static(_gather_static(acc1, row_runs, 0), col_runs, 1)
        o_ref[b, 0, :, :] = _sigmoid_stable(acc0 + b_ref[0])
        o_ref[b, 1, :, :] = _sigmoid_stable(acc1 + b_ref[1])


def _pick_batch_block(n, per_img_bytes, target_bytes=512 << 10, cap=8):
    """Images per grid step: big enough to amortize the ~0.35 us per-step
    overhead and make the HBM->VMEM DMAs bandwidth-efficient, but keep >= 2
    grid steps when N >= 2 (v7x shards the 'parallel' axis over 2 TensorCores)
    and keep the in-kernel unroll bounded."""
    want = max(1, min(cap, target_bytes // max(per_img_bytes, 1)))
    if n >= 2:
        want = min(want, n - 1)        # guarantees >= 2 grid steps
    best = 1
    for d in range(1, min(want, n) + 1):
        if n % d == 0:                 # keep the grid exactly divisible
            best = d
    return best


@functools.partial(jax.jit, static_argnames=("lw", "lh"))
def neko_dense_calcnn_forward(feat, weight, bias, *, lw, lh):
    """feat: (N, C, H, W); weight: (2, C, 5, 5); bias: (2,) -> (N, 2, lh+2, lw+2)."""
    n, c, h, w = feat.shape
    if weight.shape != (OUT_CH, c, KSIZE, KSIZE) or bias.shape != (OUT_CH,):
        raise ValueError(
            f"parameter shapes {weight.shape} / {bias.shape} do not match "
            f"Conv2d({c}, {OUT_CH}, {KSIZE})")
    ho, wo = h - (KSIZE - 1), w - (KSIZE - 1)
    if ho <= 0 or wo <= 0:
        raise ValueError("feature map too small for a 5x5 valid convolution")
    oh, ow = lh + 2, lw + 2

    # Static nearest-neighbour index runs (lh, lw, H, W are static under jit).
    row_runs = _index_runs(_nearest_indices(oh, ho))
    col_runs = _index_runs(_nearest_indices(ow, wo))

    feat32 = feat.astype(jnp.float32)
    bsz = _pick_batch_block(n, c * h * w * 4)

    kernel = functools.partial(_calcnn_kernel, row_runs, col_runs)
    return pl.pallas_call(
        kernel,
        out_shape=jax.ShapeDtypeStruct((n, OUT_CH, oh, ow), jnp.float32),
        grid_spec=pltpu.PrefetchScalarGridSpec(
            num_scalar_prefetch=2,                       # weights + bias -> SMEM
            grid=(n // bsz,),
            in_specs=[
                pl.BlockSpec((bsz, c, h, w), lambda i, w_sm, b_sm: (i, 0, 0, 0)),
            ],
            out_specs=pl.BlockSpec((bsz, OUT_CH, oh, ow),
                                   lambda i, w_sm, b_sm: (i, 0, 0, 0)),
        ),
        compiler_params=pltpu.CompilerParams(
            dimension_semantics=("parallel",),
            # blocks here are <= ~1 MiB double-buffered; 32 MiB is safe on
            # v5e/v6e (128 MiB VMEM) and v7x (64 MiB VMEM).
            vmem_limit_bytes=32 * 1024 * 1024,
        ),
    )(weight.reshape(-1).astype(jnp.float32), bias.astype(jnp.float32), feat32)


def _init_params(channel, key):
    # Deterministic synthetic init (PyTorch-style uniform fan-in bound).
    kw_key, kb_key = jax.random.split(key)
    fan_in = channel * KSIZE * KSIZE
    bound = 1.0 / jnp.sqrt(float(fan_in))
    weight = jax.random.uniform(
        kw_key, (OUT_CH, channel, KSIZE, KSIZE), jnp.float32, -bound, bound)
    bias = jax.random.uniform(kb_key, (OUT_CH,), jnp.float32, -bound, bound)
    return weight, bias


def _reference_forward(feat, weight, bias, lw, lh):
    """Pure-JAX f32 reference (lax conv + sigmoid + nearest resize)."""
    out = lax.conv_general_dilated(
        feat.astype(jnp.float32), weight.astype(jnp.float32),
        window_strides=(1, 1), padding="VALID",
        dimension_numbers=("NCHW", "OIHW", "NCHW"),
        precision=lax.Precision.HIGHEST)
    out = jax.nn.sigmoid(out + bias[None, :, None, None])
    ho, wo = out.shape[2], out.shape[3]
    oh, ow = lh + 2, lw + 2
    rows = (jnp.arange(oh) * ho) // oh
    cols = (jnp.arange(ow) * wo) // ow
    return out[:, :, rows[:, None], cols[None, :]]


if __name__ == "__main__":
    key = jax.random.PRNGKey(0)
    k_feat, k_param = jax.random.split(key)

    channel = 4
    N, H, W = 2, 16, 16
    lw, lh = 8, 8

    feat = jax.random.normal(k_feat, (N, channel, H, W), jnp.float32)
    weight, bias = _init_params(channel, k_param)

    out = neko_dense_calcnn_forward(feat, weight, bias, lw=lw, lh=lh)
    out = jax.block_until_ready(out)

    ref = jax.block_until_ready(_reference_forward(feat, weight, bias, lw, lh))
    assert out.shape == (N, OUT_CH, lh + 2, lw + 2), out.shape
    max_err = float(jnp.max(jnp.abs(out - ref)))
    assert jnp.allclose(out, ref, atol=1e-5, rtol=1e-5), max_err

    print("KERNEL_OK")
</pallas_src>

<mosaic_0001>
module attributes {stable_mosaic.version = 11 : i64} {
  func.func @_calcnn_kernel(%arg0: i32, %arg1: memref<200xf32, #tpu.memory_space<smem>>, %arg2: memref<2xf32, #tpu.memory_space<smem>>, %arg3: memref<1x4x16x16xf32, #tpu.memory_space<vmem>>, %arg4: memref<1x2x10x10xf32, #tpu.memory_space<vmem>>) attributes {dimension_semantics = [#tpu.dimension_semantics<parallel>], iteration_bounds = array<i64: 2>, scalar_prefetch = 2 : i64, scratch_operands = 0 : i64, tpu.core_type = #tpu.core_type<tc>, window_params = [{transform_indices = @transform_0, window_bounds = array<i64: 1, 4, 16, 16>}, {transform_indices = @transform_1, window_bounds = array<i64: 1, 2, 10, 10>}]} {
    %cst = arith.constant 0.000000e+00 : f32
    %0 = vector.broadcast %cst : f32 to vector<12x12xf32>
    %cst_0 = arith.constant 0.000000e+00 : f32
    %1 = vector.broadcast %cst_0 : f32 to vector<12x12xf32>
    %c0 = arith.constant 0 : index
    %c0_1 = arith.constant 0 : index
    %c0_2 = arith.constant 0 : index
    %c0_3 = arith.constant 0 : index
    %2 = vector.load %arg3[%c0, %c0_1, %c0_2, %c0_3] : memref<1x4x16x16xf32, #tpu.memory_space<vmem>>, vector<1x1x16x16xf32>
    %3 = vector.shape_cast %2 : vector<1x1x16x16xf32> to vector<16x16xf32>
    %4 = vector.extract_strided_slice %3 {offsets = [0, 0], sizes = [12, 12], strides = [1, 1]} : vector<16x16xf32> to vector<12x12xf32>
    %c0_4 = arith.constant 0 : index
    %5 = memref.load %arg1[%c0_4] : memref<200xf32, #tpu.memory_space<smem>>
    %6 = vector.broadcast %5 : f32 to vector<12x12xf32>
    %7 = arith.mulf %4, %6 : vector<12x12xf32>
    %8 = arith.addf %0, %7 : vector<12x12xf32>
    %c100 = arith.constant 100 : index
    %9 = memref.load %arg1[%c100] : memref<200xf32, #tpu.memory_space<smem>>
    %10 = vector.broadcast %9 : f32 to vector<12x12xf32>
    %11 = arith.mulf %4, %10 : vector<12x12xf32>
    %12 = arith.addf %1, %11 : vector<12x12xf32>
    %13 = vector.extract_strided_slice %3 {offsets = [0, 1], sizes = [12, 12], strides = [1, 1]} : vector<16x16xf32> to vector<12x12xf32>
    %c1 = arith.constant 1 : index
    %14 = memref.load %arg1[%c1] : memref<200xf32, #tpu.memory_space<smem>>
    %15 = vector.broadcast %14 : f32 to vector<12x12xf32>
    %16 = arith.mulf %13, %15 : vector<12x12xf32>
    %17 = arith.addf %8, %16 : vector<12x12xf32>
    %c101 = arith.constant 101 : index
    %18 = memref.load %arg1[%c101] : memref<200xf32, #tpu.memory_space<smem>>
    %19 = vector.broadcast %18 : f32 to vector<12x12xf32>
    %20 = arith.mulf %13, %19 : vector<12x12xf32>
    %21 = arith.addf %12, %20 : vector<12x12xf32>
    %22 = vector.extract_strided_slice %3 {offsets = [0, 2], sizes = [12, 12], strides = [1, 1]} : vector<16x16xf32> to vector<12x12xf32>
    %c2 = arith.constant 2 : index
    %23 = memref.load %arg1[%c2] : memref<200xf32, #tpu.memory_space<smem>>
    %24 = vector.broadcast %23 : f32 to vector<12x12xf32>
    %25 = arith.mulf %22, %24 : vector<12x12xf32>
    %26 = arith.addf %17, %25 : vector<12x12xf32>
    %c102 = arith.constant 102 : index
    %27 = memref.load %arg1[%c102] : memref<200xf32, #tpu.memory_space<smem>>
    %28 = vector.broadcast %27 : f32 to vector<12x12xf32>
    %29 = arith.mulf %22, %28 : vector<12x12xf32>
    %30 = arith.addf %21, %29 : vector<12x12xf32>
    %31 = vector.extract_strided_slice %3 {offsets = [0, 3], sizes = [12, 12], strides = [1, 1]} : vector<16x16xf32> to vector<12x12xf32>
    %c3 = arith.constant 3 : index
    %32 = memref.load %arg1[%c3] : memref<200xf32, #tpu.memory_space<smem>>
    %33 = vector.broadcast %32 : f32 to vector<12x12xf32>
    %34 = arith.mulf %31, %33 : vector<12x12xf32>
    %35 = arith.addf %26, %34 : vector<12x12xf32>
    %c103 = arith.constant 103 : index
    %36 = memref.load %arg1[%c103] : memref<200xf32, #tpu.memory_space<smem>>
    %37 = vector.broadcast %36 : f32 to vector<12x12xf32>
    %38 = arith.mulf %31, %37 : vector<12x12xf32>
    %39 = arith.addf %30, %38 : vector<12x12xf32>
    %40 = vector.extract_strided_slice %3 {offsets = [0, 4], sizes = [12, 12], strides = [1, 1]} : vector<16x16xf32> to vector<12x12xf32>
    %c4 = arith.constant 4 : index
    %41 = memref.load %arg1[%c4] : memref<200xf32, #tpu.memory_space<smem>>
    %42 = vector.broadcast %41 : f32 to vector<12x12xf32>
    %43 = arith.mulf %40, %42 : vector<12x12xf32>
    %44 = arith.addf %35, %43 : vector<12x12xf32>
    %c104 = arith.constant 104 : index
    %45 = memref.load %arg1[%c104] : memref<200xf32, #tpu.memory_space<smem>>
    %46 = vector.broadcast %45 : f32 to vector<12x12xf32>
    %47 = arith.mulf %40, %46 : vector<12x12xf32>
    %48 = arith.addf %39, %47 : vector<12x12xf32>
    %49 = vector.extract_strided_slice %3 {offsets = [1, 0], sizes = [12, 12], strides = [1, 1]} : vector<16x16xf32> to vector<12x12xf32>
    %c5 = arith.constant 5 : index
    %50 = memref.load %arg1[%c5] : memref<200xf32, #tpu.memory_space<smem>>
    %51 = vector.broadcast %50 : f32 to vector<12x12xf32>
    %52 = arith.mulf %49, %51 : vector<12x12xf32>
    %53 = arith.addf %44, %52 : vector<12x12xf32>
    %c105 = arith.constant 105 : index
    %54 = memref.load %arg1[%c105] : memref<200xf32, #tpu.memory_space<smem>>
    %55 = vector.broadcast %54 : f32 to vector<12x12xf32>
    %56 = arith.mulf %49, %55 : vector<12x12xf32>
    %57 = arith.addf %48, %56 : vector<12x12xf32>
    %58 = vector.extract_strided_slice %3 {offsets = [1, 1], sizes = [12, 12], strides = [1, 1]} : vector<16x16xf32> to vector<12x12xf32>
    %c6 = arith.constant 6 : index
    %59 = memref.load %arg1[%c6] : memref<200xf32, #tpu.memory_space<smem>>
    %60 = vector.broadcast %59 : f32 to vector<12x12xf32>
    %61 = arith.mulf %58, %60 : vector<12x12xf32>
    %62 = arith.addf %53, %61 : vector<12x12xf32>
    %c106 = arith.constant 106 : index
    %63 = memref.load %arg1[%c106] : memref<200xf32, #tpu.memory_space<smem>>
    %64 = vector.broadcast %63 : f32 to vector<12x12xf32>
    %65 = arith.mulf %58, %64 : vector<12x12xf32>
    %66 = arith.addf %57, %65 : vector<12x12xf32>
    %67 = vector.extract_strided_slice %3 {offsets = [1, 2], sizes = [12, 12], strides = [1, 1]} : vector<16x16xf32> to vector<12x12xf32>
    %c7 = arith.constant 7 : index
    %68 = memref.load %arg1[%c7] : memref<200xf32, #tpu.memory_space<smem>>
    %69 = vector.broadcast %68 : f32 to vector<12x12xf32>
    %70 = arith.mulf %67, %69 : vector<12x12xf32>
    %71 = arith.addf %62, %70 : vector<12x12xf32>
    %c107 = arith.constant 107 : index
    %72 = memref.load %arg1[%c107] : memref<200xf32, #tpu.memory_space<smem>>
    %73 = vector.broadcast %72 : f32 to vector<12x12xf32>
    %74 = arith.mulf %67, %73 : vector<12x12xf32>
    %75 = arith.addf %66, %74 : vector<12x12xf32>
    %76 = vector.extract_strided_slice %3 {offsets = [1, 3], sizes = [12, 12], strides = [1, 1]} : vector<16x16xf32> to vector<12x12xf32>
    %c8 = arith.constant 8 : index
    %77 = memref.load %arg1[%c8] : memref<200xf32, #tpu.memory_space<smem>>
    %78 = vector.broadcast %77 : f32 to vector<12x12xf32>
    %79 = arith.mulf %76, %78 : vector<12x12xf32>
    %80 = arith.addf %71, %79 : vector<12x12xf32>
    %c108 = arith.constant 108 : index
    %81 = memref.load %arg1[%c108] : memref<200xf32, #tpu.memory_space<smem>>
    %82 = vector.broadcast %81 : f32 to vector<12x12xf32>
    %83 = arith.mulf %76, %82 : vector<12x12xf32>
    %84 = arith.addf %75, %83 : vector<12x12xf32>
    %85 = vector.extract_strided_slice %3 {offsets = [1, 4], sizes = [12, 12], strides = [1, 1]} : vector<16x16xf32> to vector<12x12xf32>
    %c9 = arith.constant 9 : index
    %86 = memref.load %arg1[%c9] : memref<200xf32, #tpu.memory_space<smem>>
    %87 = vector.broadcast %86 : f32 to vector<12x12xf32>
    %88 = arith.mulf %85, %87 : vector<12x12xf32>
    %89 = arith.addf %80, %88 : vector<12x12xf32>
    %c109 = arith.constant 109 : index
    %90 = memref.load %arg1[%c109] : memref<200xf32, #tpu.memory_space<smem>>
    %91 = vector.broadcast %90 : f32 to vector<12x12xf32>
    %92 = arith.mulf %85, %91 : vector<12x12xf32>
    %93 = arith.addf %84, %92 : vector<12x12xf32>
    %94 = vector.extract_strided_slice %3 {offsets = [2, 0], sizes = [12, 12], strides = [1, 1]} : vector<16x16xf32> to vector<12x12xf32>
    %c10 = arith.constant 10 : index
    %95 = memref.load %arg1[%c10] : memref<200xf32, #tpu.memory_space<smem>>
    %96 = vector.broadcast %95 : f32 to vector<12x12xf32>
    %97 = arith.mulf %94, %96 : vector<12x12xf32>
    %98 = arith.addf %89, %97 : vector<12x12xf32>
    %c110 = arith.constant 110 : index
    %99 = memref.load %arg1[%c110] : memref<200xf32, #tpu.memory_space<smem>>
    %100 = vector.broadcast %99 : f32 to vector<12x12xf32>
    %101 = arith.mulf %94, %100 : vector<12x12xf32>
    %102 = arith.addf %93, %101 : vector<12x12xf32>
    %103 = vector.extract_strided_slice %3 {offsets = [2, 1], sizes = [12, 12], strides = [1, 1]} : vector<16x16xf32> to vector<12x12xf32>
    %c11 = arith.constant 11 : index
    %104 = memref.load %arg1[%c11] : memref<200xf32, #tpu.memory_space<smem>>
    %105 = vector.broadcast %104 : f32 to vector<12x12xf32>
    %106 = arith.mulf %103, %105 : vector<12x12xf32>
    %107 = arith.addf %98, %106 : vector<12x12xf32>
    %c111 = arith.constant 111 : index
    %108 = memref.load %arg1[%c111] : memref<200xf32, #tpu.memory_space<smem>>
    %109 = vector.broadcast %108 : f32 to vector<12x12xf32>
    %110 = arith.mulf %103, %109 : vector<12x12xf32>
    %111 = arith.addf %102, %110 : vector<12x12xf32>
    %112 = vector.extract_strided_slice %3 {offsets = [2, 2], sizes = [12, 12], strides = [1, 1]} : vector<16x16xf32> to vector<12x12xf32>
    %c12 = arith.constant 12 : index
    %113 = memref.load %arg1[%c12] : memref<200xf32, #tpu.memory_space<smem>>
    %114 = vector.broadcast %113 : f32 to vector<12x12xf32>
    %115 = arith.mulf %112, %114 : vector<12x12xf32>
    %116 = arith.addf %107, %115 : vector<12x12xf32>
    %c112 = arith.constant 112 : index
    %117 = memref.load %arg1[%c112] : memref<200xf32, #tpu.memory_space<smem>>
    %118 = vector.broadcast %117 : f32 to vector<12x12xf32>
    %119 = arith.mulf %112, %118 : vector<12x12xf32>
    %120 = arith.addf %111, %119 : vector<12x12xf32>
    %121 = vector.extract_strided_slice %3 {offsets = [2, 3], sizes = [12, 12], strides = [1, 1]} : vector<16x16xf32> to vector<12x12xf32>
    %c13 = arith.constant 13 : index
    %122 = memref.load %arg1[%c13] : memref<200xf32, #tpu.memory_space<smem>>
    %123 = vector.broadcast %122 : f32 to vector<12x12xf32>
    %124 = arith.mulf %121, %123 : vector<12x12xf32>
    %125 = arith.addf %116, %124 : vector<12x12xf32>
    %c113 = arith.constant 113 : index
    %126 = memref.load %arg1[%c113] : memref<200xf32, #tpu.memory_space<smem>>
    %127 = vector.broadcast %126 : f32 to vector<12x12xf32>
    %128 = arith.mulf %121, %127 : vector<12x12xf32>
    %129 = arith.addf %120, %128 : vector<12x12xf32>
    %130 = vector.extract_strided_slice %3 {offsets = [2, 4], sizes = [12, 12], strides = [1, 1]} : vector<16x16xf32> to vector<12x12xf32>
    %c14 = arith.constant 14 : index
    %131 = memref.load %arg1[%c14] : memref<200xf32, #tpu.memory_space<smem>>
    %132 = vector.broadcast %131 : f32 to vector<12x12xf32>
    %133 = arith.mulf %130, %132 : vector<12x12xf32>
    %134 = arith.addf %125, %133 : vector<12x12xf32>
    %c114 = arith.constant 114 : index
    %135 = memref.load %arg1[%c114] : memref<200xf32, #tpu.memory_space<smem>>
    %136 = vector.broadcast %135 : f32 to vector<12x12xf32>
    %137 = arith.mulf %130, %136 : vector<12x12xf32>
    %138 = arith.addf %129, %137 : vector<12x12xf32>
    %139 = vector.extract_strided_slice %3 {offsets = [3, 0], sizes = [12, 12], strides = [1, 1]} : vector<16x16xf32> to vector<12x12xf32>
    %c15 = arith.constant 15 : index
    %140 = memref.load %arg1[%c15] : memref<200xf32, #tpu.memory_space<smem>>
    %141 = vector.broadcast %140 : f32 to vector<12x12xf32>
    %142 = arith.mulf %139, %141 : vector<12x12xf32>
    %143 = arith.addf %134, %142 : vector<12x12xf32>
    %c115 = arith.constant 115 : index
    %144 = memref.load %arg1[%c115] : memref<200xf32, #tpu.memory_space<smem>>
    %145 = vector.broadcast %144 : f32 to vector<12x12xf32>
    %146 = arith.mulf %139, %145 : vector<12x12xf32>
    %147 = arith.addf %138, %146 : vector<12x12xf32>
    %148 = vector.extract_strided_slice %3 {offsets = [3, 1], sizes = [12, 12], strides = [1, 1]} : vector<16x16xf32> to vector<12x12xf32>
    %c16 = arith.constant 16 : index
    %149 = memref.load %arg1[%c16] : memref<200xf32, #tpu.memory_space<smem>>
    %150 = vector.broadcast %149 : f32 to vector<12x12xf32>
    %151 = arith.mulf %148, %150 : vector<12x12xf32>
    %152 = arith.addf %143, %151 : vector<12x12xf32>
    %c116 = arith.constant 116 : index
    %153 = memref.load %arg1[%c116] : memref<200xf32, #tpu.memory_space<smem>>
    %154 = vector.broadcast %153 : f32 to vector<12x12xf32>
    %155 = arith.mulf %148, %154 : vector<12x12xf32>
    %156 = arith.addf %147, %155 : vector<12x12xf32>
    %157 = vector.extract_strided_slice %3 {offsets = [3, 2], sizes = [12, 12], strides = [1, 1]} : vector<16x16xf32> to vector<12x12xf32>
    %c17 = arith.constant 17 : index
    %158 = memref.load %arg1[%c17] : memref<200xf32, #tpu.memory_space<smem>>
    %159 = vector.broadcast %158 : f32 to vector<12x12xf32>
    %160 = arith.mulf %157, %159 : vector<12x12xf32>
    %161 = arith.addf %152, %160 : vector<12x12xf32>
    %c117 = arith.constant 117 : index
    %162 = memref.load %arg1[%c117] : memref<200xf32, #tpu.memory_space<smem>>
    %163 = vector.broadcast %162 : f32 to vector<12x12xf32>
    %164 = arith.mulf %157, %163 : vector<12x12xf32>
    %165 = arith.addf %156, %164 : vector<12x12xf32>
    %166 = vector.extract_strided_slice %3 {offsets = [3, 3], sizes = [12, 12], strides = [1, 1]} : vector<16x16xf32> to vector<12x12xf32>
    %c18 = arith.constant 18 : index
    %167 = memref.load %arg1[%c18] : memref<200xf32, #tpu.memory_space<smem>>
    %168 = vector.broadcast %167 : f32 to vector<12x12xf32>
    %169 = arith.mulf %166, %168 : vector<12x12xf32>
    %170 = arith.addf %161, %169 : vector<12x12xf32>
    %c118 = arith.constant 118 : index
    %171 = memref.load %arg1[%c118] : memref<200xf32, #tpu.memory_space<smem>>
    %172 = vector.broadcast %171 : f32 to vector<12x12xf32>
    %173 = arith.mulf %166, %172 : vector<12x12xf32>
    %174 = arith.addf %165, %173 : vector<12x12xf32>
    %175 = vector.extract_strided_slice %3 {offsets = [3, 4], sizes = [12, 12], strides = [1, 1]} : vector<16x16xf32> to vector<12x12xf32>
    %c19 = arith.constant 19 : index
    %176 = memref.load %arg1[%c19] : memref<200xf32, #tpu.memory_space<smem>>
    %177 = vector.broadcast %176 : f32 to vector<12x12xf32>
    %178 = arith.mulf %175, %177 : vector<12x12xf32>
    %179 = arith.addf %170, %178 : vector<12x12xf32>
    %c119 = arith.constant 119 : index
    %180 = memref.load %arg1[%c119] : memref<200xf32, #tpu.memory_space<smem>>
    %181 = vector.broadcast %180 : f32 to vector<12x12xf32>
    %182 = arith.mulf %175, %181 : vector<12x12xf32>
    %183 = arith.addf %174, %182 : vector<12x12xf32>
    %184 = vector.extract_strided_slice %3 {offsets = [4, 0], sizes = [12, 12], strides = [1, 1]} : vector<16x16xf32> to vector<12x12xf32>
    %c20 = arith.constant 20 : index
    %185 = memref.load %arg1[%c20] : memref<200xf32, #tpu.memory_space<smem>>
    %186 = vector.broadcast %185 : f32 to vector<12x12xf32>
    %187 = arith.mulf %184, %186 : vector<12x12xf32>
    %188 = arith.addf %179, %187 : vector<12x12xf32>
    %c120 = arith.constant 120 : index
    %189 = memref.load %arg1[%c120] : memref<200xf32, #tpu.memory_space<smem>>
    %190 = vector.broadcast %189 : f32 to vector<12x12xf32>
    %191 = arith.mulf %184, %190 : vector<12x12xf32>
    %192 = arith.addf %183, %191 : vector<12x12xf32>
    %193 = vector.extract_strided_slice %3 {offsets = [4, 1], sizes = [12, 12], strides = [1, 1]} : vector<16x16xf32> to vector<12x12xf32>
    %c21 = arith.constant 21 : index
    %194 = memref.load %arg1[%c21] : memref<200xf32, #tpu.memory_space<smem>>
    %195 = vector.broadcast %194 : f32 to vector<12x12xf32>
    %196 = arith.mulf %193, %195 : vector<12x12xf32>
    %197 = arith.addf %188, %196 : vector<12x12xf32>
    %c121 = arith.constant 121 : index
    %198 = memref.load %arg1[%c121] : memref<200xf32, #tpu.memory_space<smem>>
    %199 = vector.broadcast %198 : f32 to vector<12x12xf32>
    %200 = arith.mulf %193, %199 : vector<12x12xf32>
    %201 = arith.addf %192, %200 : vector<12x12xf32>
    %202 = vector.extract_strided_slice %3 {offsets = [4, 2], sizes = [12, 12], strides = [1, 1]} : vector<16x16xf32> to vector<12x12xf32>
    %c22 = arith.constant 22 : index
    %203 = memref.load %arg1[%c22] : memref<200xf32, #tpu.memory_space<smem>>
    %204 = vector.broadcast %203 : f32 to vector<12x12xf32>
    %205 = arith.mulf %202, %204 : vector<12x12xf32>
    %206 = arith.addf %197, %205 : vector<12x12xf32>
    %c122 = arith.constant 122 : index
    %207 = memref.load %arg1[%c122] : memref<200xf32, #tpu.memory_space<smem>>
    %208 = vector.broadcast %207 : f32 to vector<12x12xf32>
    %209 = arith.mulf %202, %208 : vector<12x12xf32>
    %210 = arith.addf %201, %209 : vector<12x12xf32>
    %211 = vector.extract_strided_slice %3 {offsets = [4, 3], sizes = [12, 12], strides = [1, 1]} : vector<16x16xf32> to vector<12x12xf32>
    %c23 = arith.constant 23 : index
    %212 = memref.load %arg1[%c23] : memref<200xf32, #tpu.memory_space<smem>>
    %213 = vector.broadcast %212 : f32 to vector<12x12xf32>
    %214 = arith.mulf %211, %213 : vector<12x12xf32>
    %215 = arith.addf %206, %214 : vector<12x12xf32>
    %c123 = arith.constant 123 : index
    %216 = memref.load %arg1[%c123] : memref<200xf32, #tpu.memory_space<smem>>
    %217 = vector.broadcast %216 : f32 to vector<12x12xf32>
    %218 = arith.mulf %211, %217 : vector<12x12xf32>
    %219 = arith.addf %210, %218 : vector<12x12xf32>
    %220 = vector.extract_strided_slice %3 {offsets = [4, 4], sizes = [12, 12], strides = [1, 1]} : vector<16x16xf32> to vector<12x12xf32>
    %c24 = arith.constant 24 : index
    %221 = memref.load %arg1[%c24] : memref<200xf32, #tpu.memory_space<smem>>
    %222 = vector.broadcast %221 : f32 to vector<12x12xf32>
    %223 = arith.mulf %220, %222 : vector<12x12xf32>
    %224 = arith.addf %215, %223 : vector<12x12xf32>
    %c124 = arith.constant 124 : index
    %225 = memref.load %arg1[%c124] : memref<200xf32, #tpu.memory_space<smem>>
    %226 = vector.broadcast %225 : f32 to vector<12x12xf32>
    %227 = arith.mulf %220, %226 : vector<12x12xf32>
    %228 = arith.addf %219, %227 : vector<12x12xf32>
    %c0_5 = arith.constant 0 : index
    %c1_6 = arith.constant 1 : index
    %c0_7 = arith.constant 0 : index
    %c0_8 = arith.constant 0 : index
    %229 = vector.load %arg3[%c0_5, %c1_6, %c0_7, %c0_8] : memref<1x4x16x16xf32, #tpu.memory_space<vmem>>, vector<1x1x16x16xf32>
    %230 = vector.shape_cast %229 : vector<1x1x16x16xf32> to vector<16x16xf32>
    %231 = vector.extract_strided_slice %230 {offsets = [0, 0], sizes = [12, 12], strides = [1, 1]} : vector<16x16xf32> to vector<12x12xf32>
    %c25 = arith.constant 25 : index
    %232 = memref.load %arg1[%c25] : memref<200xf32, #tpu.memory_space<smem>>
    %233 = vector.broadcast %232 : f32 to vector<12x12xf32>
    %234 = arith.mulf %231, %233 : vector<12x12xf32>
    %235 = arith.addf %224, %234 : vector<12x12xf32>
    %c125 = arith.constant 125 : index
    %236 = memref.load %arg1[%c125] : memref<200xf32, #tpu.memory_space<smem>>
    %237 = vector.broadcast %236 : f32 to vector<12x12xf32>
    %238 = arith.mulf %231, %237 : vector<12x12xf32>
    %239 = arith.addf %228, %238 : vector<12x12xf32>
    %240 = vector.extract_strided_slice %230 {offsets = [0, 1], sizes = [12, 12], strides = [1, 1]} : vector<16x16xf32> to vector<12x12xf32>
    %c26 = arith.constant 26 : index
    %241 = memref.load %arg1[%c26] : memref<200xf32, #tpu.memory_space<smem>>
    %242 = vector.broadcast %241 : f32 to vector<12x12xf32>
    %243 = arith.mulf %240, %242 : vector<12x12xf32>
    %244 = arith.addf %235, %243 : vector<12x12xf32>
    %c126 = arith.constant 126 : index
    %245 = memref.load %arg1[%c126] : memref<200xf32, #tpu.memory_space<smem>>
    %246 = vector.broadcast %245 : f32 to vector<12x12xf32>
    %247 = arith.mulf %240, %246 : vector<12x12xf32>
    %248 = arith.addf %239, %247 : vector<12x12xf32>
    %249 = vector.extract_strided_slice %230 {offsets = [0, 2], sizes = [12, 12], strides = [1, 1]} : vector<16x16xf32> to vector<12x12xf32>
    %c27 = arith.constant 27 : index
    %250 = memref.load %arg1[%c27] : memref<200xf32, #tpu.memory_space<smem>>
    %251 = vector.broadcast %250 : f32 to vector<12x12xf32>
    %252 = arith.mulf %249, %251 : vector<12x12xf32>
    %253 = arith.addf %244, %252 : vector<12x12xf32>
    %c127 = arith.constant 127 : index
    %254 = memref.load %arg1[%c127] : memref<200xf32, #tpu.memory_space<smem>>
    %255 = vector.broadcast %254 : f32 to vector<12x12xf32>
    %256 = arith.mulf %249, %255 : vector<12x12xf32>
    %257 = arith.addf %248, %256 : vector<12x12xf32>
    %258 = vector.extract_strided_slice %230 {offsets = [0, 3], sizes = [12, 12], strides = [1, 1]} : vector<16x16xf32> to vector<12x12xf32>
    %c28 = arith.constant 28 : index
    %259 = memref.load %arg1[%c28] : memref<200xf32, #tpu.memory_space<smem>>
    %260 = vector.broadcast %259 : f32 to vector<12x12xf32>
    %261 = arith.mulf %258, %260 : vector<12x12xf32>
    %262 = arith.addf %253, %261 : vector<12x12xf32>
    %c128 = arith.constant 128 : index
    %263 = memref.load %arg1[%c128] : memref<200xf32, #tpu.memory_space<smem>>
    %264 = vector.broadcast %263 : f32 to vector<12x12xf32>
    %265 = arith.mulf %258, %264 : vector<12x12xf32>
    %266 = arith.addf %257, %265 : vector<12x12xf32>
    %267 = vector.extract_strided_slice %230 {offsets = [0, 4], sizes = [12, 12], strides = [1, 1]} : vector<16x16xf32> to vector<12x12xf32>
    %c29 = arith.constant 29 : index
    %268 = memref.load %arg1[%c29] : memref<200xf32, #tpu.memory_space<smem>>
    %269 = vector.broadcast %268 : f32 to vector<12x12xf32>
    %270 = arith.mulf %267, %269 : vector<12x12xf32>
    %271 = arith.addf %262, %270 : vector<12x12xf32>
    %c129 = arith.constant 129 : index
    %272 = memref.load %arg1[%c129] : memref<200xf32, #tpu.memory_space<smem>>
    %273 = vector.broadcast %272 : f32 to vector<12x12xf32>
    %274 = arith.mulf %267, %273 : vector<12x12xf32>
    %275 = arith.addf %266, %274 : vector<12x12xf32>
    %276 = vector.extract_strided_slice %230 {offsets = [1, 0], sizes = [12, 12], strides = [1, 1]} : vector<16x16xf32> to vector<12x12xf32>
    %c30 = arith.constant 30 : index
    %277 = memref.load %arg1[%c30] : memref<200xf32, #tpu.memory_space<smem>>
    %278 = vector.broadcast %277 : f32 to vector<12x12xf32>
    %279 = arith.mulf %276, %278 : vector<12x12xf32>
    %280 = arith.addf %271, %279 : vector<12x12xf32>
    %c130 = arith.constant 130 : index
    %281 = memref.load %arg1[%c130] : memref<200xf32, #tpu.memory_space<smem>>
    %282 = vector.broadcast %281 : f32 to vector<12x12xf32>
    %283 = arith.mulf %276, %282 : vector<12x12xf32>
    %284 = arith.addf %275, %283 : vector<12x12xf32>
    %285 = vector.extract_strided_slice %230 {offsets = [1, 1], sizes = [12, 12], strides = [1, 1]} : vector<16x16xf32> to vector<12x12xf32>
    %c31 = arith.constant 31 : index
    %286 = memref.load %arg1[%c31] : memref<200xf32, #tpu.memory_space<smem>>
    %287 = vector.broadcast %286 : f32 to vector<12x12xf32>
    %288 = arith.mulf %285, %287 : vector<12x12xf32>
    %289 = arith.addf %280, %288 : vector<12x12xf32>
    %c131 = arith.constant 131 : index
    %290 = memref.load %arg1[%c131] : memref<200xf32, #tpu.memory_space<smem>>
    %291 = vector.broadcast %290 : f32 to vector<12x12xf32>
    %292 = arith.mulf %285, %291 : vector<12x12xf32>
    %293 = arith.addf %284, %292 : vector<12x12xf32>
    %294 = vector.extract_strided_slice %230 {offsets = [1, 2], sizes = [12, 12], strides = [1, 1]} : vector<16x16xf32> to vector<12x12xf32>
    %c32 = arith.constant 32 : index
    %295 = memref.load %arg1[%c32] : memref<200xf32, #tpu.memory_space<smem>>
    %296 = vector.broadcast %295 : f32 to vector<12x12xf32>
    %297 = arith.mulf %294, %296 : vector<12x12xf32>
    %298 = arith.addf %289, %297 : vector<12x12xf32>
    %c132 = arith.constant 132 : index
    %299 = memref.load %arg1[%c132] : memref<200xf32, #tpu.memory_space<smem>>
    %300 = vector.broadcast %299 : f32 to vector<12x12xf32>
    %301 = arith.mulf %294, %300 : vector<12x12xf32>
    %302 = arith.addf %293, %301 : vector<12x12xf32>
    %303 = vector.extract_strided_slice %230 {offsets = [1, 3], sizes = [12, 12], strides = [1, 1]} : vector<16x16xf32> to vector<12x12xf32>
    %c33 = arith.constant 33 : index
    %304 = memref.load %arg1[%c33] : memref<200xf32, #tpu.memory_space<smem>>
    %305 = vector.broadcast %304 : f32 to vector<12x12xf32>
    %306 = arith.mulf %303, %305 : vector<12x12xf32>
    %307 = arith.addf %298, %306 : vector<12x12xf32>
    %c133 = arith.constant 133 : index
    %308 = memref.load %arg1[%c133] : memref<200xf32, #tpu.memory_space<smem>>
    %309 = vector.broadcast %308 : f32 to vector<12x12xf32>
    %310 = arith.mulf %303, %309 : vector<12x12xf32>
    %311 = arith.addf %302, %310 : vector<12x12xf32>
    %312 = vector.extract_strided_slice %230 {offsets = [1, 4], sizes = [12, 12], strides = [1, 1]} : vector<16x16xf32> to vector<12x12xf32>
    %c34 = arith.constant 34 : index
    %313 = memref.load %arg1[%c34] : memref<200xf32, #tpu.memory_space<smem>>
    %314 = vector.broadcast %313 : f32 to vector<12x12xf32>
    %315 = arith.mulf %312, %314 : vector<12x12xf32>
    %316 = arith.addf %307, %315 : vector<12x12xf32>
    %c134 = arith.constant 134 : index
    %317 = memref.load %arg1[%c134] : memref<200xf32, #tpu.memory_space<smem>>
    %318 = vector.broadcast %317 : f32 to vector<12x12xf32>
    %319 = arith.mulf %312, %318 : vector<12x12xf32>
    %320 = arith.addf %311, %319 : vector<12x12xf32>
    %321 = vector.extract_strided_slice %230 {offsets = [2, 0], sizes = [12, 12], strides = [1, 1]} : vector<16x16xf32> to vector<12x12xf32>
    %c35 = arith.constant 35 : index
    %322 = memref.load %arg1[%c35] : memref<200xf32, #tpu.memory_space<smem>>
    %323 = vector.broadcast %322 : f32 to vector<12x12xf32>
    %324 = arith.mulf %321, %323 : vector<12x12xf32>
    %325 = arith.addf %316, %324 : vector<12x12xf32>
    %c135 = arith.constant 135 : index
    %326 = memref.load %arg1[%c135] : memref<200xf32, #tpu.memory_space<smem>>
    %327 = vector.broadcast %326 : f32 to vector<12x12xf32>
    %328 = arith.mulf %321, %327 : vector<12x12xf32>
    %329 = arith.addf %320, %328 : vector<12x12xf32>
    %330 = vector.extract_strided_slice %230 {offsets = [2, 1], sizes = [12, 12], strides = [1, 1]} : vector<16x16xf32> to vector<12x12xf32>
    %c36 = arith.constant 36 : index
    %331 = memref.load %arg1[%c36] : memref<200xf32, #tpu.memory_space<smem>>
    %332 = vector.broadcast %331 : f32 to vector<12x12xf32>
    %333 = arith.mulf %330, %332 : vector<12x12xf32>
    %334 = arith.addf %325, %333 : vector<12x12xf32>
    %c136 = arith.constant 136 : index
    %335 = memref.load %arg1[%c136] : memref<200xf32, #tpu.memory_space<smem>>
    %336 = vector.broadcast %335 : f32 to vector<12x12xf32>
    %337 = arith.mulf %330, %336 : vector<12x12xf32>
    %338 = arith.addf %329, %337 : vector<12x12xf32>
    %339 = vector.extract_strided_slice %230 {offsets = [2, 2], sizes = [12, 12], strides = [1, 1]} : vector<16x16xf32> to vector<12x12xf32>
    %c37 = arith.constant 37 : index
    %340 = memref.load %arg1[%c37] : memref<200xf32, #tpu.memory_space<smem>>
    %341 = vector.broadcast %340 : f32 to vector<12x12xf32>
    %342 = arith.mulf %339, %341 : vector<12x12xf32>
    %343 = arith.addf %334, %342 : vector<12x12xf32>
    %c137 = arith.constant 137 : index
    %344 = memref.load %arg1[%c137] : memref<200xf32, #tpu.memory_space<smem>>
    %345 = vector.broadcast %344 : f32 to vector<12x12xf32>
    %346 = arith.mulf %339, %345 : vector<12x12xf32>
    %347 = arith.addf %338, %346 : vector<12x12xf32>
    %348 = vector.extract_strided_slice %230 {offsets = [2, 3], sizes = [12, 12], strides = [1, 1]} : vector<16x16xf32> to vector<12x12xf32>
    %c38 = arith.constant 38 : index
    %349 = memref.load %arg1[%c38] : memref<200xf32, #tpu.memory_space<smem>>
    %350 = vector.broadcast %349 : f32 to vector<12x12xf32>
    %351 = arith.mulf %348, %350 : vector<12x12xf32>
    %352 = arith.addf %343, %351 : vector<12x12xf32>
    %c138 = arith.constant 138 : index
    %353 = memref.load %arg1[%c138] : memref<200xf32, #tpu.memory_space<smem>>
    %354 = vector.broadcast %353 : f32 to vector<12x12xf32>
    %355 = arith.mulf %348, %354 : vector<12x12xf32>
    %356 = arith.addf %347, %355 : vector<12x12xf32>
    %357 = vector.extract_strided_slice %230 {offsets = [2, 4], sizes = [12, 12], strides = [1, 1]} : vector<16x16xf32> to vector<12x12xf32>
    %c39 = arith.constant 39 : index
    %358 = memref.load %arg1[%c39] : memref<200xf32, #tpu.memory_space<smem>>
    %359 = vector.broadcast %358 : f32 to vector<12x12xf32>
    %360 = arith.mulf %357, %359 : vector<12x12xf32>
    %361 = arith.addf %352, %360 : vector<12x12xf32>
    %c139 = arith.constant 139 : index
    %362 = memref.load %arg1[%c139] : memref<200xf32, #tpu.memory_space<smem>>
    %363 = vector.broadcast %362 : f32 to vector<12x12xf32>
    %364 = arith.mulf %357, %363 : vector<12x12xf32>
    %365 = arith.addf %356, %364 : vector<12x12xf32>
    %366 = vector.extract_strided_slice %230 {offsets = [3, 0], sizes = [12, 12], strides = [1, 1]} : vector<16x16xf32> to vector<12x12xf32>
    %c40 = arith.constant 40 : index
    %367 = memref.load %arg1[%c40] : memref<200xf32, #tpu.memory_space<smem>>
    %368 = vector.broadcast %367 : f32 to vector<12x12xf32>
    %369 = arith.mulf %366, %368 : vector<12x12xf32>
    %370 = arith.addf %361, %369 : vector<12x12xf32>
    %c140 = arith.constant 140 : index
    %371 = memref.load %arg1[%c140] : memref<200xf32, #tpu.memory_space<smem>>
    %372 = vector.broadcast %371 : f32 to vector<12x12xf32>
    %373 = arith.mulf %366, %372 : vector<12x12xf32>
    %374 = arith.addf %365, %373 : vector<12x12xf32>
    %375 = vector.extract_strided_slice %230 {offsets = [3, 1], sizes = [12, 12], strides = [1, 1]} : vector<16x16xf32> to vector<12x12xf32>
    %c41 = arith.constant 41 : index
    %376 = memref.load %arg1[%c41] : memref<200xf32, #tpu.memory_space<smem>>
    %377 = vector.broadcast %376 : f32 to vector<12x12xf32>
    %378 = arith.mulf %375, %377 : vector<12x12xf32>
    %379 = arith.addf %370, %378 : vector<12x12xf32>
    %c141 = arith.constant 141 : index
    %380 = memref.load %arg1[%c141] : memref<200xf32, #tpu.memory_space<smem>>
    %381 = vector.broadcast %380 : f32 to vector<12x12xf32>
    %382 = arith.mulf %375, %381 : vector<12x12xf32>
    %383 = arith.addf %374, %382 : vector<12x12xf32>
    %384 = vector.extract_strided_slice %230 {offsets = [3, 2], sizes = [12, 12], strides = [1, 1]} : vector<16x16xf32> to vector<12x12xf32>
    %c42 = arith.constant 42 : index
    %385 = memref.load %arg1[%c42] : memref<200xf32, #tpu.memory_space<smem>>
    %386 = vector.broadcast %385 : f32 to vector<12x12xf32>
    %387 = arith.mulf %384, %386 : vector<12x12xf32>
    %388 = arith.addf %379, %387 : vector<12x12xf32>
    %c142 = arith.constant 142 : index
    %389 = memref.load %arg1[%c142] : memref<200xf32, #tpu.memory_space<smem>>
    %390 = vector.broadcast %389 : f32 to vector<12x12xf32>
    %391 = arith.mulf %384, %390 : vector<12x12xf32>
    %392 = arith.addf %383, %391 : vector<12x12xf32>
    %393 = vector.extract_strided_slice %230 {offsets = [3, 3], sizes = [12, 12], strides = [1, 1]} : vector<16x16xf32> to vector<12x12xf32>
    %c43 = arith.constant 43 : index
    %394 = memref.load %arg1[%c43] : memref<200xf32, #tpu.memory_space<smem>>
    %395 = vector.broadcast %394 : f32 to vector<12x12xf32>
    %396 = arith.mulf %393, %395 : vector<12x12xf32>
    %397 = arith.addf %388, %396 : vector<12x12xf32>
    %c143 = arith.constant 143 : index
    %398 = memref.load %arg1[%c143] : memref<200xf32, #tpu.memory_space<smem>>
    %399 = vector.broadcast %398 : f32 to vector<12x12xf32>
    %400 = arith.mulf %393, %399 : vector<12x12xf32>
    %401 = arith.addf %392, %400 : vector<12x12xf32>
    %402 = vector.extract_strided_slice %230 {offsets = [3, 4], sizes = [12, 12], strides = [1, 1]} : vector<16x16xf32> to vector<12x12xf32>
    %c44 = arith.constant 44 : index
    %403 = memref.load %arg1[%c44] : memref<200xf32, #tpu.memory_space<smem>>
    %404 = vector.broadcast %403 : f32 to vector<12x12xf32>
    %405 = arith.mulf %402, %404 : vector<12x12xf32>
    %406 = arith.addf %397, %405 : vector<12x12xf32>
    %c144 = arith.constant 144 : index
    %407 = memref.load %arg1[%c144] : memref<200xf32, #tpu.memory_space<smem>>
    %408 = vector.broadcast %407 : f32 to vector<12x12xf32>
    %409 = arith.mulf %402, %408 : vector<12x12xf32>
    %410 = arith.addf %401, %409 : vector<12x12xf32>
    %411 = vector.extract_strided_slice %230 {offsets = [4, 0], sizes = [12, 12], strides = [1, 1]} : vector<16x16xf32> to vector<12x12xf32>
    %c45 = arith.constant 45 : index
    %412 = memref.load %arg1[%c45] : memref<200xf32, #tpu.memory_space<smem>>
    %413 = vector.broadcast %412 : f32 to vector<12x12xf32>
    %414 = arith.mulf %411, %413 : vector<12x12xf32>
    %415 = arith.addf %406, %414 : vector<12x12xf32>
    %c145 = arith.constant 145 : index
    %416 = memref.load %arg1[%c145] : memref<200xf32, #tpu.memory_space<smem>>
    %417 = vector.broadcast %416 : f32 to vector<12x12xf32>
    %418 = arith.mulf %411, %417 : vector<12x12xf32>
    %419 = arith.addf %410, %418 : vector<12x12xf32>
    %420 = vector.extract_strided_slice %230 {offsets = [4, 1], sizes = [12, 12], strides = [1, 1]} : vector<16x16xf32> to vector<12x12xf32>
    %c46 = arith.constant 46 : index
    %421 = memref.load %arg1[%c46] : memref<200xf32, #tpu.memory_space<smem>>
    %422 = vector.broadcast %421 : f32 to vector<12x12xf32>
    %423 = arith.mulf %420, %422 : vector<12x12xf32>
    %424 = arith.addf %415, %423 : vector<12x12xf32>
    %c146 = arith.constant 146 : index
    %425 = memref.load %arg1[%c146] : memref<200xf32, #tpu.memory_space<smem>>
    %426 = vector.broadcast %425 : f32 to vector<12x12xf32>
    %427 = arith.mulf %420, %426 : vector<12x12xf32>
    %428 = arith.addf %419, %427 : vector<12x12xf32>
    %429 = vector.extract_strided_slice %230 {offsets = [4, 2], sizes = [12, 12], strides = [1, 1]} : vector<16x16xf32> to vector<12x12xf32>
    %c47 = arith.constant 47 : index
    %430 = memref.load %arg1[%c47] : memref<200xf32, #tpu.memory_space<smem>>
    %431 = vector.broadcast %430 : f32 to vector<12x12xf32>
    %432 = arith.mulf %429, %431 : vector<12x12xf32>
    %433 = arith.addf %424, %432 : vector<12x12xf32>
    %c147 = arith.constant 147 : index
    %434 = memref.load %arg1[%c147] : memref<200xf32, #tpu.memory_space<smem>>
    %435 = vector.broadcast %434 : f32 to vector<12x12xf32>
    %436 = arith.mulf %429, %435 : vector<12x12xf32>
    %437 = arith.addf %428, %436 : vector<12x12xf32>
    %438 = vector.extract_strided_slice %230 {offsets = [4, 3], sizes = [12, 12], strides = [1, 1]} : vector<16x16xf32> to vector<12x12xf32>
    %c48 = arith.constant 48 : index
    %439 = memref.load %arg1[%c48] : memref<200xf32, #tpu.memory_space<smem>>
    %440 = vector.broadcast %439 : f32 to vector<12x12xf32>
    %441 = arith.mulf %438, %440 : vector<12x12xf32>
    %442 = arith.addf %433, %441 : vector<12x12xf32>
    %c148 = arith.constant 148 : index
    %443 = memref.load %arg1[%c148] : memref<200xf32, #tpu.memory_space<smem>>
    %444 = vector.broadcast %443 : f32 to vector<12x12xf32>
    %445 = arith.mulf %438, %444 : vector<12x12xf32>
    %446 = arith.addf %437, %445 : vector<12x12xf32>
    %447 = vector.extract_strided_slice %230 {offsets = [4, 4], sizes = [12, 12], strides = [1, 1]} : vector<16x16xf32> to vector<12x12xf32>
    %c49 = arith.constant 49 : index
    %448 = memref.load %arg1[%c49] : memref<200xf32, #tpu.memory_space<smem>>
    %449 = vector.broadcast %448 : f32 to vector<12x12xf32>
    %450 = arith.mulf %447, %449 : vector<12x12xf32>
    %451 = arith.addf %442, %450 : vector<12x12xf32>
    %c149 = arith.constant 149 : index
    %452 = memref.load %arg1[%c149] : memref<200xf32, #tpu.memory_space<smem>>
    %453 = vector.broadcast %452 : f32 to vector<12x12xf32>
    %454 = arith.mulf %447, %453 : vector<12x12xf32>
    %455 = arith.addf %446, %454 : vector<12x12xf32>
    %c0_9 = arith.constant 0 : index
    %c2_10 = arith.constant 2 : index
    %c0_11 = arith.constant 0 : index
    %c0_12 = arith.constant 0 : index
    %456 = vector.load %arg3[%c0_9, %c2_10, %c0_11, %c0_12] : memref<1x4x16x16xf32, #tpu.memory_space<vmem>>, vector<1x1x16x16xf32>
    %457 = vector.shape_cast %456 : vector<1x1x16x16xf32> to vector<16x16xf32>
    %458 = vector.extract_strided_slice %457 {offsets = [0, 0], sizes = [12, 12], strides = [1, 1]} : vector<16x16xf32> to vector<12x12xf32>
    %c50 = arith.constant 50 : index
    %459 = memref.load %arg1[%c50] : memref<200xf32, #tpu.memory_space<smem>>
    %460 = vector.broadcast %459 : f32 to vector<12x12xf32>
    %461 = arith.mulf %458, %460 : vector<12x12xf32>
    %462 = arith.addf %451, %461 : vector<12x12xf32>
    %c150 = arith.constant 150 : index
    %463 = memref.load %arg1[%c150] : memref<200xf32, #tpu.memory_space<smem>>
    %464 = vector.broadcast %463 : f32 to vector<12x12xf32>
    %465 = arith.mulf %458, %464 : vector<12x12xf32>
    %466 = arith.addf %455, %465 : vector<12x12xf32>
    %467 = vector.extract_strided_slice %457 {offsets = [0, 1], sizes = [12, 12], strides = [1, 1]} : vector<16x16xf32> to vector<12x12xf32>
    %c51 = arith.constant 51 : index
    %468 = memref.load %arg1[%c51] : memref<200xf32, #tpu.memory_space<smem>>
    %469 = vector.broadcast %468 : f32 to vector<12x12xf32>
    %470 = arith.mulf %467, %469 : vector<12x12xf32>
    %471 = arith.addf %462, %470 : vector<12x12xf32>
    %c151 = arith.constant 151 : index
    %472 = memref.load %arg1[%c151] : memref<200xf32, #tpu.memory_space<smem>>
    %473 = vector.broadcast %472 : f32 to vector<12x12xf32>
    %474 = arith.mulf %467, %473 : vector<12x12xf32>
    %475 = arith.addf %466, %474 : vector<12x12xf32>
    %476 = vector.extract_strided_slice %457 {offsets = [0, 2], sizes = [12, 12], strides = [1, 1]} : vector<16x16xf32> to vector<12x12xf32>
    %c52 = arith.constant 52 : index
    %477 = memref.load %arg1[%c52] : memref<200xf32, #tpu.memory_space<smem>>
    %478 = vector.broadcast %477 : f32 to vector<12x12xf32>
    %479 = arith.mulf %476, %478 : vector<12x12xf32>
    %480 = arith.addf %471, %479 : vector<12x12xf32>
    %c152 = arith.constant 152 : index
    %481 = memref.load %arg1[%c152] : memref<200xf32, #tpu.memory_space<smem>>
    %482 = vector.broadcast %481 : f32 to vector<12x12xf32>
    %483 = arith.mulf %476, %482 : vector<12x12xf32>
    %484 = arith.addf %475, %483 : vector<12x12xf32>
    %485 = vector.extract_strided_slice %457 {offsets = [0, 3], sizes = [12, 12], strides = [1, 1]} : vector<16x16xf32> to vector<12x12xf32>
    %c53 = arith.constant 53 : index
    %486 = memref.load %arg1[%c53] : memref<200xf32, #tpu.memory_space<smem>>
    %487 = vector.broadcast %486 : f32 to vector<12x12xf32>
    %488 = arith.mulf %485, %487 : vector<12x12xf32>
    %489 = arith.addf %480, %488 : vector<12x12xf32>
    %c153 = arith.constant 153 : index
    %490 = memref.load %arg1[%c153] : memref<200xf32, #tpu.memory_space<smem>>
    %491 = vector.broadcast %490 : f32 to vector<12x12xf32>
    %492 = arith.mulf %485, %491 : vector<12x12xf32>
    %493 = arith.addf %484, %492 : vector<12x12xf32>
    %494 = vector.extract_strided_slice %457 {offsets = [0, 4], sizes = [12, 12], strides = [1, 1]} : vector<16x16xf32> to vector<12x12xf32>
    %c54 = arith.constant 54 : index
    %495 = memref.load %arg1[%c54] : memref<200xf32, #tpu.memory_space<smem>>
    %496 = vector.broadcast %495 : f32 to vector<12x12xf32>
    %497 = arith.mulf %494, %496 : vector<12x12xf32>
    %498 = arith.addf %489, %497 : vector<12x12xf32>
    %c154 = arith.constant 154 : index
    %499 = memref.load %arg1[%c154] : memref<200xf32, #tpu.memory_space<smem>>
    %500 = vector.broadcast %499 : f32 to vector<12x12xf32>
    %501 = arith.mulf %494, %500 : vector<12x12xf32>
    %502 = arith.addf %493, %501 : vector<12x12xf32>
    %503 = vector.extract_strided_slice %457 {offsets = [1, 0], sizes = [12, 12], strides = [1, 1]} : vector<16x16xf32> to vector<12x12xf32>
    %c55 = arith.constant 55 : index
    %504 = memref.load %arg1[%c55] : memref<200xf32, #tpu.memory_space<smem>>
    %505 = vector.broadcast %504 : f32 to vector<12x12xf32>
    %506 = arith.mulf %503, %505 : vector<12x12xf32>
    %507 = arith.addf %498, %506 : vector<12x12xf32>
    %c155 = arith.constant 155 : index
    %508 = memref.load %arg1[%c155] : memref<200xf32, #tpu.memory_space<smem>>
    %509 = vector.broadcast %508 : f32 to vector<12x12xf32>
    %510 = arith.mulf %503, %509 : vector<12x12xf32>
    %511 = arith.addf %502, %510 : vector<12x12xf32>
    %512 = vector.extract_strided_slice %457 {offsets = [1, 1], sizes = [12, 12], strides = [1, 1]} : vector<16x16xf32> to vector<12x12xf32>
    %c56 = arith.constant 56 : index
    %513 = memref.load %arg1[%c56] : memref<200xf32, #tpu.memory_space<smem>>
    %514 = vector.broadcast %513 : f32 to vector<12x12xf32>
    %515 = arith.mulf %512, %514 : vector<12x12xf32>
    %516 = arith.addf %507, %515 : vector<12x12xf32>
    %c156 = arith.constant 156 : index
    %517 = memref.load %arg1[%c156] : memref<200xf32, #tpu.memory_space<smem>>
    %518 = vector.broadcast %517 : f32 to vector<12x12xf32>
    %519 = arith.mulf %512, %518 : vector<12x12xf32>
    %520 = arith.addf %511, %519 : vector<12x12xf32>
    %521 = vector.extract_strided_slice %457 {offsets = [1, 2], sizes = [12, 12], strides = [1, 1]} : vector<16x16xf32> to vector<12x12xf32>
    %c57 = arith.constant 57 : index
    %522 = memref.load %arg1[%c57] : memref<200xf32, #tpu.memory_space<smem>>
    %523 = vector.broadcast %522 : f32 to vector<12x12xf32>
    %524 = arith.mulf %521, %523 : vector<12x12xf32>
    %525 = arith.addf %516, %524 : vector<12x12xf32>
    %c157 = arith.constant 157 : index
    %526 = memref.load %arg1[%c157] : memref<200xf32, #tpu.memory_space<smem>>
    %527 = vector.broadcast %526 : f32 to vector<12x12xf32>
    %528 = arith.mulf %521, %527 : vector<12x12xf32>
    %529 = arith.addf %520, %528 : vector<12x12xf32>
    %530 = vector.extract_strided_slice %457 {offsets = [1, 3], sizes = [12, 12], strides = [1, 1]} : vector<16x16xf32> to vector<12x12xf32>
    %c58 = arith.constant 58 : index
    %531 = memref.load %arg1[%c58] : memref<200xf32, #tpu.memory_space<smem>>
    %532 = vector.broadcast %531 : f32 to vector<12x12xf32>
    %533 = arith.mulf %530, %532 : vector<12x12xf32>
    %534 = arith.addf %525, %533 : vector<12x12xf32>
    %c158 = arith.constant 158 : index
    %535 = memref.load %arg1[%c158] : memref<200xf32, #tpu.memory_space<smem>>
    %536 = vector.broadcast %535 : f32 to vector<12x12xf32>
    %537 = arith.mulf %530, %536 : vector<12x12xf32>
    %538 = arith.addf %529, %537 : vector<12x12xf32>
    %539 = vector.extract_strided_slice %457 {offsets = [1, 4], sizes = [12, 12], strides = [1, 1]} : vector<16x16xf32> to vector<12x12xf32>
    %c59 = arith.constant 59 : index
    %540 = memref.load %arg1[%c59] : memref<200xf32, #tpu.memory_space<smem>>
    %541 = vector.broadcast %540 : f32 to vector<12x12xf32>
    %542 = arith.mulf %539, %541 : vector<12x12xf32>
    %543 = arith.addf %534, %542 : vector<12x12xf32>
    %c159 = arith.constant 159 : index
    %544 = memref.load %arg1[%c159] : memref<200xf32, #tpu.memory_space<smem>>
    %545 = vector.broadcast %544 : f32 to vector<12x12xf32>
    %546 = arith.mulf %539, %545 : vector<12x12xf32>
    %547 = arith.addf %538, %546 : vector<12x12xf32>
    %548 = vector.extract_strided_slice %457 {offsets = [2, 0], sizes = [12, 12], strides = [1, 1]} : vector<16x16xf32> to vector<12x12xf32>
    %c60 = arith.constant 60 : index
    %549 = memref.load %arg1[%c60] : memref<200xf32, #tpu.memory_space<smem>>
    %550 = vector.broadcast %549 : f32 to vector<12x12xf32>
    %551 = arith.mulf %548, %550 : vector<12x12xf32>
    %552 = arith.addf %543, %551 : vector<12x12xf32>
    %c160 = arith.constant 160 : index
    %553 = memref.load %arg1[%c160] : memref<200xf32, #tpu.memory_space<smem>>
    %554 = vector.broadcast %553 : f32 to vector<12x12xf32>
    %555 = arith.mulf %548, %554 : vector<12x12xf32>
    %556 = arith.addf %547, %555 : vector<12x12xf32>
    %557 = vector.extract_strided_slice %457 {offsets = [2, 1], sizes = [12, 12], strides = [1, 1]} : vector<16x16xf32> to vector<12x12xf32>
    %c61 = arith.constant 61 : index
    %558 = memref.load %arg1[%c61] : memref<200xf32, #tpu.memory_space<smem>>
    %559 = vector.broadcast %558 : f32 to vector<12x12xf32>
    %560 = arith.mulf %557, %559 : vector<12x12xf32>
    %561 = arith.addf %552, %560 : vector<12x12xf32>
    %c161 = arith.constant 161 : index
    %562 = memref.load %arg1[%c161] : memref<200xf32, #tpu.memory_space<smem>>
    %563 = vector.broadcast %562 : f32 to vector<12x12xf32>
    %564 = arith.mulf %557, %563 : vector<12x12xf32>
    %565 = arith.addf %556, %564 : vector<12x12xf32>
    %566 = vector.extract_strided_slice %457 {offsets = [2, 2], sizes = [12, 12], strides = [1, 1]} : vector<16x16xf32> to vector<12x12xf32>
    %c62 = arith.constant 62 : index
    %567 = memref.load %arg1[%c62] : memref<200xf32, #tpu.memory_space<smem>>
    %568 = vector.broadcast %567 : f32 to vector<12x12xf32>
    %569 = arith.mulf %566, %568 : vector<12x12xf32>
    %570 = arith.addf %561, %569 : vector<12x12xf32>
    %c162 = arith.constant 162 : index
    %571 = memref.load %arg1[%c162] : memref<200xf32, #tpu.memory_space<smem>>
    %572 = vector.broadcast %571 : f32 to vector<12x12xf32>
    %573 = arith.mulf %566, %572 : vector<12x12xf32>
    %574 = arith.addf %565, %573 : vector<12x12xf32>
    %575 = vector.extract_strided_slice %457 {offsets = [2, 3], sizes = [12, 12], strides = [1, 1]} : vector<16x16xf32> to vector<12x12xf32>
    %c63 = arith.constant 63 : index
    %576 = memref.load %arg1[%c63] : memref<200xf32, #tpu.memory_space<smem>>
    %577 = vector.broadcast %576 : f32 to vector<12x12xf32>
    %578 = arith.mulf %575, %577 : vector<12x12xf32>
    %579 = arith.addf %570, %578 : vector<12x12xf32>
    %c163 = arith.constant 163 : index
    %580 = memref.load %arg1[%c163] : memref<200xf32, #tpu.memory_space<smem>>
    %581 = vector.broadcast %580 : f32 to vector<12x12xf32>
    %582 = arith.mulf %575, %581 : vector<12x12xf32>
    %583 = arith.addf %574, %582 : vector<12x12xf32>
    %584 = vector.extract_strided_slice %457 {offsets = [2, 4], sizes = [12, 12], strides = [1, 1]} : vector<16x16xf32> to vector<12x12xf32>
    %c64 = arith.constant 64 : index
    %585 = memref.load %arg1[%c64] : memref<200xf32, #tpu.memory_space<smem>>
    %586 = vector.broadcast %585 : f32 to vector<12x12xf32>
    %587 = arith.mulf %584, %586 : vector<12x12xf32>
    %588 = arith.addf %579, %587 : vector<12x12xf32>
    %c164 = arith.constant 164 : index
    %589 = memref.load %arg1[%c164] : memref<200xf32, #tpu.memory_space<smem>>
    %590 = vector.broadcast %589 : f32 to vector<12x12xf32>
    %591 = arith.mulf %584, %590 : vector<12x12xf32>
    %592 = arith.addf %583, %591 : vector<12x12xf32>
    %593 = vector.extract_strided_slice %457 {offsets = [3, 0], sizes = [12, 12], strides = [1, 1]} : vector<16x16xf32> to vector<12x12xf32>
    %c65 = arith.constant 65 : index
    %594 = memref.load %arg1[%c65] : memref<200xf32, #tpu.memory_space<smem>>
    %595 = vector.broadcast %594 : f32 to vector<12x12xf32>
    %596 = arith.mulf %593, %595 : vector<12x12xf32>
    %597 = arith.addf %588, %596 : vector<12x12xf32>
    %c165 = arith.constant 165 : index
    %598 = memref.load %arg1[%c165] : memref<200xf32, #tpu.memory_space<smem>>
    %599 = vector.broadcast %598 : f32 to vector<12x12xf32>
    %600 = arith.mulf %593, %599 : vector<12x12xf32>
    %601 = arith.addf %592, %600 : vector<12x12xf32>
    %602 = vector.extract_strided_slice %457 {offsets = [3, 1], sizes = [12, 12], strides = [1, 1]} : vector<16x16xf32> to vector<12x12xf32>
    %c66 = arith.constant 66 : index
    %603 = memref.load %arg1[%c66] : memref<200xf32, #tpu.memory_space<smem>>
    %604 = vector.broadcast %603 : f32 to vector<12x12xf32>
    %605 = arith.mulf %602, %604 : vector<12x12xf32>
    %606 = arith.addf %597, %605 : vector<12x12xf32>
    %c166 = arith.constant 166 : index
    %607 = memref.load %arg1[%c166] : memref<200xf32, #tpu.memory_space<smem>>
    %608 = vector.broadcast %607 : f32 to vector<12x12xf32>
    %609 = arith.mulf %602, %608 : vector<12x12xf32>
    %610 = arith.addf %601, %609 : vector<12x12xf32>
    %611 = vector.extract_strided_slice %457 {offsets = [3, 2], sizes = [12, 12], strides = [1, 1]} : vector<16x16xf32> to vector<12x12xf32>
    %c67 = arith.constant 67 : index
    %612 = memref.load %arg1[%c67] : memref<200xf32, #tpu.memory_space<smem>>
    %613 = vector.broadcast %612 : f32 to vector<12x12xf32>
    %614 = arith.mulf %611, %613 : vector<12x12xf32>
    %615 = arith.addf %606, %614 : vector<12x12xf32>
    %c167 = arith.constant 167 : index
    %616 = memref.load %arg1[%c167] : memref<200xf32, #tpu.memory_space<smem>>
    %617 = vector.broadcast %616 : f32 to vector<12x12xf32>
    %618 = arith.mulf %611, %617 : vector<12x12xf32>
    %619 = arith.addf %610, %618 : vector<12x12xf32>
    %620 = vector.extract_strided_slice %457 {offsets = [3, 3], sizes = [12, 12], strides = [1, 1]} : vector<16x16xf32> to vector<12x12xf32>
    %c68 = arith.constant 68 : index
    %621 = memref.load %arg1[%c68] : memref<200xf32, #tpu.memory_space<smem>>
    %622 = vector.broadcast %621 : f32 to vector<12x12xf32>
    %623 = arith.mulf %620, %622 : vector<12x12xf32>
    %624 = arith.addf %615, %623 : vector<12x12xf32>
    %c168 = arith.constant 168 : index
    %625 = memref.load %arg1[%c168] : memref<200xf32, #tpu.memory_space<smem>>
    %626 = vector.broadcast %625 : f32 to vector<12x12xf32>
    %627 = arith.mulf %620, %626 : vector<12x12xf32>
    %628 = arith.addf %619, %627 : vector<12x12xf32>
    %629 = vector.extract_strided_slice %457 {offsets = [3, 4], sizes = [12, 12], strides = [1, 1]} : vector<16x16xf32> to vector<12x12xf32>
    %c69 = arith.constant 69 : index
    %630 = memref.load %arg1[%c69] : memref<200xf32, #tpu.memory_space<smem>>
    %631 = vector.broadcast %630 : f32 to vector<12x12xf32>
    %632 = arith.mulf %629, %631 : vector<12x12xf32>
    %633 = arith.addf %624, %632 : vector<12x12xf32>
    %c169 = arith.constant 169 : index
    %634 = memref.load %arg1[%c169] : memref<200xf32, #tpu.memory_space<smem>>
    %635 = vector.broadcast %634 : f32 to vector<12x12xf32>
    %636 = arith.mulf %629, %635 : vector<12x12xf32>
    %637 = arith.addf %628, %636 : vector<12x12xf32>
    %638 = vector.extract_strided_slice %457 {offsets = [4, 0], sizes = [12, 12], strides = [1, 1]} : vector<16x16xf32> to vector<12x12xf32>
    %c70 = arith.constant 70 : index
    %639 = memref.load %arg1[%c70] : memref<200xf32, #tpu.memory_space<smem>>
    %640 = vector.broadcast %639 : f32 to vector<12x12xf32>
    %641 = arith.mulf %638, %640 : vector<12x12xf32>
    %642 = arith.addf %633, %641 : vector<12x12xf32>
    %c170 = arith.constant 170 : index
    %643 = memref.load %arg1[%c170] : memref<200xf32, #tpu.memory_space<smem>>
    %644 = vector.broadcast %643 : f32 to vector<12x12xf32>
    %645 = arith.mulf %638, %644 : vector<12x12xf32>
    %646 = arith.addf %637, %645 : vector<12x12xf32>
    %647 = vector.extract_strided_slice %457 {offsets = [4, 1], sizes = [12, 12], strides = [1, 1]} : vector<16x16xf32> to vector<12x12xf32>
    %c71 = arith.constant 71 : index
    %648 = memref.load %arg1[%c71] : memref<200xf32, #tpu.memory_space<smem>>
    %649 = vector.broadcast %648 : f32 to vector<12x12xf32>
    %650 = arith.mulf %647, %649 : vector<12x12xf32>
    %651 = arith.addf %642, %650 : vector<12x12xf32>
    %c171 = arith.constant 171 : index
    %652 = memref.load %arg1[%c171] : memref<200xf32, #tpu.memory_space<smem>>
    %653 = vector.broadcast %652 : f32 to vector<12x12xf32>
    %654 = arith.mulf %647, %653 : vector<12x12xf32>
    %655 = arith.addf %646, %654 : vector<12x12xf32>
    %656 = vector.extract_strided_slice %457 {offsets = [4, 2], sizes = [12, 12], strides = [1, 1]} : vector<16x16xf32> to vector<12x12xf32>
    %c72 = arith.constant 72 : index
    %657 = memref.load %arg1[%c72] : memref<200xf32, #tpu.memory_space<smem>>
    %658 = vector.broadcast %657 : f32 to vector<12x12xf32>
    %659 = arith.mulf %656, %658 : vector<12x12xf32>
    %660 = arith.addf %651, %659 : vector<12x12xf32>
    %c172 = arith.constant 172 : index
    %661 = memref.load %arg1[%c172] : memref<200xf32, #tpu.memory_space<smem>>
    %662 = vector.broadcast %661 : f32 to vector<12x12xf32>
    %663 = arith.mulf %656, %662 : vector<12x12xf32>
    %664 = arith.addf %655, %663 : vector<12x12xf32>
    %665 = vector.extract_strided_slice %457 {offsets = [4, 3], sizes = [12, 12], strides = [1, 1]} : vector<16x16xf32> to vector<12x12xf32>
    %c73 = arith.constant 73 : index
    %666 = memref.load %arg1[%c73] : memref<200xf32, #tpu.memory_space<smem>>
    %667 = vector.broadcast %666 : f32 to vector<12x12xf32>
    %668 = arith.mulf %665, %667 : vector<12x12xf32>
    %669 = arith.addf %660, %668 : vector<12x12xf32>
    %c173 = arith.constant 173 : index
    %670 = memref.load %arg1[%c173] : memref<200xf32, #tpu.memory_space<smem>>
    %671 = vector.broadcast %670 : f32 to vector<12x12xf32>
    %672 = arith.mulf %665, %671 : vector<12x12xf32>
    %673 = arith.addf %664, %672 : vector<12x12xf32>
    %674 = vector.extract_strided_slice %457 {offsets = [4, 4], sizes = [12, 12], strides = [1, 1]} : vector<16x16xf32> to vector<12x12xf32>
    %c74 = arith.constant 74 : index
    %675 = memref.load %arg1[%c74] : memref<200xf32, #tpu.memory_space<smem>>
    %676 = vector.broadcast %675 : f32 to vector<12x12xf32>
    %677 = arith.mulf %674, %676 : vector<12x12xf32>
    %678 = arith.addf %669, %677 : vector<12x12xf32>
    %c174 = arith.constant 174 : index
    %679 = memref.load %arg1[%c174] : memref<200xf32, #tpu.memory_space<smem>>
    %680 = vector.broadcast %679 : f32 to vector<12x12xf32>
    %681 = arith.mulf %674, %680 : vector<12x12xf32>
    %682 = arith.addf %673, %681 : vector<12x12xf32>
    %c0_13 = arith.constant 0 : index
    %c3_14 = arith.constant 3 : index
    %c0_15 = arith.constant 0 : index
    %c0_16 = arith.constant 0 : index
    %683 = vector.load %arg3[%c0_13, %c3_14, %c0_15, %c0_16] : memref<1x4x16x16xf32, #tpu.memory_space<vmem>>, vector<1x1x16x16xf32>
    %684 = vector.shape_cast %683 : vector<1x1x16x16xf32> to vector<16x16xf32>
    %685 = vector.extract_strided_slice %684 {offsets = [0, 0], sizes = [12, 12], strides = [1, 1]} : vector<16x16xf32> to vector<12x12xf32>
    %c75 = arith.constant 75 : index
    %686 = memref.load %arg1[%c75] : memref<200xf32, #tpu.memory_space<smem>>
    %687 = vector.broadcast %686 : f32 to vector<12x12xf32>
    %688 = arith.mulf %685, %687 : vector<12x12xf32>
    %689 = arith.addf %678, %688 : vector<12x12xf32>
    %c175 = arith.constant 175 : index
    %690 = memref.load %arg1[%c175] : memref<200xf32, #tpu.memory_space<smem>>
    %691 = vector.broadcast %690 : f32 to vector<12x12xf32>
    %692 = arith.mulf %685, %691 : vector<12x12xf32>
    %693 = arith.addf %682, %692 : vector<12x12xf32>
    %694 = vector.extract_strided_slice %684 {offsets = [0, 1], sizes = [12, 12], strides = [1, 1]} : vector<16x16xf32> to vector<12x12xf32>
    %c76 = arith.constant 76 : index
    %695 = memref.load %arg1[%c76] : memref<200xf32, #tpu.memory_space<smem>>
    %696 = vector.broadcast %695 : f32 to vector<12x12xf32>
    %697 = arith.mulf %694, %696 : vector<12x12xf32>
    %698 = arith.addf %689, %697 : vector<12x12xf32>
    %c176 = arith.constant 176 : index
    %699 = memref.load %arg1[%c176] : memref<200xf32, #tpu.memory_space<smem>>
    %700 = vector.broadcast %699 : f32 to vector<12x12xf32>
    %701 = arith.mulf %694, %700 : vector<12x12xf32>
    %702 = arith.addf %693, %701 : vector<12x12xf32>
    %703 = vector.extract_strided_slice %684 {offsets = [0, 2], sizes = [12, 12], strides = [1, 1]} : vector<16x16xf32> to vector<12x12xf32>
    %c77 = arith.constant 77 : index
    %704 = memref.load %arg1[%c77] : memref<200xf32, #tpu.memory_space<smem>>
    %705 = vector.broadcast %704 : f32 to vector<12x12xf32>
    %706 = arith.mulf %703, %705 : vector<12x12xf32>
    %707 = arith.addf %698, %706 : vector<12x12xf32>
    %c177 = arith.constant 177 : index
    %708 = memref.load %arg1[%c177] : memref<200xf32, #tpu.memory_space<smem>>
    %709 = vector.broadcast %708 : f32 to vector<12x12xf32>
    %710 = arith.mulf %703, %709 : vector<12x12xf32>
    %711 = arith.addf %702, %710 : vector<12x12xf32>
    %712 = vector.extract_strided_slice %684 {offsets = [0, 3], sizes = [12, 12], strides = [1, 1]} : vector<16x16xf32> to vector<12x12xf32>
    %c78 = arith.constant 78 : index
    %713 = memref.load %arg1[%c78] : memref<200xf32, #tpu.memory_space<smem>>
    %714 = vector.broadcast %713 : f32 to vector<12x12xf32>
    %715 = arith.mulf %712, %714 : vector<12x12xf32>
    %716 = arith.addf %707, %715 : vector<12x12xf32>
    %c178 = arith.constant 178 : index
    %717 = memref.load %arg1[%c178] : memref<200xf32, #tpu.memory_space<smem>>
    %718 = vector.broadcast %717 : f32 to vector<12x12xf32>
    %719 = arith.mulf %712, %718 : vector<12x12xf32>
    %720 = arith.addf %711, %719 : vector<12x12xf32>
    %721 = vector.extract_strided_slice %684 {offsets = [0, 4], sizes = [12, 12], strides = [1, 1]} : vector<16x16xf32> to vector<12x12xf32>
    %c79 = arith.constant 79 : index
    %722 = memref.load %arg1[%c79] : memref<200xf32, #tpu.memory_space<smem>>
    %723 = vector.broadcast %722 : f32 to vector<12x12xf32>
    %724 = arith.mulf %721, %723 : vector<12x12xf32>
    %725 = arith.addf %716, %724 : vector<12x12xf32>
    %c179 = arith.constant 179 : index
    %726 = memref.load %arg1[%c179] : memref<200xf32, #tpu.memory_space<smem>>
    %727 = vector.broadcast %726 : f32 to vector<12x12xf32>
    %728 = arith.mulf %721, %727 : vector<12x12xf32>
    %729 = arith.addf %720, %728 : vector<12x12xf32>
    %730 = vector.extract_strided_slice %684 {offsets = [1, 0], sizes = [12, 12], strides = [1, 1]} : vector<16x16xf32> to vector<12x12xf32>
    %c80 = arith.constant 80 : index
    %731 = memref.load %arg1[%c80] : memref<200xf32, #tpu.memory_space<smem>>
    %732 = vector.broadcast %731 : f32 to vector<12x12xf32>
    %733 = arith.mulf %730, %732 : vector<12x12xf32>
    %734 = arith.addf %725, %733 : vector<12x12xf32>
    %c180 = arith.constant 180 : index
    %735 = memref.load %arg1[%c180] : memref<200xf32, #tpu.memory_space<smem>>
    %736 = vector.broadcast %735 : f32 to vector<12x12xf32>
    %737 = arith.mulf %730, %736 : vector<12x12xf32>
    %738 = arith.addf %729, %737 : vector<12x12xf32>
    %739 = vector.extract_strided_slice %684 {offsets = [1, 1], sizes = [12, 12], strides = [1, 1]} : vector<16x16xf32> to vector<12x12xf32>
    %c81 = arith.constant 81 : index
    %740 = memref.load %arg1[%c81] : memref<200xf32, #tpu.memory_space<smem>>
    %741 = vector.broadcast %740 : f32 to vector<12x12xf32>
    %742 = arith.mulf %739, %741 : vector<12x12xf32>
    %743 = arith.addf %734, %742 : vector<12x12xf32>
    %c181 = arith.constant 181 : index
    %744 = memref.load %arg1[%c181] : memref<200xf32, #tpu.memory_space<smem>>
    %745 = vector.broadcast %744 : f32 to vector<12x12xf32>
    %746 = arith.mulf %739, %745 : vector<12x12xf32>
    %747 = arith.addf %738, %746 : vector<12x12xf32>
    %748 = vector.extract_strided_slice %684 {offsets = [1, 2], sizes = [12, 12], strides = [1, 1]} : vector<16x16xf32> to vector<12x12xf32>
    %c82 = arith.constant 82 : index
    %749 = memref.load %arg1[%c82] : memref<200xf32, #tpu.memory_space<smem>>
    %750 = vector.broadcast %749 : f32 to vector<12x12xf32>
    %751 = arith.mulf %748, %750 : vector<12x12xf32>
    %752 = arith.addf %743, %751 : vector<12x12xf32>
    %c182 = arith.constant 182 : index
    %753 = memref.load %arg1[%c182] : memref<200xf32, #tpu.memory_space<smem>>
    %754 = vector.broadcast %753 : f32 to vector<12x12xf32>
    %755 = arith.mulf %748, %754 : vector<12x12xf32>
    %756 = arith.addf %747, %755 : vector<12x12xf32>
    %757 = vector.extract_strided_slice %684 {offsets = [1, 3], sizes = [12, 12], strides = [1, 1]} : vector<16x16xf32> to vector<12x12xf32>
    %c83 = arith.constant 83 : index
    %758 = memref.load %arg1[%c83] : memref<200xf32, #tpu.memory_space<smem>>
    %759 = vector.broadcast %758 : f32 to vector<12x12xf32>
    %760 = arith.mulf %757, %759 : vector<12x12xf32>
    %761 = arith.addf %752, %760 : vector<12x12xf32>
    %c183 = arith.constant 183 : index
    %762 = memref.load %arg1[%c183] : memref<200xf32, #tpu.memory_space<smem>>
    %763 = vector.broadcast %762 : f32 to vector<12x12xf32>
    %764 = arith.mulf %757, %763 : vector<12x12xf32>
    %765 = arith.addf %756, %764 : vector<12x12xf32>
    %766 = vector.extract_strided_slice %684 {offsets = [1, 4], sizes = [12, 12], strides = [1, 1]} : vector<16x16xf32> to vector<12x12xf32>
    %c84 = arith.constant 84 : index
    %767 = memref.load %arg1[%c84] : memref<200xf32, #tpu.memory_space<smem>>
    %768 = vector.broadcast %767 : f32 to vector<12x12xf32>
    %769 = arith.mulf %766, %768 : vector<12x12xf32>
    %770 = arith.addf %761, %769 : vector<12x12xf32>
    %c184 = arith.constant 184 : index
    %771 = memref.load %arg1[%c184] : memref<200xf32, #tpu.memory_space<smem>>
    %772 = vector.broadcast %771 : f32 to vector<12x12xf32>
    %773 = arith.mulf %766, %772 : vector<12x12xf32>
    %774 = arith.addf %765, %773 : vector<12x12xf32>
    %775 = vector.extract_strided_slice %684 {offsets = [2, 0], sizes = [12, 12], strides = [1, 1]} : vector<16x16xf32> to vector<12x12xf32>
    %c85 = arith.constant 85 : index
    %776 = memref.load %arg1[%c85] : memref<200xf32, #tpu.memory_space<smem>>
    %777 = vector.broadcast %776 : f32 to vector<12x12xf32>
    %778 = arith.mulf %775, %777 : vector<12x12xf32>
    %779 = arith.addf %770, %778 : vector<12x12xf32>
    %c185 = arith.constant 185 : index
    %780 = memref.load %arg1[%c185] : memref<200xf32, #tpu.memory_space<smem>>
    %781 = vector.broadcast %780 : f32 to vector<12x12xf32>
    %782 = arith.mulf %775, %781 : vector<12x12xf32>
    %783 = arith.addf %774, %782 : vector<12x12xf32>
    %784 = vector.extract_strided_slice %684 {offsets = [2, 1], sizes = [12, 12], strides = [1, 1]} : vector<16x16xf32> to vector<12x12xf32>
    %c86 = arith.constant 86 : index
    %785 = memref.load %arg1[%c86] : memref<200xf32, #tpu.memory_space<smem>>
    %786 = vector.broadcast %785 : f32 to vector<12x12xf32>
    %787 = arith.mulf %784, %786 : vector<12x12xf32>
    %788 = arith.addf %779, %787 : vector<12x12xf32>
    %c186 = arith.constant 186 : index
    %789 = memref.load %arg1[%c186] : memref<200xf32, #tpu.memory_space<smem>>
    %790 = vector.broadcast %789 : f32 to vector<12x12xf32>
    %791 = arith.mulf %784, %790 : vector<12x12xf32>
    %792 = arith.addf %783, %791 : vector<12x12xf32>
    %793 = vector.extract_strided_slice %684 {offsets = [2, 2], sizes = [12, 12], strides = [1, 1]} : vector<16x16xf32> to vector<12x12xf32>
    %c87 = arith.constant 87 : index
    %794 = memref.load %arg1[%c87] : memref<200xf32, #tpu.memory_space<smem>>
    %795 = vector.broadcast %794 : f32 to vector<12x12xf32>
    %796 = arith.mulf %793, %795 : vector<12x12xf32>
    %797 = arith.addf %788, %796 : vector<12x12xf32>
    %c187 = arith.constant 187 : index
    %798 = memref.load %arg1[%c187] : memref<200xf32, #tpu.memory_space<smem>>
    %799 = vector.broadcast %798 : f32 to vector<12x12xf32>
    %800 = arith.mulf %793, %799 : vector<12x12xf32>
    %801 = arith.addf %792, %800 : vector<12x12xf32>
    %802 = vector.extract_strided_slice %684 {offsets = [2, 3], sizes = [12, 12], strides = [1, 1]} : vector<16x16xf32> to vector<12x12xf32>
    %c88 = arith.constant 88 : index
    %803 = memref.load %arg1[%c88] : memref<200xf32, #tpu.memory_space<smem>>
    %804 = vector.broadcast %803 : f32 to vector<12x12xf32>
    %805 = arith.mulf %802, %804 : vector<12x12xf32>
    %806 = arith.addf %797, %805 : vector<12x12xf32>
    %c188 = arith.constant 188 : index
    %807 = memref.load %arg1[%c188] : memref<200xf32, #tpu.memory_space<smem>>
    %808 = vector.broadcast %807 : f32 to vector<12x12xf32>
    %809 = arith.mulf %802, %808 : vector<12x12xf32>
    %810 = arith.addf %801, %809 : vector<12x12xf32>
    %811 = vector.extract_strided_slice %684 {offsets = [2, 4], sizes = [12, 12], strides = [1, 1]} : vector<16x16xf32> to vector<12x12xf32>
    %c89 = arith.constant 89 : index
    %812 = memref.load %arg1[%c89] : memref<200xf32, #tpu.memory_space<smem>>
    %813 = vector.broadcast %812 : f32 to vector<12x12xf32>
    %814 = arith.mulf %811, %813 : vector<12x12xf32>
    %815 = arith.addf %806, %814 : vector<12x12xf32>
    %c189 = arith.constant 189 : index
    %816 = memref.load %arg1[%c189] : memref<200xf32, #tpu.memory_space<smem>>
    %817 = vector.broadcast %816 : f32 to vector<12x12xf32>
    %818 = arith.mulf %811, %817 : vector<12x12xf32>
    %819 = arith.addf %810, %818 : vector<12x12xf32>
    %820 = vector.extract_strided_slice %684 {offsets = [3, 0], sizes = [12, 12], strides = [1, 1]} : vector<16x16xf32> to vector<12x12xf32>
    %c90 = arith.constant 90 : index
    %821 = memref.load %arg1[%c90] : memref<200xf32, #tpu.memory_space<smem>>
    %822 = vector.broadcast %821 : f32 to vector<12x12xf32>
    %823 = arith.mulf %820, %822 : vector<12x12xf32>
    %824 = arith.addf %815, %823 : vector<12x12xf32>
    %c190 = arith.constant 190 : index
    %825 = memref.load %arg1[%c190] : memref<200xf32, #tpu.memory_space<smem>>
    %826 = vector.broadcast %825 : f32 to vector<12x12xf32>
    %827 = arith.mulf %820, %826 : vector<12x12xf32>
    %828 = arith.addf %819, %827 : vector<12x12xf32>
    %829 = vector.extract_strided_slice %684 {offsets = [3, 1], sizes = [12, 12], strides = [1, 1]} : vector<16x16xf32> to vector<12x12xf32>
    %c91 = arith.constant 91 : index
    %830 = memref.load %arg1[%c91] : memref<200xf32, #tpu.memory_space<smem>>
    %831 = vector.broadcast %830 : f32 to vector<12x12xf32>
    %832 = arith.mulf %829, %831 : vector<12x12xf32>
    %833 = arith.addf %824, %832 : vector<12x12xf32>
    %c191 = arith.constant 191 : index
    %834 = memref.load %arg1[%c191] : memref<200xf32, #tpu.memory_space<smem>>
    %835 = vector.broadcast %834 : f32 to vector<12x12xf32>
    %836 = arith.mulf %829, %835 : vector<12x12xf32>
    %837 = arith.addf %828, %836 : vector<12x12xf32>
    %838 = vector.extract_strided_slice %684 {offsets = [3, 2], sizes = [12, 12], strides = [1, 1]} : vector<16x16xf32> to vector<12x12xf32>
    %c92 = arith.constant 92 : index
    %839 = memref.load %arg1[%c92] : memref<200xf32, #tpu.memory_space<smem>>
    %840 = vector.broadcast %839 : f32 to vector<12x12xf32>
    %841 = arith.mulf %838, %840 : vector<12x12xf32>
    %842 = arith.addf %833, %841 : vector<12x12xf32>
    %c192 = arith.constant 192 : index
    %843 = memref.load %arg1[%c192] : memref<200xf32, #tpu.memory_space<smem>>
    %844 = vector.broadcast %843 : f32 to vector<12x12xf32>
    %845 = arith.mulf %838, %844 : vector<12x12xf32>
    %846 = arith.addf %837, %845 : vector<12x12xf32>
    %847 = vector.extract_strided_slice %684 {offsets = [3, 3], sizes = [12, 12], strides = [1, 1]} : vector<16x16xf32> to vector<12x12xf32>
    %c93 = arith.constant 93 : index
    %848 = memref.load %arg1[%c93] : memref<200xf32, #tpu.memory_space<smem>>
    %849 = vector.broadcast %848 : f32 to vector<12x12xf32>
    %850 = arith.mulf %847, %849 : vector<12x12xf32>
    %851 = arith.addf %842, %850 : vector<12x12xf32>
    %c193 = arith.constant 193 : index
    %852 = memref.load %arg1[%c193] : memref<200xf32, #tpu.memory_space<smem>>
    %853 = vector.broadcast %852 : f32 to vector<12x12xf32>
    %854 = arith.mulf %847, %853 : vector<12x12xf32>
    %855 = arith.addf %846, %854 : vector<12x12xf32>
    %856 = vector.extract_strided_slice %684 {offsets = [3, 4], sizes = [12, 12], strides = [1, 1]} : vector<16x16xf32> to vector<12x12xf32>
    %c94 = arith.constant 94 : index
    %857 = memref.load %arg1[%c94] : memref<200xf32, #tpu.memory_space<smem>>
    %858 = vector.broadcast %857 : f32 to vector<12x12xf32>
    %859 = arith.mulf %856, %858 : vector<12x12xf32>
    %860 = arith.addf %851, %859 : vector<12x12xf32>
    %c194 = arith.constant 194 : index
    %861 = memref.load %arg1[%c194] : memref<200xf32, #tpu.memory_space<smem>>
    %862 = vector.broadcast %861 : f32 to vector<12x12xf32>
    %863 = arith.mulf %856, %862 : vector<12x12xf32>
    %864 = arith.addf %855, %863 : vector<12x12xf32>
    %865 = vector.extract_strided_slice %684 {offsets = [4, 0], sizes = [12, 12], strides = [1, 1]} : vector<16x16xf32> to vector<12x12xf32>
    %c95 = arith.constant 95 : index
    %866 = memref.load %arg1[%c95] : memref<200xf32, #tpu.memory_space<smem>>
    %867 = vector.broadcast %866 : f32 to vector<12x12xf32>
    %868 = arith.mulf %865, %867 : vector<12x12xf32>
    %869 = arith.addf %860, %868 : vector<12x12xf32>
    %c195 = arith.constant 195 : index
    %870 = memref.load %arg1[%c195] : memref<200xf32, #tpu.memory_space<smem>>
    %871 = vector.broadcast %870 : f32 to vector<12x12xf32>
    %872 = arith.mulf %865, %871 : vector<12x12xf32>
    %873 = arith.addf %864, %872 : vector<12x12xf32>
    %874 = vector.extract_strided_slice %684 {offsets = [4, 1], sizes = [12, 12], strides = [1, 1]} : vector<16x16xf32> to vector<12x12xf32>
    %c96 = arith.constant 96 : index
    %875 = memref.load %arg1[%c96] : memref<200xf32, #tpu.memory_space<smem>>
    %876 = vector.broadcast %875 : f32 to vector<12x12xf32>
    %877 = arith.mulf %874, %876 : vector<12x12xf32>
    %878 = arith.addf %869, %877 : vector<12x12xf32>
    %c196 = arith.constant 196 : index
    %879 = memref.load %arg1[%c196] : memref<200xf32, #tpu.memory_space<smem>>
    %880 = vector.broadcast %879 : f32 to vector<12x12xf32>
    %881 = arith.mulf %874, %880 : vector<12x12xf32>
    %882 = arith.addf %873, %881 : vector<12x12xf32>
    %883 = vector.extract_strided_slice %684 {offsets = [4, 2], sizes = [12, 12], strides = [1, 1]} : vector<16x16xf32> to vector<12x12xf32>
    %c97 = arith.constant 97 : index
    %884 = memref.load %arg1[%c97] : memref<200xf32, #tpu.memory_space<smem>>
    %885 = vector.broadcast %884 : f32 to vector<12x12xf32>
    %886 = arith.mulf %883, %885 : vector<12x12xf32>
    %887 = arith.addf %878, %886 : vector<12x12xf32>
    %c197 = arith.constant 197 : index
    %888 = memref.load %arg1[%c197] : memref<200xf32, #tpu.memory_space<smem>>
    %889 = vector.broadcast %888 : f32 to vector<12x12xf32>
    %890 = arith.mulf %883, %889 : vector<12x12xf32>
    %891 = arith.addf %882, %890 : vector<12x12xf32>
    %892 = vector.extract_strided_slice %684 {offsets = [4, 3], sizes = [12, 12], strides = [1, 1]} : vector<16x16xf32> to vector<12x12xf32>
    %c98 = arith.constant 98 : index
    %893 = memref.load %arg1[%c98] : memref<200xf32, #tpu.memory_space<smem>>
    %894 = vector.broadcast %893 : f32 to vector<12x12xf32>
    %895 = arith.mulf %892, %894 : vector<12x12xf32>
    %896 = arith.addf %887, %895 : vector<12x12xf32>
    %c198 = arith.constant 198 : index
    %897 = memref.load %arg1[%c198] : memref<200xf32, #tpu.memory_space<smem>>
    %898 = vector.broadcast %897 : f32 to vector<12x12xf32>
    %899 = arith.mulf %892, %898 : vector<12x12xf32>
    %900 = arith.addf %891, %899 : vector<12x12xf32>
    %901 = vector.extract_strided_slice %684 {offsets = [4, 4], sizes = [12, 12], strides = [1, 1]} : vector<16x16xf32> to vector<12x12xf32>
    %c99 = arith.constant 99 : index
    %902 = memref.load %arg1[%c99] : memref<200xf32, #tpu.memory_space<smem>>
    %903 = vector.broadcast %902 : f32 to vector<12x12xf32>
    %904 = arith.mulf %901, %903 : vector<12x12xf32>
    %905 = arith.addf %896, %904 : vector<12x12xf32>
    %c199 = arith.constant 199 : index
    %906 = memref.load %arg1[%c199] : memref<200xf32, #tpu.memory_space<smem>>
    %907 = vector.broadcast %906 : f32 to vector<12x12xf32>
    %908 = arith.mulf %901, %907 : vector<12x12xf32>
    %909 = arith.addf %900, %908 : vector<12x12xf32>
    %910 = vector.extract_strided_slice %905 {offsets = [0, 0], sizes = [5, 12], strides = [1, 1]} : vector<12x12xf32> to vector<5x12xf32>
    %911 = vector.extract_strided_slice %905 {offsets = [6, 0], sizes = [5, 12], strides = [1, 1]} : vector<12x12xf32> to vector<5x12xf32>
    %912 = tpu.concatenate %910, %911 in 0 : vector<5x12xf32>, vector<5x12xf32> -> vector<10x12xf32>
    %913 = vector.extract_strided_slice %912 {offsets = [0, 0], sizes = [10, 5], strides = [1, 1]} : vector<10x12xf32> to vector<10x5xf32>
    %914 = vector.extract_strided_slice %912 {offsets = [0, 6], sizes = [10, 5], strides = [1, 1]} : vector<10x12xf32> to vector<10x5xf32>
    %915 = tpu.concatenate %913, %914 in 1 : vector<10x5xf32>, vector<10x5xf32> -> vector<10x10xf32>
    %916 = vector.extract_strided_slice %909 {offsets = [0, 0], sizes = [5, 12], strides = [1, 1]} : vector<12x12xf32> to vector<5x12xf32>
    %917 = vector.extract_strided_slice %909 {offsets = [6, 0], sizes = [5, 12], strides = [1, 1]} : vector<12x12xf32> to vector<5x12xf32>
    %918 = tpu.concatenate %916, %917 in 0 : vector<5x12xf32>, vector<5x12xf32> -> vector<10x12xf32>
    %919 = vector.extract_strided_slice %918 {offsets = [0, 0], sizes = [10, 5], strides = [1, 1]} : vector<10x12xf32> to vector<10x5xf32>
    %920 = vector.extract_strided_slice %918 {offsets = [0, 6], sizes = [10, 5], strides = [1, 1]} : vector<10x12xf32> to vector<10x5xf32>
    %921 = tpu.concatenate %919, %920 in 1 : vector<10x5xf32>, vector<10x5xf32> -> vector<10x10xf32>
    %c0_17 = arith.constant 0 : index
    %922 = memref.load %arg2[%c0_17] : memref<2xf32, #tpu.memory_space<smem>>
    %923 = vector.broadcast %922 : f32 to vector<10x10xf32>
    %924 = arith.addf %915, %923 : vector<10x10xf32>
    %925 = math.absf %924 : vector<10x10xf32>
    %cst_18 = arith.constant 0.000000e+00 : f32
    %926 = vector.broadcast %cst_18 : f32 to vector<10x10xf32>
    %927 = arith.subf %926, %925 : vector<10x10xf32>
    %928 = math.exp %927 : vector<10x10xf32>
    %cst_19 = arith.constant 1.000000e+00 : f32
    %929 = vector.broadcast %cst_19 : f32 to vector<10x10xf32>
    %930 = arith.addf %929, %928 : vector<10x10xf32>
    %931 = tpu.reciprocal %930 {approx = true} : vector<10x10xf32> -> vector<10x10xf32>
    %932 = arith.mulf %930, %931 : vector<10x10xf32>
    %cst_20 = arith.constant 2.000000e+00 : f32
    %933 = vector.broadcast %cst_20 : f32 to vector<10x10xf32>
    %934 = arith.subf %933, %932 : vector<10x10xf32>
    %935 = arith.mulf %931, %934 : vector<10x10xf32>
    %cst_21 = arith.constant 0.000000e+00 : f32
    %936 = vector.broadcast %cst_21 : f32 to vector<10x10xf32>
    %937 = arith.cmpf oge, %924, %936 : vector<10x10xf32>
    %938 = arith.mulf %928, %935 : vector<10x10xf32>
    %939 = arith.select %937, %935, %938 : vector<10x10xi1>, vector<10x10xf32>
    %c0_22 = arith.constant 0 : index
    %c0_23 = arith.constant 0 : index
    %c0_24 = arith.constant 0 : index
    %c0_25 = arith.constant 0 : index
    %940 = vector.load %arg4[%c0_22, %c0_23, %c0_24, %c0_25] : memref<1x2x10x10xf32, #tpu.memory_space<vmem>>, vector<1x1x10x10xf32>
    %941 = vector.shape_cast %940 : vector<1x1x10x10xf32> to vector<10x10xf32>
    %942 = vector.shape_cast %939 : vector<10x10xf32> to vector<1x1x10x10xf32>
    tpu.vector_store %arg4[%c0_22, %c0_23, %c0_24, %c0_25], %942 {strides = array<i32>} : memref<1x2x10x10xf32, #tpu.memory_space<vmem>>, vector<1x1x10x10xf32>,
    %c1_26 = arith.constant 1 : index
    %943 = memref.load %arg2[%c1_26] : memref<2xf32, #tpu.memory_space<smem>>
    %944 = vector.broadcast %943 : f32 to vector<10x10xf32>
    %945 = arith.addf %921, %944 : vector<10x10xf32>
    %946 = math.absf %945 : vector<10x10xf32>
    %cst_27 = arith.constant 0.000000e+00 : f32
    %947 = vector.broadcast %cst_27 : f32 to vector<10x10xf32>
    %948 = arith.subf %947, %946 : vector<10x10xf32>
    %949 = math.exp %948 : vector<10x10xf32>
    %cst_28 = arith.constant 1.000000e+00 : f32
    %950 = vector.broadcast %cst_28 : f32 to vector<10x10xf32>
    %951 = arith.addf %950, %949 : vector<10x10xf32>
    %952 = tpu.reciprocal %951 {approx = true} : vector<10x10xf32> -> vector<10x10xf32>
    %953 = arith.mulf %951, %952 : vector<10x10xf32>
    %cst_29 = arith.constant 2.000000e+00 : f32
    %954 = vector.broadcast %cst_29 : f32 to vector<10x10xf32>
    %955 = arith.subf %954, %953 : vector<10x10xf32>
    %956 = arith.mulf %952, %955 : vector<10x10xf32>
    %cst_30 = arith.constant 0.000000e+00 : f32
    %957 = vector.broadcast %cst_30 : f32 to vector<10x10xf32>
    %958 = arith.cmpf oge, %945, %957 : vector<10x10xf32>
    %959 = arith.mulf %949, %956 : vector<10x10xf32>
    %960 = arith.select %958, %956, %959 : vector<10x10xi1>, vector<10x10xf32>
    %c0_31 = arith.constant 0 : index
    %c1_32 = arith.constant 1 : index
    %c0_33 = arith.constant 0 : index
    %c0_34 = arith.constant 0 : index
    %961 = vector.load %arg4[%c0_31, %c1_32, %c0_33, %c0_34] : memref<1x2x10x10xf32, #tpu.memory_space<vmem>>, vector<1x1x10x10xf32>
    %962 = vector.shape_cast %961 : vector<1x1x10x10xf32> to vector<10x10xf32>
    %963 = vector.shape_cast %960 : vector<10x10xf32> to vector<1x1x10x10xf32>
    tpu.vector_store %arg4[%c0_31, %c1_32, %c0_33, %c0_34], %963 {strides = array<i32>} : memref<1x2x10x10xf32, #tpu.memory_space<vmem>>, vector<1x1x10x10xf32>,
    return
  }
  func.func @transform_0(%arg0: i32, %arg1: memref<200xf32, #tpu.memory_space<smem>>, %arg2: memref<2xf32, #tpu.memory_space<smem>>) -> (i32, i32, i32, i32) {
    %c0_i32 = arith.constant 0 : i32
    %c0_i32_0 = arith.constant 0 : i32
    %c0_i32_1 = arith.constant 0 : i32
    %c0_i32_2 = arith.constant 0 : i32
    return %arg0, %c0_i32, %c0_i32_0, %c0_i32_1 : i32, i32, i32, i32
  }
  func.func @transform_1(%arg0: i32, %arg1: memref<200xf32, #tpu.memory_space<smem>>, %arg2: memref<2xf32, #tpu.memory_space<smem>>) -> (i32, i32, i32, i32) {
    %c0_i32 = arith.constant 0 : i32
    %c0_i32_0 = arith.constant 0 : i32
    %c0_i32_1 = arith.constant 0 : i32
    %c0_i32_2 = arith.constant 0 : i32
    return %arg0, %c0_i32, %c0_i32_0, %c0_i32_1 : i32, i32, i32, i32
  }
}

</mosaic_0001>

<bundles_post_ra>
// kernel: neko_dense_calcnn_forward.1
= control target key start
LH: loop header
LB: loop body
LE: loop exit
PB: predicated region body
PF: predicated region fallthrough
CT: control target
= control target key end

     0   :  { %s5939_s0 = inlined_call_operand.vmem [shape: f32[200], index: 0, kind: input, shape index: {}]   ;;  %s5940_s2 = inlined_call_operand.vmem [shape: f32[2,4,16,16], index: 2, kind: input, shape index: {}]   ;;  %s5941_s3 = inlined_call_operand.vmem [shape: f32[2,2,10,10], index: 3, kind: output, shape index: {}]   ;;  %s5942_s1 = inlined_call_operand.vmem [shape: f32[2], index: 1, kind: input, shape index: {}]  }
   0x1   :  { %s8_s14 = sshll.u32 %s5939_s0, 4  ;;  %s12_s17 = sshll.u32 %s5942_s1, 4  ;;  %s9_s14 = int_to_ptr.vmem [resolvable:$true] %s8_s14  ;;  %s13_s17 = int_to_ptr.vmem [resolvable:$true] %s12_s17 }
   0x2   :  { %s3646_s18 = scalar_lea.vmem %s9_s14, 32  ;;  %p3651_p1 = scmp.lt.s32.totalorder %s9_s14, %s9_s14 }
   0x3   :  { %p3647_p0 = scmp.ne.s32.totalorder %s9_s14, %s3646_s18  ;;  %p3652_p2 = scmp.lt.s32.totalorder %s3646_s18, %s3646_s18 }
   0x5   :  { %p3653_p3 = por %p3652_p2, %p3651_p1 }
   0x7   :  { %p3654_p4 = pnand %p3653_p3, %p3647_p0 }
   0x9   :  { %3657 = shalt.err (!%p3654_p4)  }
   0xa   :  { %s3680_s19 = smov [#allocation3]   ;;  %s3658_s20 = scalar_lea.vmem %s13_s17, 16 }
   0xb   :  { %11 = dma.vmem_to_smem %s9_s14, 32, %s3680_s19, [#allocation2] }
   0xc   :  { %p3659_p5 = scmp.ne.s32.totalorder %s13_s17, %s3658_s20  ;;  %p3663_p6 = scmp.lt.s32.totalorder %s13_s17, %s13_s17 }
   0xd   :  { %p3664_p7 = scmp.lt.s32.totalorder %s3658_s20, %s3658_s20 }
   0xf   :  { %p3665_p8 = por %p3664_p7, %p3663_p6 }
  0x11   :  { %p3666_p9 = pnand %p3665_p8, %p3659_p5 }
  0x13   :  { %3669 = shalt.err (!%p3666_p9)  }
  0x14   :  { %s3681_s0 = smov [#allocation4]  }
  0x15   :  { %15 = dma.vmem_to_smem %s13_s17, 16, %s3681_s0, [#allocation2] }
  0x16   :  { %3674 = dma.done.wait [#allocation2], 48 }
  0x17   :  { %3675 = vsyncadd [#allocation2], 4294967248 }
  0x18   :  { %17 = sfence }
  0x19   :  { %s3712_s1 = smov 0  }
  0x1a LB: > { %s3385_s21 = sadd.s32 4294967295, %s3678_s1   ;;  %p3389_p10 = scmp.ge.s32.totalorder %s3678_s1, 1  ;;  %s3678_s1 = sphi %s3712_s1, %s23_s1  }
  0x1b   : > { %p99_p11 = scmp.lt.s32.totalorder %s3678_s1, 3 }
  0x1d   : > { %p100_p12 = pnand %p3389_p10, %p99_p11 }
  0x1f   : > { %103 = sbr.rel (%p100_p12) target bundleno = 963 (0x3c3), region = 24 }
  0x26   : > { %p119_p13 = scmp.lt.s32.totalorder %s3385_s21, 1  ;;  %s3396_s22 = sld [smem:[#allocation3 + $0x65]]  ;;  %vm261_vm0 = vcmask 1046528   ;;  %vm424_vm1 = vcmask 1045504   ;;  %vm587_vm2 = vcmask 1044480   ;;  %vm750_vm3 = vcmask 1043456  }
  0x27   : > { %s3395_s23 = sld [smem:[#allocation3 + $0x1]]  ;;  %s3397_s24 = sld [smem:[#allocation3 + $0x2]]  ;;  %vm3247_vm4 = vcmask 39936   ;;  %vm3297_vm5 = vcmask 74752   ;;  %vm3295_vm7 = vcmask 80896  }
  0x28   : > { %s6215_s21 = smov (!%p119_p13, %s3385_s21), 1  ;;  %s3398_s29 = sld [smem:[#allocation3 + $0x66]] }
  0x29   : > { %s3604_s25 = sshll.u32 %s6215_s21, 6  ;;  %s3682_s30 = smov 127  }
  0x2a   : > { %s3726_s28 = scalar_lea.vmem %s5940_s2, %s3604_s25  ;;  %s3399_s4 = sld [smem:[#allocation3 + $0x3]] }
  0x2b   : > { %v3729_v0 = vld [vmem:[%s3726_s28] sm:$0xff]  ;;  %v3732_v1 = vld [vmem:[%s3726_s28 + $0x8] sm:$0xff]  ;;  %s3400_s5 = sld [smem:[#allocation3 + $0x67]]  ;;  %s3683_s6 = smov 126  }
  0x2c   : > { %v158_v2 = vstv %s3396_s22  ;;  %s3401_s7 = sld [smem:[#allocation3 + $0x4]]  ;;  %s3405_s8 = sld [smem:[#allocation3 + $0x6]] }
  0x2d   : > { %v144_v3 = vstv %s3395_s23  ;;  %v159_v4 = vmul.f32 %v158_v2, %v3729_v0  ;;  %v160_v6 = vmul.f32 %v158_v2, %v3732_v1  ;;  %v172_v8 = vstv %s3397_s24  ;;  %s3402_s9 = sld [smem:[#allocation3 + $0x68]]  ;;  %s3406_s10 = sld [smem:[#allocation3 + $0x6a]] }
  0x2e   : > { %v145_v5 = vmul.f32 %v144_v3, %v3729_v0  ;;  %v146_v7 = vmul.f32 %v144_v3, %v3732_v1  ;;  %v174_v9 = vmul.f32 %v172_v8, %v3732_v1  ;;  %v173_v10 = vmul.f32 %v172_v8, %v3729_v0  ;;  %s3684_s11 = smov 125   ;;  %s3756_s12 = sld [smem:[#allocation3 + $0x7]] }
  0x2f   : > { %163 = vrot.lane.b32.xlu1 %v159_v4, %s3682_s30  ;;  %v186_v11 = vstv %s3398_s29  ;;  %s3762_s13 = sld [smem:[#allocation3 + $0x6b]]  ;;  %s3685_s14 = smov 124  }
  0x30   : > { %149 = vrot.lane.b32.xlu0 %v145_v5, %s3682_s30  ;;  %v188_v12 = vmul.f32 %v186_v11, %v3732_v1  ;;  %v187_v13 = vmul.f32 %v186_v11, %v3729_v0  ;;  %v200_v14 = vstv %s3399_s4  ;;  %s3771_s15 = sld [smem:[#allocation3 + $0x8]]  ;;  %s3410_s16 = sld [smem:[#allocation3 + $0x6c]] }
  0x31   : > { %v202_v15 = vmul.f32 %v200_v14, %v3732_v1  ;;  %v201_v16 = vmul.f32 %v200_v14, %v3729_v0  ;;  %v214_v17 = vstv %s3400_s5  ;;  %s3411_s17 = sld [smem:[#allocation3 + $0x9]]  ;;  %s3412_s18 = sld [smem:[#allocation3 + $0x6d]] }
  0x32   : > { %v216_v18 = vmul.f32 %v214_v17, %v3732_v1  ;;  %v215_v19 = vmul.f32 %v214_v17, %v3729_v0  ;;  %v228_v20 = vstv %s3401_s7  ;;  %v283_v21 = vstv %s3405_s8  ;;  %s3415_s19 = sld [smem:[#allocation3 + $0xb]]  ;;  %s3416_s20 = sld [smem:[#allocation3 + $0x6f]] }
  0x33   : > { %165 = vrot.lane.b32.xlu1 %v160_v6, %s3682_s30  ;;  %v230_v22 = vmul.f32 %v228_v20, %v3732_v1  ;;  %v229_v23 = vmul.f32 %v228_v20, %v3729_v0  ;;  %v242_v24 = vstv %s3402_s9  ;;  %v284_v25 = vmul.f32 %v283_v21, %v3729_v0  ;;  %s3417_s0 = sld [smem:[#allocation3 + $0xc]]  ;;  %s3418_s22 = sld [smem:[#allocation3 + $0x70]] }
  0x34   : > { %151 = vrot.lane.b32.xlu0 %v146_v7, %s3682_s30  ;;  %v285_v26 = vmul.f32 %v283_v21, %v3732_v1  ;;  %v300_v27 = vstv %s3406_s10  ;;  %v244_v28 = vmul.f32 %v242_v24, %v3732_v1  ;;  %v243_v29 = vmul.f32 %v242_v24, %v3729_v0  ;;  %s3419_s23 = sld [smem:[#allocation3 + $0xd]]  ;;  %s3420_s24 = sld [smem:[#allocation3 + $0x71]] }
  0x35   : > { %v317_v30 = vstv %s3756_s12  ;;  %v288_v32 = vrot.slane %v284_v25, 1  ;;  %v301_v33 = vmul.f32 %v300_v27, %v3729_v0  ;;  %v302_v34 = vmul.f32 %v300_v27, %v3732_v1  ;;  %s3421_s25 = sld [smem:[#allocation3 + $0xe]]  ;;  %s3422_s26 = sld [smem:[#allocation3 + $0x72]] }
  0x36   : > { %v289_v31 = vrot.slane %v285_v26, 1  ;;  %v318_v35 = vmul.f32 %v317_v30, %v3729_v0  ;;  %v334_v36 = vstv %s3762_s13  ;;  %v319_v40 = vmul.f32 %v317_v30, %v3732_v1  ;;  %s3425_s27 = sld [smem:[#allocation3 + $0x10]]  ;;  %s3426_s29 = sld [smem:[#allocation3 + $0x74]] }
  0x37   : > { %179 = vrot.lane.b32.xlu1 %v174_v9, %s3683_s6  ;;  %v306_v38 = vrot.slane %v302_v34, 1  ;;  %v305_v39 = vrot.slane %v301_v33, 1  ;;  %v335_v41 = vmul.f32 %v334_v36, %v3729_v0  ;;  %v351_v42 = vstv %s3771_s15  ;;  %s3427_s4 = sld [smem:[#allocation3 + $0x11]]  ;;  %s3428_s5 = sld [smem:[#allocation3 + $0x75]] }
  0x38   : > { %177 = vrot.lane.b32.xlu0 %v173_v10, %s3683_s6  ;;  %v290_v37 = vsel %vm261_vm0, %v288_v32, %v289_v31  ;;  %v323_v44 = vrot.slane %v319_v40, 1  ;;  %v322_v45 = vrot.slane %v318_v35, 1  ;;  %v336_v46 = vmul.f32 %v334_v36, %v3732_v1  ;;  %s3429_s7 = sld [smem:[#allocation3 + $0x12]]  ;;  %s3430_s8 = sld [smem:[#allocation3 + $0x76]] }
  0x39   : > { %v307_v43 = vsel %vm261_vm0, %v305_v39, %v306_v38  ;;  %v352_v47 = vmul.f32 %v351_v42, %v3729_v0  ;;  %v368_v48 = vstv %s3410_s16  ;;  %v339_v51 = vrot.slane %v335_v41, 1  ;;  %s3431_s9 = sld [smem:[#allocation3 + $0x13]]  ;;  %s3432_s10 = sld [smem:[#allocation3 + $0x77]] }
  0x3a   : > { %v324_v49 = vsel %vm261_vm0, %v322_v45, %v323_v44  ;;  %v340_v50 = vrot.slane %v336_v46, 1  ;;  %v353_v52 = vmul.f32 %v351_v42, %v3732_v1  ;;  %v369_v54 = vmul.f32 %v368_v48, %v3729_v0  ;;  %s3435_s12 = sld [smem:[#allocation3 + $0x15]]  ;;  %s3436_s13 = sld [smem:[#allocation3 + $0x79]] }
  0x3b   : > { %193 = vrot.lane.b32.xlu1 %v188_v12, %s3683_s6  ;;  %v356_v53 = vrot.slane %v352_v47, 1  ;;  %v370_v57 = vmul.f32 %v368_v48, %v3732_v1  ;;  %v385_v58 = vstv %s3411_s17  ;;  %v402_v2 = vstv %s3412_s18  ;;  %s3437_s15 = sld [smem:[#allocation3 + $0x16]]  ;;  %s3438_s16 = sld [smem:[#allocation3 + $0x7a]] }
  0x3c   : > { %191 = vrot.lane.b32.xlu0 %v187_v13, %s3683_s6  ;;  %v341_v55 = vsel %vm261_vm0, %v339_v51, %v340_v50  ;;  %v357_v56 = vrot.slane %v353_v52, 1  ;;  %v386_v59 = vmul.f32 %v385_v58, %v3729_v0  ;;  %v373_v62 = vrot.slane %v369_v54, 1  ;;  %s3439_s17 = sld [smem:[#allocation3 + $0x17]]  ;;  %s3440_s18 = sld [smem:[#allocation3 + $0x7b]] }
  0x3d   : > { %v374_v61 = vrot.slane %v370_v57, 1  ;;  %v387_v63 = vmul.f32 %v385_v58, %v3732_v1  ;;  %v446_v4 = vstv %s3415_s19  ;;  %v403_v7 = vmul.f32 %v402_v2, %v3729_v0  ;;  %s3922_s19 = sld [smem:[#allocation3 + $0x18]] }
  0x3e   : > { %v358_v60 = vsel %vm261_vm0, %v356_v53, %v357_v56  ;;  %v390_v3 = vrot.slane %v386_v59, 1  ;;  %v404_v8 = vmul.f32 %v402_v2, %v3732_v1  ;;  %v448_v9 = vmul.f32 %v446_v4, %v3732_v1 }
  0x3f   : > { %207 = vrot.lane.b32.xlu1 %v202_v15, %s3684_s11  ;;  %v375_v5 = vsel %vm261_vm0, %v373_v62, %v374_v61  ;;  %v391_v6 = vrot.slane %v387_v63, 1  ;;  %v407_v12 = vrot.slane %v403_v7, 1  ;;  %v447_v13 = vmul.f32 %v446_v4, %v3729_v0 }
  0x40   : > { %205 = vrot.lane.b32.xlu0 %v201_v16, %s3684_s11  ;;  %v408_v11 = vrot.slane %v404_v8, 1  ;;  %v463_v14 = vstv %s3416_s20  ;;  %v452_v15 = vrot.slane %v448_v9, 2  ;;  %v480_v16 = vstv %s3417_s0  ;;  %s3442_s20 = sld [smem:[#allocation3 + $0x7c]]  ;;  %s3447_s0 = sld [smem:[#allocation3 + $0x1a]] }
  0x41   : > { %v392_v10 = vsel %vm261_vm0, %v390_v3, %v391_v6  ;;  %v465_v20 = vmul.f32 %v463_v14, %v3732_v1  ;;  %v482_v21 = vmul.f32 %v480_v16, %v3732_v1  ;;  %v481_v25 = vmul.f32 %v480_v16, %v3729_v0 }
  0x42   : > { %v409_v17 = vsel %vm261_vm0, %v407_v12, %v408_v11  ;;  %v497_v26 = vstv %s3418_s22  ;;  %v565_v46 = vstv %s3422_s26  ;;  %v609_v52 = vstv %s3425_s27  ;;  %s3448_s22 = sld [smem:[#allocation3 + $0x7e]]  ;;  %s3452_s26 = sld [smem:[#allocation3 + $0x80]] }
  0x43   : > { %221 = vrot.lane.b32.xlu1 %v216_v18, %s3684_s11  ;;  %v451_v18 = vrot.slane %v447_v13, 2  ;;  %v486_v27 = vrot.slane %v482_v21, 2  ;;  %v485_v30 = vrot.slane %v481_v25, 2  ;;  %v499_v32 = vmul.f32 %v497_v26, %v3732_v1  ;;  %s3453_s27 = sld [smem:[#allocation3 + $0x1d]] }
  0x44   : > { %219 = vrot.lane.b32.xlu0 %v215_v19, %s3684_s11  ;;  %v464_v19 = vmul.f32 %v463_v14, %v3729_v0  ;;  %v566_v51 = vmul.f32 %v565_v46, %v3729_v0  ;;  %v610_v57 = vmul.f32 %v609_v52, %v3729_v0  ;;  %v611_v58 = vmul.f32 %v609_v52, %v3732_v1 }
  0x45   : > { %v487_v35 = vsel %vm424_vm1, %v485_v30, %v486_v27  ;;  %v503_v36 = vrot.slane %v499_v32, 2  ;;  %v626_v62 = vstv %s3426_s29  ;;  %v660_v12 = vstv %s3428_s5  ;;  %s3457_s29 = sld [smem:[#allocation3 + $0x1f]]  ;;  %s3458_s5 = sld [smem:[#allocation3 + $0x83]] }
  0x46   : > { %v468_v24 = vrot.slane %v464_v19, 2  ;;  %v615_v63 = vrot.slane %v611_v58, 3  ;;  %v614_v2 = vrot.slane %v610_v57, 3  ;;  %v627_v4 = vmul.f32 %v626_v62, %v3729_v0 }
  0x47   : > { %235 = vrot.lane.b32.xlu1 %v230_v22, %s3685_s14  ;;  %v453_v22 = vsel %vm424_vm1, %v451_v18, %v452_v15  ;;  %v677_v18 = vstv %s3429_s7  ;;  %v711_v30 = vstv %s3431_s9  ;;  %s4030_s7 = sld [smem:[#allocation3 + $0x20]]  ;;  %s3461_s9 = sld [smem:[#allocation3 + $0x21]] }
  0x48   : > { %233 = vrot.lane.b32.xlu0 %v229_v23, %s3685_s14  ;;  %v469_v23 = vrot.slane %v465_v20, 2  ;;  %v616_v9 = vsel %vm587_vm2, %v614_v2, %v615_v63 }
  0x4b   : > { %249 = vrot.lane.b32.xlu1 %v244_v28, %s3685_s14  ;;  %v514_v28 = vstv %s3419_s23  ;;  %s3449_s23 = sld [smem:[#allocation3 + $0x1b]] }
  0x4c   : > { %247 = vrot.lane.b32.xlu0 %v243_v29, %s3685_s14  ;;  %v470_v29 = vsel %vm424_vm1, %v468_v24, %v469_v23  ;;  %v515_v33 = vmul.f32 %v514_v28, %v3729_v0  ;;  %v516_v34 = vmul.f32 %v514_v28, %v3732_v1  ;;  %v694_v24 = vstv %s3430_s8  ;;  %s4042_s8 = sld [smem:[#allocation3 + $0x84]] }
  0x4d   : > { %v695_v25 = vmul.f32 %v694_v24, %v3729_v0 }
  0x4e   : > { %v520_v41 = vrot.slane %v516_v34, 2  ;;  %v519_v42 = vrot.slane %v515_v33, 2  ;;  %v712_v34 = vmul.f32 %v711_v30, %v3729_v0 }
  0x4f   : > { %293 = vrot.lane.b32.xlu1 %v289_v31, %s3682_s30  ;;  %v498_v31 = vmul.f32 %v497_v26, %v3729_v0  ;;  %v696_v26 = vmul.f32 %v694_v24, %v3732_v1  ;;  %v699_v32 = vrot.slane %v695_v25, 3  ;;  %v874_v24 = vstv %s3922_s19  ;;  %s4134_s19 = sld [smem:[#allocation3 + $0x26]] }
  0x50   : > { %291 = vrot.lane.b32.xlu0 %v290_v37, %s3682_s30  ;;  %v521_v47 = vsel %vm424_vm1, %v519_v42, %v520_v41 }
  0x51   : > { %v502_v37 = vrot.slane %v498_v31, 2  ;;  %v700_v31 = vrot.slane %v696_v26, 3 }
  0x53   : > { %310 = vrot.lane.b32.xlu1 %v306_v38, %s3682_s30  ;;  %v531_v38 = vstv %s3420_s24  ;;  %v504_v40 = vsel %vm424_vm1, %v502_v37, %v503_v36  ;;  %v701_v37 = vsel %vm587_vm2, %v699_v32, %v700_v31  ;;  %v876_v32 = vmul.f32 %v874_v24, %v3732_v1  ;;  %s3450_s24 = sld [smem:[#allocation3 + $0x7f]] }
  0x54   : > { %308 = vrot.lane.b32.xlu0 %v307_v43, %s3682_s30  ;;  %v532_v39 = vmul.f32 %v531_v38, %v3729_v0  ;;  %v533_v43 = vmul.f32 %v531_v38, %v3732_v1  ;;  %v772_v38 = vstv %s3435_s12  ;;  %s4074_s12 = sld [smem:[#allocation3 + $0x22]] }
  0x56   : > { %v536_v45 = vrot.slane %v532_v39, 2  ;;  %v537_v48 = vrot.slane %v533_v43, 2 }
  0x57   : > { %327 = vrot.lane.b32.xlu1 %v323_v44, %s3683_s6  ;;  %v548_v44 = vstv %s3421_s25  ;;  %s3451_s25 = sld [smem:[#allocation3 + $0x1c]] }
  0x58   : > { %325 = vrot.lane.b32.xlu0 %v324_v49, %s3683_s6  ;;  %v549_v49 = vmul.f32 %v548_v44, %v3729_v0  ;;  %v538_v53 = vsel %vm424_vm1, %v536_v45, %v537_v48  ;;  %v773_v45 = vmul.f32 %v772_v38, %v3729_v0 }
  0x5a   : > { %v777_v57 = vrot.slane %v773_v45, 4 }
  0x5b   : > { %344 = vrot.lane.b32.xlu1 %v340_v50, %s3683_s6  ;;  %v550_v50 = vmul.f32 %v548_v44, %v3732_v1 }
  0x5c   : > { %342 = vrot.lane.b32.xlu0 %v341_v55, %s3683_s6  ;;  %v553_v55 = vrot.slane %v549_v49, 2 }
  0x5d   : > { %v554_v54 = vrot.slane %v550_v50, 2  ;;  %v789_v50 = vstv %s3436_s13  ;;  %s3464_s13 = sld [smem:[#allocation3 + $0x86]] }
  0x5f   : > { %361 = vrot.lane.b32.xlu1 %v357_v56, %s3684_s11  ;;  %v567_v56 = vmul.f32 %v565_v46, %v3732_v1  ;;  %v555_v59 = vsel %vm424_vm1, %v553_v55, %v554_v54  ;;  %v774_v46 = vmul.f32 %v772_v38, %v3732_v1 }
  0x60   : > { %359 = vrot.lane.b32.xlu0 %v358_v60, %s3684_s11 }
  0x61   : > { %v571_v60 = vrot.slane %v567_v56, 2  ;;  %v778_v56 = vrot.slane %v774_v46, 4 }
  0x63   : > { %378 = vrot.lane.b32.xlu1 %v374_v61, %s3684_s11  ;;  %v570_v61 = vrot.slane %v566_v51, 2 }
  0x64   : > { %376 = vrot.lane.b32.xlu0 %v375_v5, %s3684_s11  ;;  %v628_v5 = vmul.f32 %v626_v62, %v3732_v1 }
  0x65   : > { %v572_v3 = vsel %vm424_vm1, %v570_v61, %v571_v60 }
  0x67   : > { %395 = vrot.lane.b32.xlu1 %v391_v6, %s3685_s14  ;;  %v643_v6 = vstv %s3427_s4  ;;  %s3454_s4 = sld [smem:[#allocation3 + $0x81]] }
  0x68   : > { %393 = vrot.lane.b32.xlu0 %v392_v10, %s3685_s14  ;;  %v644_v7 = vmul.f32 %v643_v6, %v3729_v0  ;;  %v645_v8 = vmul.f32 %v643_v6, %v3732_v1  ;;  %v632_v10 = vrot.slane %v628_v5, 3 }
  0x6a   : > { %v649_v13 = vrot.slane %v645_v8, 3  ;;  %v648_v14 = vrot.slane %v644_v7, 3 }
  0x6b   : > { %412 = vrot.lane.b32.xlu1 %v408_v11, %s3685_s14  ;;  %v631_v11 = vrot.slane %v627_v4, 3  ;;  %v823_v4 = vstv %s3438_s16  ;;  %s4104_s16 = sld [smem:[#allocation3 + $0x88]] }
  0x6c   : > { %410 = vrot.lane.b32.xlu0 %v409_v17, %s3685_s14  ;;  %v661_v17 = vmul.f32 %v660_v12, %v3729_v0  ;;  %v650_v19 = vsel %vm587_vm2, %v648_v14, %v649_v13  ;;  %v824_v7 = vmul.f32 %v823_v4, %v3729_v0  ;;  %v825_v8 = vmul.f32 %v823_v4, %v3732_v1 }
  0x6d   : > { %v633_v16 = vsel %vm587_vm2, %v631_v11, %v632_v10  ;;  %v840_v14 = vstv %s3439_s17  ;;  %s3469_s17 = sld [smem:[#allocation3 + $0x25]] }
  0x6e   : > { %v665_v21 = vrot.slane %v661_v17, 3 }
  0x6f   : > { %456 = vrot.lane.b32.xlu1 %v452_v15, %s3682_s30  ;;  %v662_v15 = vmul.f32 %v660_v12, %v3732_v1 }
  0x70   : > { %454 = vrot.lane.b32.xlu0 %v453_v22, %s3682_s30  ;;  %v678_v22 = vmul.f32 %v677_v18, %v3729_v0 }
  0x71   : > { %v666_v20 = vrot.slane %v662_v15, 3  ;;  %v829_v15 = vrot.slane %v825_v8, 4  ;;  %v951_v8 = vstv %s3449_s23  ;;  %s3477_s23 = sld [smem:[#allocation3 + $0x29]] }
  0x73   : > { %473 = vrot.lane.b32.xlu1 %v469_v23, %s3682_s30  ;;  %v679_v23 = vmul.f32 %v677_v18, %v3732_v1  ;;  %v841_v18 = vmul.f32 %v840_v14, %v3729_v0 }
  0x74   : > { %471 = vrot.lane.b32.xlu0 %v470_v29, %s3682_s30  ;;  %v682_v29 = vrot.slane %v678_v22, 3  ;;  %v857_v22 = vstv %s3440_s18  ;;  %s3470_s18 = sld [smem:[#allocation3 + $0x89]] }
  0x75   : > { %v683_v28 = vrot.slane %v679_v23, 3  ;;  %v845_v26 = vrot.slane %v841_v18, 4 }
  0x77   : > { %490 = vrot.lane.b32.xlu1 %v486_v27, %s3683_s6  ;;  %v667_v27 = vsel %vm587_vm2, %v665_v21, %v666_v20  ;;  %v684_v33 = vsel %vm587_vm2, %v682_v29, %v683_v28 }
  0x78   : > { %488 = vrot.lane.b32.xlu0 %v487_v35, %s3683_s6  ;;  %v713_v35 = vmul.f32 %v711_v30, %v3732_v1 }
  0x7a   : > { %v717_v39 = vrot.slane %v713_v35, 3 }
  0x7b   : > { %507 = vrot.lane.b32.xlu1 %v503_v36, %s3683_s6  ;;  %v728_v36 = vstv %s3432_s10  ;;  %s3462_s10 = sld [smem:[#allocation3 + $0x85]] }
  0x7c   : > { %505 = vrot.lane.b32.xlu0 %v504_v40, %s3683_s6  ;;  %v716_v40 = vrot.slane %v712_v34, 3  ;;  %v730_v42 = vmul.f32 %v728_v36, %v3732_v1 }
  0x7f   : > { %524 = vrot.lane.b32.xlu1 %v520_v41, %s3684_s11  ;;  %v729_v41 = vmul.f32 %v728_v36, %v3729_v0  ;;  %v891_v36 = vstv %s3442_s20  ;;  %s3472_s20 = sld [smem:[#allocation3 + $0x8a]] }
  0x80   : > { %522 = vrot.lane.b32.xlu0 %v521_v47, %s3684_s11  ;;  %v718_v47 = vsel %vm587_vm2, %v716_v40, %v717_v39  ;;  %v893_v45 = vmul.f32 %v891_v36, %v3732_v1 }
  0x81   : > { %v733_v49 = vrot.slane %v729_v41, 3  ;;  %v880_v41 = vrot.slane %v876_v32, 4 }
  0x83   : > { %541 = vrot.lane.b32.xlu1 %v537_v48, %s3684_s11  ;;  %v734_v48 = vrot.slane %v730_v42, 3 }
  0x84   : > { %539 = vrot.lane.b32.xlu0 %v538_v53, %s3684_s11  ;;  %v790_v53 = vmul.f32 %v789_v50, %v3729_v0 }
  0x85   : > { %v735_v55 = vsel %vm587_vm2, %v733_v49, %v734_v48 }
  0x86   : > { %v794_v62 = vrot.slane %v790_v53, 4 }
  0x87   : > { %558 = vrot.lane.b32.xlu1 %v554_v54, %s3685_s14  ;;  %v791_v54 = vmul.f32 %v789_v50, %v3732_v1 }
  0x88   : > { %556 = vrot.lane.b32.xlu0 %v555_v59, %s3685_s14 }
  0x89   : > { %v795_v61 = vrot.slane %v791_v54, 4  ;;  %v3977_v54 = vld [vmem:[%s3726_s28 + $0x18] sm:$0xff] }
  0x8b   : > { %575 = vrot.lane.b32.xlu1 %v571_v60, %s3685_s14  ;;  %v806_v60 = vstv %s3437_s15  ;;  %s3467_s15 = sld [smem:[#allocation3 + $0x24]] }
  0x8c   : > { %573 = vrot.lane.b32.xlu0 %v572_v3, %s3685_s14  ;;  %v807_v2 = vmul.f32 %v806_v60, %v3729_v0  ;;  %v808_v3 = vmul.f32 %v806_v60, %v3732_v1 }
  0x8e   : > { %v811_v11 = vrot.slane %v807_v2, 4 }
  0x8f   : > { %619 = vrot.lane.b32.xlu1 %v615_v63, %s3682_s30  ;;  %v779_v63 = vsel %vm750_vm3, %v777_v57, %v778_v56 }
  0x90   : > { %617 = vrot.lane.b32.xlu0 %v616_v9, %s3682_s30  ;;  %v796_v9 = vsel %vm750_vm3, %v794_v62, %v795_v61 }
  0x93   : > { %636 = vrot.lane.b32.xlu1 %v632_v10, %s3682_s30  ;;  %v812_v10 = vrot.slane %v808_v3, 4 }
  0x94   : > { %634 = vrot.lane.b32.xlu0 %v633_v16, %s3682_s30  ;;  %v828_v16 = vrot.slane %v824_v7, 4 }
  0x95   : > { %v813_v17 = vsel %vm750_vm3, %v811_v11, %v812_v10  ;;  %v953_v11 = vmul.f32 %v3977_v54, %v951_v8 }
  0x96   : > { %v830_v23 = vsel %vm750_vm3, %v828_v16, %v829_v15 }
  0x97   : > { %653 = vrot.lane.b32.xlu1 %v649_v13, %s3683_s6 }
  0x98   : > { %651 = vrot.lane.b32.xlu0 %v650_v19, %s3683_s6  ;;  %v842_v19 = vmul.f32 %v840_v14, %v3732_v1 }
  0x9a   : > { %v846_v25 = vrot.slane %v842_v19, 4 }
  0x9b   : > { %670 = vrot.lane.b32.xlu1 %v666_v20, %s3683_s6 }
  0x9c   : > { %668 = vrot.lane.b32.xlu0 %v667_v27, %s3683_s6  ;;  %v858_v27 = vmul.f32 %v857_v22, %v3729_v0 }
  0x9e   : > { %v862_v35 = vrot.slane %v858_v27, 4  ;;  %v993_v27 = vstv %s3452_s26  ;;  %s3480_s26 = sld [smem:[#allocation3 + $0x8e]] }
  0x9f   : > { %687 = vrot.lane.b32.xlu1 %v683_v28, %s3684_s11  ;;  %v859_v28 = vmul.f32 %v857_v22, %v3732_v1  ;;  %v979_v22 = vstv %s3451_s25  ;;  %v995_v32 = vmul.f32 %v3977_v54, %v993_v27  ;;  %s4194_s25 = sld [smem:[#allocation3 + $0x2a]] }
  0xa0   : > { %685 = vrot.lane.b32.xlu0 %v684_v33, %s3684_s11  ;;  %v847_v33 = vsel %vm750_vm3, %v845_v26, %v846_v25 }
  0xa1   : > { %v3887_v43 = vpop.permute.xlu1 %163  ;;  %v863_v34 = vrot.slane %v859_v28, 4 }
  0xa2   : > { %v3889_v44 = vpop.permute.xlu0 %149 }
  0xa3   : > { %704 = vrot.lane.b32.xlu1 %v700_v31, %s3684_s11  ;;  %v875_v31 = vmul.f32 %v874_v24, %v3729_v0  ;;  %v864_v40 = vsel %vm750_vm3, %v862_v35, %v863_v34 }
  0xa4   : > { %702 = vrot.lane.b32.xlu0 %v701_v37, %s3684_s11 }
  0xa5   : > { %v3896_v51 = vpop.permute.xlu1 %165  ;;  %v879_v42 = vrot.slane %v875_v31, 4 }
  0xa6   : > { %v3898_v52 = vpop.permute.xlu0 %151 }
  0xa7   : > { %721 = vrot.lane.b32.xlu1 %v717_v39, %s3685_s14  ;;  %v892_v39 = vmul.f32 %v891_v36, %v3729_v0  ;;  %v897_v0 = vrot.slane %v893_v45, 4 }
  0xa8   : > { %719 = vrot.lane.b32.xlu0 %v718_v47, %s3685_s14 }
  0xa9   : > { %v3905_v58 = vpop.permute.xlu1 %179  ;;  %v896_v49 = vrot.slane %v892_v39, 4  ;;  %v1061_v39 = vstv %s3457_s29  ;;  %s4224_s29 = sld [smem:[#allocation3 + $0x8f]] }
  0xaa   : > { %v3907_v59 = vpop.permute.xlu0 %177 }
  0xab   : > { %738 = vrot.lane.b32.xlu1 %v734_v48, %s3685_s14  ;;  %v881_v48 = vsel %vm750_vm3, %v879_v42, %v880_v41  ;;  %v898_v1 = vsel %vm750_vm3, %v896_v49, %v897_v0  ;;  %v1021_v42 = vstv %s3454_s4  ;;  %s3483_s4 = sld [smem:[#allocation3 + $0x2c]] }
  0xac   : > { %736 = vrot.lane.b32.xlu0 %v735_v55, %s3685_s14  ;;  %v923_v55 = vstv %s3447_s0  ;;  %s3473_s0 = sld [smem:[#allocation3 + $0x27]] }
  0xad   : > { %v3914_v5 = vpop.permute.xlu1 %193 }
  0xae   : > { %v3916_v6 = vpop.permute.xlu0 %191 }
  0xaf   : > { %782 = vrot.lane.b32.xlu1 %v778_v56, %s3682_s30  ;;  %v3980_v56 = vld [vmem:[%s3726_s28 + $0x10] sm:$0xff] }
  0xb0   : > { %780 = vrot.lane.b32.xlu0 %v779_v63, %s3682_s30  ;;  %v924_v62 = vmul.f32 %v3980_v56, %v923_v55  ;;  %v937_v63 = vstv %s3448_s22  ;;  %v952_v14 = vmul.f32 %v3980_v56, %v951_v8  ;;  %v980_v26 = vmul.f32 %v3980_v56, %v979_v22  ;;  %s4164_s22 = sld [smem:[#allocation3 + $0x8b]] }
  0xb1   : > { %v3925_v12 = vpop.permute.xlu1 %207  ;;  %v939_v4 = vmul.f32 %v3977_v54, %v937_v63  ;;  %v938_v7 = vmul.f32 %v3980_v56, %v937_v63  ;;  %v1062_v45 = vmul.f32 %v3980_v56, %v1061_v39 }
  0xb2   : > { %v3927_v13 = vpop.permute.xlu0 %205 }
  0xb3   : > { %799 = vrot.lane.b32.xlu1 %v795_v61, %s3682_s30  ;;  %v925_v61 = vmul.f32 %v3977_v54, %v923_v55  ;;  %v1023_v55 = vmul.f32 %v3977_v54, %v1021_v42 }
  0xb4   : > { %797 = vrot.lane.b32.xlu0 %v796_v9, %s3682_s30 }
  0xb5   : > { %v3934_v20 = vpop.permute.xlu1 %221 }
  0xb6   : > { %v3936_v21 = vpop.permute.xlu0 %219 }
  0xb7   : > { %816 = vrot.lane.b32.xlu1 %v812_v10, %s3683_s6 }
  0xb8   : > { %814 = vrot.lane.b32.xlu0 %v813_v17, %s3683_s6 }
  0xb9   : > { %v3944_v29 = vpop.permute.xlu1 %235 }
  0xba   : > { %v3946_v30 = vpop.permute.xlu0 %233 }
  0xbb   : > { %833 = vrot.lane.b32.xlu1 %v829_v15, %s3683_s6  ;;  %v965_v15 = vstv %s3450_s24  ;;  %s3478_s24 = sld [smem:[#allocation3 + $0x8d]] }
  0xbc   : > { %831 = vrot.lane.b32.xlu0 %v830_v23, %s3683_s6  ;;  %v967_v18 = vmul.f32 %v3977_v54, %v965_v15  ;;  %v966_v19 = vmul.f32 %v3980_v56, %v965_v15 }
  0xbd   : > { %v3953_v37 = vpop.permute.xlu1 %249 }
  0xbe   : > { %v3955_v38 = vpop.permute.xlu0 %247 }
  0xbf   : > { %850 = vrot.lane.b32.xlu1 %v846_v25, %s3684_s11  ;;  %v981_v25 = vmul.f32 %v3977_v54, %v979_v22 }
  0xc0   : > { %848 = vrot.lane.b32.xlu0 %v847_v33, %s3684_s11  ;;  %v994_v33 = vmul.f32 %v3980_v56, %v993_v27 }
  0xc1   : > { %v3962_v46 = vpop.permute.xlu1 %293 }
  0xc2   : > { %v3964_v47 = vpop.permute.xlu0 %291 }
  0xc3   : > { %867 = vrot.lane.b32.xlu1 %v863_v34, %s3684_s11  ;;  %v1007_v34 = vstv %s3453_s27  ;;  %s3481_s27 = sld [smem:[#allocation3 + $0x2b]] }
  0xc4   : > { %865 = vrot.lane.b32.xlu0 %v864_v40, %s3684_s11  ;;  %v1009_v40 = vmul.f32 %v3977_v54, %v1007_v34 }
  0xc5   : > { %v3969_v50 = vpop.permute.xlu1 %310 }
  0xc6   : > { %v3971_v53 = vpop.permute.xlu0 %308 }
  0xc7   : > { %884 = vrot.lane.b32.xlu1 %v880_v41, %s3685_s14  ;;  %v1008_v41 = vmul.f32 %v3980_v56, %v1007_v34 }
  0xc8   : > { %882 = vrot.lane.b32.xlu0 %v881_v48, %s3685_s14  ;;  %v1063_v48 = vmul.f32 %v3977_v54, %v1061_v39 }
  0xc9   : > { %v3982_v57 = vpop.permute.xlu1 %327 }
  0xca   : > { %v3984_v60 = vpop.permute.xlu0 %325  ;;  %v1067_v63 = vrot.slane %v1063_v48, 1  ;;  %v1129_v48 = vstv %s3461_s9  ;;  %s3489_s9 = sld [smem:[#allocation3 + $0x2f]] }
  0xcb   : > { %901 = vrot.lane.b32.xlu1 %v897_v0, %s3685_s14 }
  0xcc   : > { %899 = vrot.lane.b32.xlu0 %v898_v1, %s3685_s14  ;;  %v1078_v1 = vstv %s3458_s5  ;;  %s3484_s5 = sld [smem:[#allocation3 + $0x90]] }
  0xcd   : > { %v3990_v2 = vpop.permute.xlu1 %344  ;;  %v1079_v8 = vmul.f32 %v3980_v56, %v1078_v1 }
  0xce   : > { %v3992_v3 = vpop.permute.xlu0 %342 }
  0xcf   : > { %930 = vrot.lane.b32.xlu1 %v925_v61, %s3682_s30  ;;  %v1022_v61 = vmul.f32 %v3980_v56, %v1021_v42 }
  0xd0   : > { %928 = vrot.lane.b32.xlu0 %v924_v62, %s3682_s30  ;;  %v1095_v62 = vstv %s4030_s7  ;;  %s4254_s7 = sld [smem:[#allocation3 + $0x2e]] }
  0xd1   : > { %v3998_v9 = vpop.permute.xlu1 %361  ;;  %v1097_v15 = vmul.f32 %v3977_v54, %v1095_v62 }
  0xd2   : > { %v4000_v10 = vpop.permute.xlu0 %359 }
  0xd3   : > { %944 = vrot.lane.b32.xlu1 %v939_v4, %s3682_s30  ;;  %v1066_v4 = vrot.slane %v1062_v45, 1 }
  0xd4   : > { %942 = vrot.lane.b32.xlu0 %v938_v7, %s3682_s30  ;;  %v1080_v7 = vmul.f32 %v3977_v54, %v1078_v1 }
  0xd5   : > { %v4006_v16 = vpop.permute.xlu1 %378 }
  0xd6   : > { %v4008_v17 = vpop.permute.xlu0 %376  ;;  %v1084_v22 = vrot.slane %v1080_v7, 1 }
  0xd7   : > { %958 = vrot.lane.b32.xlu1 %v953_v11, %s3683_s6 }
  0xd8   : > { %956 = vrot.lane.b32.xlu0 %v952_v14, %s3683_s6 }
  0xd9   : > { %v4014_v23 = vpop.permute.xlu1 %395 }
  0xda   : > { %v4016_v24 = vpop.permute.xlu0 %393 }
  0xdb   : > { %972 = vrot.lane.b32.xlu1 %v967_v18, %s3683_s6  ;;  %v1096_v18 = vmul.f32 %v3980_v56, %v1095_v62  ;;  %v1131_v62 = vmul.f32 %v3977_v54, %v1129_v48 }
  0xdc   : > { %970 = vrot.lane.b32.xlu0 %v966_v19, %s3683_s6  ;;  %v1068_v19 = vsel %vm261_vm0, %v1066_v4, %v1067_v63  ;;  %v1146_v4 = vstv %s3462_s10  ;;  %s4284_s10 = sld [smem:[#allocation3 + $0x93]] }
  0xdd   : > { %v4022_v28 = vpop.permute.xlu1 %412  ;;  %v1100_v34 = vrot.slane %v1096_v18, 1  ;;  %v1147_v18 = vmul.f32 %v3980_v56, %v1146_v4 }
  0xde   : > { %v4024_v31 = vpop.permute.xlu0 %410 }
  0xdf   : > { %986 = vrot.lane.b32.xlu1 %v981_v25, %s3684_s11  ;;  %v1083_v25 = vrot.slane %v1079_v8, 1 }
  0xe0   : > { %984 = vrot.lane.b32.xlu0 %v980_v26, %s3684_s11  ;;  %v1112_v26 = vstv %s4042_s8  ;;  %s3488_s8 = sld [smem:[#allocation3 + $0x92]] }
  0xe1   : > { %v4032_v35 = vpop.permute.xlu1 %456  ;;  %v1114_v39 = vmul.f32 %v3977_v54, %v1112_v26 }
  0xe2   : > { %v4034_v36 = vpop.permute.xlu0 %454 }
  0xe3   : > { %1000 = vrot.lane.b32.xlu1 %v995_v32, %s3684_s11 }
  0xe4   : > { %998 = vrot.lane.b32.xlu0 %v994_v33, %s3684_s11  ;;  %v1101_v33 = vrot.slane %v1097_v15, 1  ;;  %v1148_v15 = vmul.f32 %v3977_v54, %v1146_v4 }
  0xe5   : > { %v4044_v0 = vpop.permute.xlu1 %473 }
  0xe6   : > { %v4046_v49 = vpop.permute.xlu0 %471  ;;  %v1102_v1 = vsel %vm261_vm0, %v1100_v34, %v1101_v33 }
  0xe7   : > { %1014 = vrot.lane.b32.xlu1 %v1009_v40, %s3685_s14  ;;  %v1085_v40 = vsel %vm261_vm0, %v1083_v25, %v1084_v22 }
  0xe8   : > { %1012 = vrot.lane.b32.xlu0 %v1008_v41, %s3685_s14  ;;  %v1113_v41 = vmul.f32 %v3980_v56, %v1112_v26  ;;  %v1163_v26 = vstv %s4074_s12  ;;  %s3491_s12 = sld [smem:[#allocation3 + $0x30]] }
  0xe9   : > { %v4055_v11 = vpop.permute.xlu1 %490 }
  0xea   : > { %v4057_v14 = vpop.permute.xlu0 %488 }
  0xeb   : > { %5945 = vst [vmem:[#allocation6_spill] sm:$0xff] %v4057_v14  ;;  %1028 = vrot.lane.b32.xlu1 %v1023_v55, %s3685_s14  ;;  %v1118_v55 = vrot.slane %v1114_v39, 1 }
  0xec   : > { %1026 = vrot.lane.b32.xlu0 %v1022_v61, %s3685_s14  ;;  %v1117_v61 = vrot.slane %v1113_v41, 1  ;;  %v1165_v41 = vmul.f32 %v3977_v54, %v1163_v26 }
  0xed   : > { %v4065_v27 = vpop.permute.xlu1 %507 }
  0xee   : > { %5946 = vst [vmem:[#allocation7_spill] sm:$0xff] %v4065_v27  ;;  %v4067_v32 = vpop.permute.xlu0 %505  ;;  %v1169_v4 = vrot.slane %v1165_v41, 1 }
  0xef   : > { %5947 = vst [vmem:[#allocation8_spill] sm:$0xff] %v4067_v32  ;;  %1071 = vrot.lane.b32.xlu1 %v1067_v63, %s3682_s30  ;;  %v1130_v63 = vmul.f32 %v3980_v56, %v1129_v48 }
  0xf0   : > { %1069 = vrot.lane.b32.xlu0 %v1068_v19, %s3682_s30  ;;  %v1119_v19 = vsel %vm261_vm0, %v1117_v61, %v1118_v55 }
  0xf1   : > { %v4076_v42 = vpop.permute.xlu1 %524  ;;  %v1134_v25 = vrot.slane %v1130_v63, 1  ;;  %v1180_v63 = vstv %s3464_s13  ;;  %s3492_s13 = sld [smem:[#allocation3 + $0x94]] }
  0xf2   : > { %5948 = vst [vmem:[#allocation9_spill] sm:$0xff] %v4076_v42  ;;  %v4078_v45 = vpop.permute.xlu0 %522 }
  0xf3   : > { %5949 = vst [vmem:[#allocation10_spill] sm:$0xff] %v4078_v45  ;;  %1088 = vrot.lane.b32.xlu1 %v1084_v22, %s3682_s30  ;;  %v1135_v22 = vrot.slane %v1131_v62, 1 }
  0xf4   : > { %1086 = vrot.lane.b32.xlu0 %v1085_v40, %s3682_s30  ;;  %v1151_v40 = vrot.slane %v1147_v18, 1  ;;  %v1182_v18 = vmul.f32 %v3977_v54, %v1180_v63 }
  0xf5   : > { %v4085_v7 = vpop.permute.xlu1 %541  ;;  %v1136_v48 = vsel %vm261_vm0, %v1134_v25, %v1135_v22  ;;  %v1223_v25 = vstv %s3467_s15  ;;  %s3493_s15 = sld [smem:[#allocation3 + $0x31]] }
  0xf6   : > { %5950 = vst [vmem:[#allocation11_spill] sm:$0xff] %v4085_v7  ;;  %v4087_v8 = vpop.permute.xlu0 %539 }
  0xf7   : > { %5951 = vst [vmem:[#allocation12_spill] sm:$0xff] %v4087_v8  ;;  %1105 = vrot.lane.b32.xlu1 %v1101_v33, %s3683_s6  ;;  %v1152_v33 = vrot.slane %v1148_v15, 1  ;;  %v4565_v8 = vld [vmem:[%s3726_s28 + $0x8] sm:$0xff] }
  0xf8   : > { %1103 = vrot.lane.b32.xlu0 %v1102_v1, %s3683_s6  ;;  %v1164_v1 = vmul.f32 %v3980_v56, %v1163_v26 }
  0xf9   : > { %v4095_v34 = vpop.permute.xlu1 %558 }
  0xfa   : > { %5952 = vst [vmem:[#allocation13_spill] sm:$0xff] %v4095_v34  ;;  %v4097_v39 = vpop.permute.xlu0 %556  ;;  %v1168_v15 = vrot.slane %v1164_v1, 1 }
  0xfb   : > { %5953 = vst [vmem:[#allocation14_spill] sm:$0xff] %v4097_v39  ;;  %1122 = vrot.lane.b32.xlu1 %v1118_v55, %s3683_s6  ;;  %v1153_v55 = vsel %vm261_vm0, %v1151_v40, %v1152_v33  ;;  %v1224_v40 = vmul.f32 %v3980_v56, %v1223_v25  ;;  %v1615_v39 = vstv %s3491_s12  ;;  %s4504_s12 = sld [smem:[#allocation3 + $0x3e]] }
  0xfc   : > { %1120 = vrot.lane.b32.xlu0 %v1119_v19, %s3683_s6  ;;  %v1181_v19 = vmul.f32 %v3980_v56, %v1180_v63  ;;  %v1170_v41 = vsel %vm261_vm0, %v1168_v15, %v1169_v4 }
  0xfd   : > { %v4106_v61 = vpop.permute.xlu1 %575 }
  0xfe   : > { %5954 = vst [vmem:[#allocation15_spill] sm:$0xff] %v4106_v61  ;;  %v4108_v62 = vpop.permute.xlu0 %573  ;;  %v1185_v1 = vrot.slane %v1181_v19, 1 }
  0xff   : > { %5955 = vst [vmem:[#allocation16_spill] sm:$0xff] %v4108_v62  ;;  %1139 = vrot.lane.b32.xlu1 %v1135_v22, %s3684_s11  ;;  %v1225_v22 = vmul.f32 %v3977_v54, %v1223_v25  ;;  %v1240_v62 = vstv %s4104_s16  ;;  %s3494_s16 = sld [smem:[#allocation3 + $0x95]] }
 0x100   : > { %1137 = vrot.lane.b32.xlu0 %v1136_v48, %s3684_s11  ;;  %v1186_v48 = vrot.slane %v1182_v18, 1  ;;  %v1241_v15 = vmul.f32 %v3980_v56, %v1240_v62 }
 0x101   : > { %v4115_v26 = vpop.permute.xlu1 %619 }
 0x102   : > { %5956 = vst [vmem:[#allocation17_spill] sm:$0xff] %v4115_v26  ;;  %v4117_v61 = vpop.permute.xlu0 %617  ;;  %v1187_v25 = vsel %vm261_vm0, %v1185_v1, %v1186_v48  ;;  %v1274_v1 = vstv %s3470_s18  ;;  %s3500_s18 = sld [smem:[#allocation3 + $0x97]] }
 0x103   : > { %5957 = vst [vmem:[#allocation18_spill] sm:$0xff] %v4117_v61  ;;  %1156 = vrot.lane.b32.xlu1 %v1152_v33, %s3684_s11  ;;  %v1229_v33 = vrot.slane %v1225_v22, 2  ;;  %v1242_v61 = vmul.f32 %v3977_v54, %v1240_v62 }
 0x104   : > { %1154 = vrot.lane.b32.xlu0 %v1153_v55, %s3684_s11  ;;  %v1228_v55 = vrot.slane %v1224_v40, 2  ;;  %v1245_v40 = vrot.slane %v1241_v15, 2 }
 0x105   : > { %v4125_v63 = vpop.permute.xlu1 %636  ;;  %v1246_v22 = vrot.slane %v1242_v61, 2 }
 0x106   : > { %5958 = vst [vmem:[#allocation19_spill] sm:$0xff] %v4125_v63  ;;  %v4127_v26 = vpop.permute.xlu0 %634  ;;  %v1257_v63 = vstv %s3469_s17  ;;  %s3499_s17 = sld [smem:[#allocation3 + $0x33]] }
 0x107   : > { %5959 = vst [vmem:[#allocation20_spill] sm:$0xff] %v4127_v26  ;;  %1173 = vrot.lane.b32.xlu1 %v1169_v4, %s3685_s14  ;;  %v1230_v4 = vsel %vm424_vm1, %v1228_v55, %v1229_v33  ;;  %v1258_v62 = vmul.f32 %v3980_v56, %v1257_v63  ;;  %v1275_v55 = vmul.f32 %v3980_v56, %v1274_v1 }
 0x108   : > { %1171 = vrot.lane.b32.xlu0 %v1170_v41, %s3685_s14  ;;  %v1259_v41 = vmul.f32 %v3977_v54, %v1257_v63  ;;  %v1247_v61 = vsel %vm424_vm1, %v1245_v40, %v1246_v22 }
 0x109   : > { %v4136_v18 = vpop.permute.xlu1 %653  ;;  %v1262_v15 = vrot.slane %v1258_v62, 2 }
 0x10a   : > { %5960 = vst [vmem:[#allocation21_spill] sm:$0xff] %v4136_v18  ;;  %v4138_v19 = vpop.permute.xlu0 %651 }
 0x10b   : > { %5961 = vst [vmem:[#allocation22_spill] sm:$0xff] %v4138_v19  ;;  %1190 = vrot.lane.b32.xlu1 %v1186_v48, %s3685_s14  ;;  %v1276_v48 = vmul.f32 %v3977_v54, %v1274_v1  ;;  %v1291_v19 = vstv %s4134_s19  ;;  %s3501_s19 = sld [smem:[#allocation3 + $0x34]] }
 0x10c   : > { %1188 = vrot.lane.b32.xlu0 %v1187_v25, %s3685_s14  ;;  %v1263_v25 = vrot.slane %v1259_v41, 2  ;;  %v1292_v40 = vmul.f32 %v3980_v56, %v1291_v19 }
 0x10d   : > { %v4145_v26 = vpop.permute.xlu1 %670 }
 0x10e   : > { %5962 = vst [vmem:[#allocation23_spill] sm:$0xff] %v4145_v26  ;;  %v4147_v18 = vpop.permute.xlu0 %668  ;;  %v1264_v1 = vsel %vm424_vm1, %v1262_v15, %v1263_v25  ;;  %v1325_v15 = vstv %s3473_s0  ;;  %s3503_s0 = sld [smem:[#allocation3 + $0x35]] }
 0x10f   : > { %5963 = vst [vmem:[#allocation24_spill] sm:$0xff] %v4147_v18  ;;  %1233 = vrot.lane.b32.xlu1 %v1229_v33, %s3682_s30  ;;  %v1280_v33 = vrot.slane %v1276_v48, 2  ;;  %v1293_v18 = vmul.f32 %v3977_v54, %v1291_v19 }
 0x110   : > { %1231 = vrot.lane.b32.xlu0 %v1230_v4, %s3682_s30  ;;  %v1279_v4 = vrot.slane %v1275_v55, 2  ;;  %v1296_v55 = vrot.slane %v1292_v40, 2 }
 0x111   : > { %v4155_v63 = vpop.permute.xlu1 %687  ;;  %v1297_v48 = vrot.slane %v1293_v18, 2 }
 0x112   : > { %5964 = vst [vmem:[#allocation25_spill] sm:$0xff] %v4155_v63  ;;  %v4157_v26 = vpop.permute.xlu0 %685  ;;  %v1308_v63 = vstv %s3472_s20  ;;  %s3502_s20 = sld [smem:[#allocation3 + $0x98]] }
 0x113   : > { %5965 = vst [vmem:[#allocation26_spill] sm:$0xff] %v4157_v26  ;;  %1250 = vrot.lane.b32.xlu1 %v1246_v22, %s3682_s30  ;;  %v1281_v22 = vsel %vm424_vm1, %v1279_v4, %v1280_v33  ;;  %v1309_v19 = vmul.f32 %v3980_v56, %v1308_v63  ;;  %v1326_v4 = vmul.f32 %v3980_v56, %v1325_v15 }
 0x114   : > { %1248 = vrot.lane.b32.xlu0 %v1247_v61, %s3682_s30  ;;  %v1310_v61 = vmul.f32 %v3977_v54, %v1308_v63  ;;  %v1298_v18 = vsel %vm424_vm1, %v1296_v55, %v1297_v48 }
 0x115   : > { %v4166_v41 = vpop.permute.xlu1 %704  ;;  %v1313_v40 = vrot.slane %v1309_v19, 2 }
 0x116   : > { %5966 = vst [vmem:[#allocation27_spill] sm:$0xff] %v4166_v41  ;;  %v4168_v62 = vpop.permute.xlu0 %702 }
 0x117   : > { %5967 = vst [vmem:[#allocation28_spill] sm:$0xff] %v4168_v62  ;;  %1267 = vrot.lane.b32.xlu1 %v1263_v25, %s3683_s6  ;;  %v1327_v25 = vmul.f32 %v3977_v54, %v1325_v15  ;;  %v1342_v62 = vstv %s4164_s22  ;;  %s3504_s22 = sld [smem:[#allocation3 + $0x99]] }
 0x118   : > { %1265 = vrot.lane.b32.xlu0 %v1264_v1, %s3683_s6  ;;  %v1314_v1 = vrot.slane %v1310_v61, 2  ;;  %v1343_v55 = vmul.f32 %v3980_v56, %v1342_v62 }
 0x119   : > { %v4175_v26 = vpop.permute.xlu1 %721 }
 0x11a   : > { %5968 = vst [vmem:[#allocation29_spill] sm:$0xff] %v4175_v26  ;;  %v4177_v41 = vpop.permute.xlu0 %719  ;;  %v1315_v15 = vsel %vm424_vm1, %v1313_v40, %v1314_v1  ;;  %v1402_v40 = vstv %s3478_s24  ;;  %s3509_s24 = sld [smem:[#allocation3 + $0x38]] }
 0x11b   : > { %5969 = vst [vmem:[#allocation30_spill] sm:$0xff] %v4177_v41  ;;  %1284 = vrot.lane.b32.xlu1 %v1280_v33, %s3683_s6  ;;  %v1331_v33 = vrot.slane %v1327_v25, 2  ;;  %v1344_v41 = vmul.f32 %v3977_v54, %v1342_v62 }
 0x11c   : > { %1282 = vrot.lane.b32.xlu0 %v1281_v22, %s3683_s6  ;;  %v1330_v22 = vrot.slane %v1326_v4, 2  ;;  %v1347_v4 = vrot.slane %v1343_v55, 2 }
 0x11d   : > { %v4185_v63 = vpop.permute.xlu1 %738  ;;  %v1348_v25 = vrot.slane %v1344_v41, 2 }
 0x11e   : > { %5970 = vst [vmem:[#allocation31_spill] sm:$0xff] %v4185_v63  ;;  %v4187_v26 = vpop.permute.xlu0 %736  ;;  %v1385_v63 = vstv %s3477_s23  ;;  %s3505_s23 = sld [smem:[#allocation3 + $0x36]] }
 0x11f   : > { %5971 = vst [vmem:[#allocation32_spill] sm:$0xff] %v4187_v26  ;;  %1301 = vrot.lane.b32.xlu1 %v1297_v48, %s3684_s11  ;;  %v1332_v48 = vsel %vm424_vm1, %v1330_v22, %v1331_v33  ;;  %v1386_v62 = vmul.f32 %v3980_v56, %v1385_v63  ;;  %v1403_v22 = vmul.f32 %v3980_v56, %v1402_v40 }
 0x120   : > { %1299 = vrot.lane.b32.xlu0 %v1298_v18, %s3684_s11  ;;  %v1387_v18 = vmul.f32 %v3977_v54, %v1385_v63  ;;  %v1349_v41 = vsel %vm424_vm1, %v1347_v4, %v1348_v25 }
 0x121   : > { %v4196_v61 = vpop.permute.xlu1 %782  ;;  %v1390_v55 = vrot.slane %v1386_v62, 3 }
 0x122   : > { %5972 = vst [vmem:[#allocation33_spill] sm:$0xff] %v4196_v61  ;;  %v4198_v19 = vpop.permute.xlu0 %780 }
 0x123   : > { %5973 = vst [vmem:[#allocation34_spill] sm:$0xff] %v4198_v19  ;;  %1318 = vrot.lane.b32.xlu1 %v1314_v1, %s3684_s11  ;;  %v1404_v1 = vmul.f32 %v3977_v54, %v1402_v40  ;;  %v1419_v19 = vstv %s4194_s25  ;;  %s3506_s25 = sld [smem:[#allocation3 + $0x9a]] }
 0x124   : > { %1316 = vrot.lane.b32.xlu0 %v1315_v15, %s3684_s11  ;;  %v1391_v15 = vrot.slane %v1387_v18, 3  ;;  %v1420_v4 = vmul.f32 %v3980_v56, %v1419_v19 }
 0x125   : > { %v4205_v26 = vpop.permute.xlu1 %799 }
 0x126   : > { %5974 = vst [vmem:[#allocation35_spill] sm:$0xff] %v4205_v26  ;;  %v4207_v61 = vpop.permute.xlu0 %797  ;;  %v1392_v40 = vsel %vm587_vm2, %v1390_v55, %v1391_v15  ;;  %v1453_v55 = vstv %s3481_s27  ;;  %s3511_s27 = sld [smem:[#allocation3 + $0x39]] }
 0x127   : > { %5975 = vst [vmem:[#allocation36_spill] sm:$0xff] %v4207_v61  ;;  %1335 = vrot.lane.b32.xlu1 %v1331_v33, %s3685_s14  ;;  %v1408_v33 = vrot.slane %v1404_v1, 3  ;;  %v1421_v61 = vmul.f32 %v3977_v54, %v1419_v19 }
 0x128   : > { %1333 = vrot.lane.b32.xlu0 %v1332_v48, %s3685_s14  ;;  %v1407_v48 = vrot.slane %v1403_v22, 3  ;;  %v1424_v22 = vrot.slane %v1420_v4, 3 }
 0x129   : > { %v4215_v63 = vpop.permute.xlu1 %816  ;;  %v1425_v1 = vrot.slane %v1421_v61, 3 }
 0x12a   : > { %5976 = vst [vmem:[#allocation37_spill] sm:$0xff] %v4215_v63  ;;  %v4217_v26 = vpop.permute.xlu0 %814  ;;  %v1436_v63 = vstv %s3480_s26  ;;  %s3510_s26 = sld [smem:[#allocation3 + $0x9c]] }
 0x12b   : > { %5977 = vst [vmem:[#allocation38_spill] sm:$0xff] %v4217_v26  ;;  %1352 = vrot.lane.b32.xlu1 %v1348_v25, %s3685_s14  ;;  %v1409_v25 = vsel %vm587_vm2, %v1407_v48, %v1408_v33  ;;  %v1437_v19 = vmul.f32 %v3980_v56, %v1436_v63  ;;  %v1454_v48 = vmul.f32 %v3980_v56, %v1453_v55 }
 0x12c   : > { %1350 = vrot.lane.b32.xlu0 %v1349_v41, %s3685_s14  ;;  %v1438_v41 = vmul.f32 %v3977_v54, %v1436_v63  ;;  %v1426_v61 = vsel %vm587_vm2, %v1424_v22, %v1425_v1 }
 0x12d   : > { %v4226_v18 = vpop.permute.xlu1 %833  ;;  %v1441_v4 = vrot.slane %v1437_v19, 3 }
 0x12e   : > { %5978 = vst [vmem:[#allocation39_spill] sm:$0xff] %v4226_v18  ;;  %v4228_v62 = vpop.permute.xlu0 %831 }
 0x12f   : > { %5979 = vst [vmem:[#allocation40_spill] sm:$0xff] %v4228_v62  ;;  %1395 = vrot.lane.b32.xlu1 %v1391_v15, %s3682_s30  ;;  %v1455_v15 = vmul.f32 %v3977_v54, %v1453_v55  ;;  %v1470_v62 = vstv %s4224_s29  ;;  %s4428_s29 = sld [smem:[#allocation3 + $0x9d]] }
 0x130   : > { %1393 = vrot.lane.b32.xlu0 %v1392_v40, %s3682_s30  ;;  %v1442_v40 = vrot.slane %v1438_v41, 3  ;;  %v1471_v22 = vmul.f32 %v3980_v56, %v1470_v62 }
 0x131   : > { %v4235_v26 = vpop.permute.xlu1 %850 }
 0x132   : > { %5980 = vst [vmem:[#allocation41_spill] sm:$0xff] %v4235_v26  ;;  %v4237_v18 = vpop.permute.xlu0 %848  ;;  %v1443_v55 = vsel %vm587_vm2, %v1441_v4, %v1442_v40  ;;  %v1504_v4 = vstv %s3484_s5  ;;  %s3514_s5 = sld [smem:[#allocation3 + $0x9e]] }
 0x133   : > { %5981 = vst [vmem:[#allocation42_spill] sm:$0xff] %v4237_v18  ;;  %1412 = vrot.lane.b32.xlu1 %v1408_v33, %s3682_s30  ;;  %v1459_v33 = vrot.slane %v1455_v15, 3  ;;  %v1472_v18 = vmul.f32 %v3977_v54, %v1470_v62 }
 0x134   : > { %1410 = vrot.lane.b32.xlu0 %v1409_v25, %s3682_s30  ;;  %v1458_v25 = vrot.slane %v1454_v48, 3  ;;  %v1475_v48 = vrot.slane %v1471_v22, 3 }
 0x135   : > { %v4245_v63 = vpop.permute.xlu1 %867  ;;  %v1476_v15 = vrot.slane %v1472_v18, 3 }
 0x136   : > { %5982 = vst [vmem:[#allocation43_spill] sm:$0xff] %v4245_v63  ;;  %v4247_v26 = vpop.permute.xlu0 %865  ;;  %v1487_v63 = vstv %s3483_s4  ;;  %s3513_s4 = sld [smem:[#allocation3 + $0x3a]] }
 0x137   : > { %5983 = vst [vmem:[#allocation44_spill] sm:$0xff] %v4247_v26  ;;  %1429 = vrot.lane.b32.xlu1 %v1425_v1, %s3683_s6  ;;  %v1460_v1 = vsel %vm587_vm2, %v1458_v25, %v1459_v33  ;;  %v1488_v62 = vmul.f32 %v3980_v56, %v1487_v63  ;;  %v1505_v25 = vmul.f32 %v3980_v56, %v1504_v4 }
 0x138   : > { %1427 = vrot.lane.b32.xlu0 %v1426_v61, %s3683_s6  ;;  %v1489_v61 = vmul.f32 %v3977_v54, %v1487_v63  ;;  %v1477_v18 = vsel %vm587_vm2, %v1475_v48, %v1476_v15 }
 0x139   : > { %v4256_v41 = vpop.permute.xlu1 %884  ;;  %v1492_v22 = vrot.slane %v1488_v62, 3 }
 0x13a   : > { %5984 = vst [vmem:[#allocation45_spill] sm:$0xff] %v4256_v41  ;;  %v4258_v19 = vpop.permute.xlu0 %882 }
 0x13b   : > { %5985 = vst [vmem:[#allocation46_spill] sm:$0xff] %v4258_v19  ;;  %1446 = vrot.lane.b32.xlu1 %v1442_v40, %s3683_s6  ;;  %v1506_v40 = vmul.f32 %v3977_v54, %v1504_v4  ;;  %v1547_v19 = vstv %s4254_s7  ;;  %s4459_s7 = sld [smem:[#allocation3 + $0x3b]] }
 0x13c   : > { %1444 = vrot.lane.b32.xlu0 %v1443_v55, %s3683_s6  ;;  %v1493_v55 = vrot.slane %v1489_v61, 3  ;;  %v1548_v48 = vmul.f32 %v3980_v56, %v1547_v19 }
 0x13d   : > { %v4265_v26 = vpop.permute.xlu1 %901 }
 0x13e   : > { %5986 = vst [vmem:[#allocation47_spill] sm:$0xff] %v4265_v26  ;;  %v4267_v41 = vpop.permute.xlu0 %899  ;;  %v1494_v4 = vsel %vm587_vm2, %v1492_v22, %v1493_v55  ;;  %v1581_v22 = vstv %s3489_s9  ;;  %s3519_s9 = sld [smem:[#allocation3 + $0x3d]] }
 0x13f   : > { %5987 = vst [vmem:[#allocation48_spill] sm:$0xff] %v4267_v41  ;;  %1463 = vrot.lane.b32.xlu1 %v1459_v33, %s3684_s11  ;;  %v1510_v33 = vrot.slane %v1506_v40, 3  ;;  %v1549_v41 = vmul.f32 %v3977_v54, %v1547_v19 }
 0x140   : > { %1461 = vrot.lane.b32.xlu0 %v1460_v1, %s3684_s11  ;;  %v1509_v1 = vrot.slane %v1505_v25, 3  ;;  %v1552_v25 = vrot.slane %v1548_v48, 4 }
 0x141   : > { %v4275_v63 = vpop.permute.xlu1 %930  ;;  %v1553_v40 = vrot.slane %v1549_v41, 4 }
 0x142   : > { %5988 = vst [vmem:[#allocation49_spill] sm:$0xff] %v4275_v63  ;;  %v4277_v26 = vpop.permute.xlu0 %928  ;;  %v1564_v63 = vstv %s3488_s8  ;;  %s3516_s8 = sld [smem:[#allocation3 + $0x9f]] }
 0x143   : > { %5989 = vst [vmem:[#allocation50_spill] sm:$0xff] %v4277_v26  ;;  %1480 = vrot.lane.b32.xlu1 %v1476_v15, %s3684_s11  ;;  %v1511_v15 = vsel %vm587_vm2, %v1509_v1, %v1510_v33  ;;  %v1565_v19 = vmul.f32 %v3980_v56, %v1564_v63  ;;  %v1582_v1 = vmul.f32 %v3980_v56, %v1581_v22 }
 0x144   : > { %1478 = vrot.lane.b32.xlu0 %v1477_v18, %s3684_s11  ;;  %v1566_v18 = vmul.f32 %v3977_v54, %v1564_v63  ;;  %v1554_v41 = vsel %vm750_vm3, %v1552_v25, %v1553_v40 }
 0x145   : > { %v4286_v61 = vpop.permute.xlu1 %944  ;;  %v1569_v48 = vrot.slane %v1565_v19, 4 }
 0x146   : > { %5990 = vst [vmem:[#allocation51_spill] sm:$0xff] %v4286_v61  ;;  %v4288_v62 = vpop.permute.xlu0 %942 }
 0x147   : > { %5991 = vst [vmem:[#allocation52_spill] sm:$0xff] %v4288_v62  ;;  %1497 = vrot.lane.b32.xlu1 %v1493_v55, %s3685_s14  ;;  %v1583_v55 = vmul.f32 %v3977_v54, %v1581_v22  ;;  %v1598_v62 = vstv %s4284_s10  ;;  %s4489_s10 = sld [smem:[#allocation3 + $0xa1]] }
 0x148   : > { %1495 = vrot.lane.b32.xlu0 %v1494_v4, %s3685_s14  ;;  %v1570_v4 = vrot.slane %v1566_v18, 4  ;;  %v1599_v25 = vmul.f32 %v3980_v56, %v1598_v62 }
 0x149   : > { %v4295_v26 = vpop.permute.xlu1 %958 }
 0x14a   : > { %5992 = vst [vmem:[#allocation53_spill] sm:$0xff] %v4295_v26  ;;  %v4297_v61 = vpop.permute.xlu0 %956  ;;  %v1571_v22 = vsel %vm750_vm3, %v1569_v48, %v1570_v4  ;;  %v1616_v48 = vmul.f32 %v3980_v56, %v1615_v39 }
 0x14b   : > { %5993 = vst [vmem:[#allocation54_spill] sm:$0xff] %v4297_v61  ;;  %1514 = vrot.lane.b32.xlu1 %v1510_v33, %s3685_s14  ;;  %v1587_v33 = vrot.slane %v1583_v55, 4  ;;  %v1600_v61 = vmul.f32 %v3977_v54, %v1598_v62 }
 0x14c   : > { %1512 = vrot.lane.b32.xlu0 %v1511_v15, %s3685_s14  ;;  %v1586_v15 = vrot.slane %v1582_v1, 4  ;;  %v1603_v1 = vrot.slane %v1599_v25, 4  ;;  %v1620_v25 = vrot.slane %v1616_v48, 4  ;;  %v1666_v48 = vstv %s3494_s16  ;;  %s4520_s16 = sld [smem:[#allocation3 + $0x64]] }
 0x14d   : > { %v4305_v63 = vpop.permute.xlu1 %972  ;;  %v1604_v55 = vrot.slane %v1600_v61, 4 }
 0x14e   : > { %5994 = vst [vmem:[#allocation55_spill] sm:$0xff] %v4305_v63  ;;  %v4307_v26 = vpop.permute.xlu0 %970 }
 0x14f   : > { %5995 = vst [vmem:[#allocation56_spill] sm:$0xff] %v4307_v26  ;;  %1557 = vrot.lane.b32.xlu1 %v1553_v40, %s3682_s30  ;;  %v1588_v40 = vsel %vm750_vm3, %v1586_v15, %v1587_v33  ;;  %v1632_v26 = vstv %s3492_s13  ;;  %v1605_v61 = vsel %vm750_vm3, %v1603_v1, %v1604_v55  ;;  %s4512_s13 = sld [smem:[#allocation3 + $0xa2]] }
 0x150   : > { %1555 = vrot.lane.b32.xlu0 %v1554_v41, %s3682_s30  ;;  %v1617_v41 = vmul.f32 %v3977_v54, %v1615_v39  ;;  %v1633_v15 = vmul.f32 %v3980_v56, %v1632_v26 }
 0x151   : > { %v4314_v18 = vpop.permute.xlu1 %986 }
 0x152   : > { %5996 = vst [vmem:[#allocation57_spill] sm:$0xff] %v4314_v18  ;;  %v4316_v19 = vpop.permute.xlu0 %984 }
 0x153   : > { %5997 = vst [vmem:[#allocation58_spill] sm:$0xff] %v4316_v19  ;;  %1574 = vrot.lane.b32.xlu1 %v1570_v4, %s3682_s30  ;;  %v1634_v4 = vmul.f32 %v3977_v54, %v1632_v26 }
 0x154   : > { %1572 = vrot.lane.b32.xlu0 %v1571_v22, %s3682_s30  ;;  %v1621_v22 = vrot.slane %v1617_v41, 4 }
 0x155   : > { %v4323_v62 = vpop.permute.xlu1 %1000 }
 0x156   : > { %5998 = vst [vmem:[#allocation59_spill] sm:$0xff] %v4323_v62  ;;  %v4325_v18 = vpop.permute.xlu0 %998  ;;  %v1649_v62 = vstv %s3493_s15  ;;  %s4518_s15 = sld [smem:[#allocation3]] }
 0x157   : > { %5999 = vst [vmem:[#allocation60_spill] sm:$0xff] %v4325_v18  ;;  %1591 = vrot.lane.b32.xlu1 %v1587_v33, %s3683_s6  ;;  %v1638_v33 = vrot.slane %v1634_v4, 4  ;;  %v1637_v18 = vrot.slane %v1633_v15, 4  ;;  %v1651_v63 = vmul.f32 %v3977_v54, %v1649_v62  ;;  %v1650_v26 = vmul.f32 %v3980_v56, %v1649_v62 }
 0x158   : > { %1589 = vrot.lane.b32.xlu0 %v1588_v40, %s3683_s6  ;;  %v1622_v40 = vsel %vm750_vm3, %v1620_v25, %v1621_v22  ;;  %v1668_v15 = vmul.f32 %v3977_v54, %v1666_v48  ;;  %v1667_v25 = vmul.f32 %v3980_v56, %v1666_v48  ;;  %v4368_v48 = vld [vmem:[%s3726_s28 + $0x20] sm:$0xff] }
 0x159   : > { %v4332_v19 = vpop.permute.xlu1 %1014  ;;  %v1654_v4 = vrot.slane %v1650_v26, 4  ;;  %v4365_v26 = vld [vmem:[%s3726_s28 + $0x28] sm:$0xff] }
 0x15a   : > { %6000 = vst [vmem:[#allocation61_spill] sm:$0xff] %v4332_v19  ;;  %v4334_v39 = vpop.permute.xlu0 %1012 }
 0x15b   : > { %6001 = vst [vmem:[#allocation62_spill] sm:$0xff] %v4334_v39  ;;  %1608 = vrot.lane.b32.xlu1 %v1604_v55, %s3683_s6  ;;  %v1639_v55 = vsel %vm750_vm3, %v1637_v18, %v1638_v33  ;;  %v1672_v18 = vrot.slane %v1668_v15, 4  ;;  %v1887_v39 = vstv %s4428_s29  ;;  %s4658_s29 = sld [smem:[#allocation3 + $0xf]] }
 0x15c   : > { %1606 = vrot.lane.b32.xlu0 %v1605_v61, %s3683_s6  ;;  %v1655_v61 = vrot.slane %v1651_v63, 4  ;;  %v1671_v63 = vrot.slane %v1667_v25, 4  ;;  %v1712_v25 = vstv %s3500_s18  ;;  %s4529_s18 = sld [smem:[#allocation3 + $0x5]] }
 0x15d   : > { %v4341_v1 = vpop.permute.xlu1 %1028 }
 0x15e   : > { %6002 = vst [vmem:[#allocation63_spill] sm:$0xff] %v4341_v1  ;;  %v4343_v41 = vpop.permute.xlu0 %1026  ;;  %v1673_v56 = vsel %vm750_vm3, %v1671_v63, %v1672_v18 }
 0x15f   : > { %6003 = vst [vmem:[#allocation64_spill] sm:$0xff] %v4343_v41  ;;  %1625 = vrot.lane.b32.xlu1 %v1621_v22, %s3684_s11  ;;  %v1656_v22 = vsel %vm750_vm3, %v1654_v4, %v1655_v61  ;;  %v1870_v41 = vstv %s3511_s27  ;;  %s4647_s27 = sld [smem:[#allocation3 + $0x43]] }
 0x160   : > { %1623 = vrot.lane.b32.xlu0 %v1622_v40, %s3684_s11 }
 0x161   : > { %v4350_v62 = vpop.permute.xlu1 %1071 }
 0x162   : > { %6004 = vst [vmem:[#allocation65_spill] sm:$0xff] %v4350_v62  ;;  %v4352_v1 = vpop.permute.xlu0 %1069 }
 0x163   : > { %6005 = vst [vmem:[#allocation66_spill] sm:$0xff] %v4352_v1  ;;  %1642 = vrot.lane.b32.xlu1 %v1638_v33, %s3684_s11  ;;  %v1698_v33 = vstv %s3499_s17  ;;  %s4527_s17 = sld [smem:[#allocation3 + $0x3f]] }
 0x164   : > { %1640 = vrot.lane.b32.xlu0 %v1639_v55, %s3684_s11  ;;  %v1699_v15 = vmul.f32 %v4368_v48, %v1698_v33 }
 0x165   : > { %v4357_v40 = vpop.permute.xlu1 %1088 }
 0x166   : > { %6006 = vst [vmem:[#allocation67_spill] sm:$0xff] %v4357_v40  ;;  %v4359_v54 = vpop.permute.xlu0 %1086 }
 0x167   : > { %6007 = vst [vmem:[#allocation68_spill] sm:$0xff] %v4359_v54  ;;  %1659 = vrot.lane.b32.xlu1 %v1655_v61, %s3685_s14  ;;  %v1700_v61 = vmul.f32 %v4365_v26, %v1698_v33 }
 0x168   : > { %1657 = vrot.lane.b32.xlu0 %v1656_v22, %s3685_s14 }
 0x169   : > { %v4370_v55 = vpop.permute.xlu1 %1105 }
 0x16a   : > { %6008 = vst [vmem:[#allocation69_spill] sm:$0xff] %v4370_v55  ;;  %v4372_v4 = vpop.permute.xlu0 %1103  ;;  %v1726_v55 = vstv %s3501_s19  ;;  %s4536_s19 = sld [smem:[#allocation3 + $0x69]] }
 0x16b   : > { %6009 = vst [vmem:[#allocation70_spill] sm:$0xff] %v4372_v4  ;;  %1676 = vrot.lane.b32.xlu1 %v1672_v18, %s3685_s14  ;;  %v1714_v4 = vmul.f32 %v4365_v26, %v1712_v25  ;;  %v1713_v18 = vmul.f32 %v4368_v48, %v1712_v25  ;;  %v1728_v33 = vmul.f32 %v4365_v26, %v1726_v55 }
 0x16c   : > { %1674 = vrot.lane.b32.xlu0 %v1673_v56, %s3685_s14 }
 0x16d   : > { %v4378_v22 = vpop.permute.xlu1 %1122 }
 0x16e   : > { %6010 = vst [vmem:[#allocation71_spill] sm:$0xff] %v4378_v22  ;;  %v4380_v63 = vpop.permute.xlu0 %1120 }
 0x16f   : > { %6011 = vst [vmem:[#allocation72_spill] sm:$0xff] %v4380_v63  ;;  %1705 = vrot.lane.b32.xlu1 %v1700_v61, %s3682_s30  ;;  %v1727_v61 = vmul.f32 %v4368_v48, %v1726_v55  ;;  %v1740_v63 = vstv %s3502_s20  ;;  %s4548_s20 = sld [smem:[#allocation3 + $0xa3]] }
 0x170   : > { %1703 = vrot.lane.b32.xlu0 %v1699_v15, %s3682_s30  ;;  %v1742_v25 = vmul.f32 %v4365_v26, %v1740_v63 }
 0x171   : > { %v4386_v56 = vpop.permute.xlu1 %1139 }
 0x172   : > { %6012 = vst [vmem:[#allocation73_spill] sm:$0xff] %v4386_v56  ;;  %v4388_v54 = vpop.permute.xlu0 %1137 }
 0x173   : > { %6013 = vst [vmem:[#allocation74_spill] sm:$0xff] %v4388_v54  ;;  %1719 = vrot.lane.b32.xlu1 %v1714_v4, %s3682_s30  ;;  %v1741_v4 = vmul.f32 %v4368_v48, %v1740_v63  ;;  %v1754_v54 = vstv %s3503_s0  ;;  %s4558_s0 = sld [smem:[#allocation3 + $0x40]] }
 0x174   : > { %1717 = vrot.lane.b32.xlu0 %v1713_v18, %s3682_s30 }
 0x175   : > { %v4394_v15 = vpop.permute.xlu1 %1156 }
 0x176   : > { %6014 = vst [vmem:[#allocation75_spill] sm:$0xff] %v4394_v15  ;;  %v4396_v22 = vpop.permute.xlu0 %1154 }
 0x177   : > { %6015 = vst [vmem:[#allocation76_spill] sm:$0xff] %v4396_v22  ;;  %1733 = vrot.lane.b32.xlu1 %v1728_v33, %s3683_s6  ;;  %v1756_v22 = vmul.f32 %v4365_v26, %v1754_v54  ;;  %v1755_v33 = vmul.f32 %v4368_v48, %v1754_v54 }
 0x178   : > { %1731 = vrot.lane.b32.xlu0 %v1727_v61, %s3683_s6  ;;  %v1768_v61 = vstv %s3504_s22  ;;  %s4584_s22 = sld [smem:[#allocation3 + $0xa4]] }
 0x179   : > { %v4402_v18 = vpop.permute.xlu1 %1173 }
 0x17a   : > { %6016 = vst [vmem:[#allocation77_spill] sm:$0xff] %v4402_v18  ;;  %v4404_v55 = vpop.permute.xlu0 %1171  ;;  %v1836_v18 = vstv %s3509_s24  ;;  %s4614_s24 = sld [smem:[#allocation3 + $0x42]] }
 0x17b   : > { %6017 = vst [vmem:[#allocation78_spill] sm:$0xff] %v4404_v55  ;;  %1747 = vrot.lane.b32.xlu1 %v1742_v25, %s3683_s6  ;;  %v1770_v55 = vmul.f32 %v4365_v26, %v1768_v61  ;;  %v1769_v25 = vmul.f32 %v4368_v48, %v1768_v61  ;;  %v1837_v61 = vmul.f32 %v4368_v48, %v1836_v18 }
 0x17c   : > { %1745 = vrot.lane.b32.xlu0 %v1741_v4, %s3683_s6  ;;  %v1782_v4 = vstv %s3505_s23  ;;  %s4598_s23 = sld [smem:[#allocation3 + $0xa]] }
 0x17d   : > { %v4410_v15 = vpop.permute.xlu1 %1190  ;;  %v1841_v1 = vrot.slane %v1837_v61, 1 }
 0x17e   : > { %6018 = vst [vmem:[#allocation79_spill] sm:$0xff] %v4410_v15  ;;  %v4412_v63 = vpop.permute.xlu0 %1188  ;;  %v1796_v15 = vstv %s3506_s25  ;;  %s4619_s25 = sld [smem:[#allocation3 + $0x6e]] }
 0x17f   : > { %6019 = vst [vmem:[#allocation80_spill] sm:$0xff] %v4412_v63  ;;  %1761 = vrot.lane.b32.xlu1 %v1756_v22, %s3684_s11  ;;  %v1784_v63 = vmul.f32 %v4365_v26, %v1782_v4  ;;  %v1783_v22 = vmul.f32 %v4368_v48, %v1782_v4 }
 0x180   : > { %1759 = vrot.lane.b32.xlu0 %v1755_v33, %s3684_s11  ;;  %v1838_v33 = vmul.f32 %v4365_v26, %v1836_v18 }
 0x181   : > { %v4418_v56 = vpop.permute.xlu1 %1233 }
 0x182   : > { %6020 = vst [vmem:[#allocation81_spill] sm:$0xff] %v4418_v56  ;;  %v4420_v54 = vpop.permute.xlu0 %1231  ;;  %v1842_v4 = vrot.slane %v1838_v33, 1 }
 0x183   : > { %6021 = vst [vmem:[#allocation82_spill] sm:$0xff] %v4420_v54  ;;  %1775 = vrot.lane.b32.xlu1 %v1770_v55, %s3684_s11  ;;  %v1853_v54 = vstv %s3510_s26  ;;  %v1798_v55 = vmul.f32 %v4365_v26, %v1796_v15  ;;  %s4628_s26 = sld [smem:[#allocation3 + $0xa6]] }
 0x184   : > { %1773 = vrot.lane.b32.xlu0 %v1769_v25, %s3684_s11  ;;  %v1797_v25 = vmul.f32 %v4368_v48, %v1796_v15  ;;  %v1855_v18 = vmul.f32 %v4365_v26, %v1853_v54  ;;  %v1854_v62 = vmul.f32 %v4368_v48, %v1853_v54  ;;  %v1871_v15 = vmul.f32 %v4368_v48, %v1870_v41 }
 0x185   : > { %v4430_v40 = vpop.permute.xlu1 %1250 }
 0x186   : > { %6022 = vst [vmem:[#allocation83_spill] sm:$0xff] %v4430_v40  ;;  %v4432_v56 = vpop.permute.xlu0 %1248  ;;  %v1859_v33 = vrot.slane %v1855_v18, 1  ;;  %v1858_v61 = vrot.slane %v1854_v62, 1 }
 0x187   : > { %6023 = vst [vmem:[#allocation84_spill] sm:$0xff] %v4432_v56  ;;  %1789 = vrot.lane.b32.xlu1 %v1784_v63, %s3685_s14  ;;  %v1872_v63 = vmul.f32 %v4365_v26, %v1870_v41 }
 0x188   : > { %1787 = vrot.lane.b32.xlu0 %v1783_v22, %s3685_s14  ;;  %v1843_v22 = vsel %vm261_vm0, %v1841_v1, %v1842_v4  ;;  %v1860_v41 = vsel %vm261_vm0, %v1858_v61, %v1859_v33  ;;  %v1888_v1 = vmul.f32 %v4368_v48, %v1887_v39  ;;  %v1921_v61 = vstv %s3514_s5  ;;  %s4689_s5 = sld [smem:[#allocation3 + $0x44]] }
 0x189   : > { %v4440_v40 = vpop.permute.xlu1 %1267 }
 0x18a   : > { %6024 = vst [vmem:[#allocation85_spill] sm:$0xff] %v4440_v40  ;;  %v4442_v56 = vpop.permute.xlu0 %1265 }
 0x18b   : > { %6025 = vst [vmem:[#allocation86_spill] sm:$0xff] %v4442_v56  ;;  %1803 = vrot.lane.b32.xlu1 %v1798_v55, %s3685_s14  ;;  %v1876_v55 = vrot.slane %v1872_v63, 1  ;;  %v1889_v56 = vmul.f32 %v4365_v26, %v1887_v39 }
 0x18c   : > { %1801 = vrot.lane.b32.xlu0 %v1797_v25, %s3685_s14  ;;  %v1875_v25 = vrot.slane %v1871_v15, 1  ;;  %v1892_v15 = vrot.slane %v1888_v1, 1 }
 0x18d   : > { %v4450_v54 = vpop.permute.xlu1 %1284  ;;  %v1893_v63 = vrot.slane %v1889_v56, 1 }
 0x18e   : > { %6026 = vst [vmem:[#allocation87_spill] sm:$0xff] %v4450_v54  ;;  %v4452_v40 = vpop.permute.xlu0 %1282  ;;  %v1904_v54 = vstv %s3513_s4  ;;  %s4676_s4 = sld [smem:[#allocation3 + $0xa7]] }
 0x18f   : > { %6027 = vst [vmem:[#allocation88_spill] sm:$0xff] %v4452_v40  ;;  %1846 = vrot.lane.b32.xlu1 %v1842_v4, %s3682_s30  ;;  %v1877_v4 = vsel %vm261_vm0, %v1875_v25, %v1876_v55  ;;  %v1905_v39 = vmul.f32 %v4368_v48, %v1904_v54  ;;  %v1922_v25 = vmul.f32 %v4368_v48, %v1921_v61 }
 0x190   : > { %1844 = vrot.lane.b32.xlu0 %v1843_v22, %s3682_s30  ;;  %v1906_v22 = vmul.f32 %v4365_v26, %v1904_v54  ;;  %v1894_v56 = vsel %vm261_vm0, %v1892_v15, %v1893_v63 }
 0x191   : > { %v4461_v62 = vpop.permute.xlu1 %1301  ;;  %v1909_v1 = vrot.slane %v1905_v39, 1 }
 0x192   : > { %6028 = vst [vmem:[#allocation89_spill] sm:$0xff] %v4461_v62  ;;  %v4463_v18 = vpop.permute.xlu0 %1299 }
 0x193   : > { %6029 = vst [vmem:[#allocation90_spill] sm:$0xff] %v4463_v18  ;;  %1863 = vrot.lane.b32.xlu1 %v1859_v33, %s3682_s30  ;;  %v1923_v33 = vmul.f32 %v4365_v26, %v1921_v61  ;;  %v1938_v18 = vstv %s4459_s7  ;;  %s4701_s7 = sld [smem:[#allocation3 + $0x73]] }
 0x194   : > { %1861 = vrot.lane.b32.xlu0 %v1860_v41, %s3682_s30  ;;  %v1910_v41 = vrot.slane %v1906_v22, 1  ;;  %v1939_v15 = vmul.f32 %v4368_v48, %v1938_v18 }
 0x195   : > { %v4470_v40 = vpop.permute.xlu1 %1318 }
 0x196   : > { %6030 = vst [vmem:[#allocation91_spill] sm:$0xff] %v4470_v40  ;;  %v4472_v62 = vpop.permute.xlu0 %1316  ;;  %v1911_v61 = vsel %vm261_vm0, %v1909_v1, %v1910_v41  ;;  %v1998_v1 = vstv %s3519_s9  ;;  %s4739_s9 = sld [smem:[#allocation3 + $0x45]] }
 0x197   : > { %6031 = vst [vmem:[#allocation92_spill] sm:$0xff] %v4472_v62  ;;  %1880 = vrot.lane.b32.xlu1 %v1876_v55, %s3683_s6  ;;  %v1927_v55 = vrot.slane %v1923_v33, 1  ;;  %v1940_v62 = vmul.f32 %v4365_v26, %v1938_v18 }
 0x198   : > { %1878 = vrot.lane.b32.xlu0 %v1877_v4, %s3683_s6  ;;  %v1926_v4 = vrot.slane %v1922_v25, 1  ;;  %v1943_v25 = vrot.slane %v1939_v15, 1 }
 0x199   : > { %v4480_v54 = vpop.permute.xlu1 %1335  ;;  %v1944_v33 = vrot.slane %v1940_v62, 1  ;;  %v1999_v62 = vmul.f32 %v4368_v48, %v1998_v1 }
 0x19a   : > { %6032 = vst [vmem:[#allocation93_spill] sm:$0xff] %v4480_v54  ;;  %v4482_v40 = vpop.permute.xlu0 %1333  ;;  %v1955_v54 = vstv %s3516_s8  ;;  %s4711_s8 = sld [smem:[#allocation3 + $0xa8]] }
 0x19b   : > { %6033 = vst [vmem:[#allocation94_spill] sm:$0xff] %v4482_v40  ;;  %1897 = vrot.lane.b32.xlu1 %v1893_v63, %s3683_s6  ;;  %v1928_v63 = vsel %vm261_vm0, %v1926_v4, %v1927_v55  ;;  %v1956_v18 = vmul.f32 %v4368_v48, %v1955_v54  ;;  %v1945_v4 = vsel %vm261_vm0, %v1943_v25, %v1944_v33 }
 0x19c   : > { %1895 = vrot.lane.b32.xlu0 %v1894_v56, %s3683_s6  ;;  %v1957_v56 = vmul.f32 %v4365_v26, %v1955_v54  ;;  %v2015_v54 = vstv %s4489_s10  ;;  %s4742_s10 = sld [smem:[#allocation3 + $0x14]] }
 0x19d   : > { %v4491_v22 = vpop.permute.xlu1 %1352  ;;  %v1960_v15 = vrot.slane %v1956_v18, 1  ;;  %v2017_v25 = vmul.f32 %v4365_v26, %v2015_v54  ;;  %v2016_v18 = vmul.f32 %v4368_v48, %v2015_v54 }
 0x19e   : > { %6034 = vst [vmem:[#allocation95_spill] sm:$0xff] %v4491_v22  ;;  %v4493_v39 = vpop.permute.xlu0 %1350 }
 0x19f   : > { %6035 = vst [vmem:[#allocation96_spill] sm:$0xff] %v4493_v39  ;;  %1914 = vrot.lane.b32.xlu1 %v1910_v41, %s3684_s11  ;;  %v2000_v41 = vmul.f32 %v4365_v26, %v1998_v1  ;;  %v2066_v39 = vstv %s4527_s17  ;;  %s4817_s17 = sld [smem:[#allocation3 + $0x48]] }
 0x1a0   : > { %1912 = vrot.lane.b32.xlu0 %v1911_v61, %s3684_s11  ;;  %v1961_v61 = vrot.slane %v1957_v56, 1  ;;  %v2068_v32 = vmul.f32 %v4365_v26, %v2066_v39 }
 0x1a1   : > { %v4500_v40 = vpop.permute.xlu1 %1395 }
 0x1a2   : > { %6036 = vst [vmem:[#allocation97_spill] sm:$0xff] %v4500_v40  ;;  %v4502_v22 = vpop.permute.xlu0 %1393  ;;  %v1962_v56 = vsel %vm261_vm0, %v1960_v15, %v1961_v61  ;;  %v2020_v15 = vrot.slane %v2016_v18, 2 }
 0x1a3   : > { %6037 = vst [vmem:[#allocation98_spill] sm:$0xff] %v4502_v22  ;;  %1931 = vrot.lane.b32.xlu1 %v1927_v55, %s3684_s11  ;;  %v2004_v55 = vrot.slane %v2000_v41, 2 }
 0x1a4   : > { %1929 = vrot.lane.b32.xlu0 %v1928_v63, %s3684_s11  ;;  %v2003_v63 = vrot.slane %v1999_v62, 2  ;;  %v2021_v62 = vrot.slane %v2017_v25, 2 }
 0x1a5   : > { %v4514_v40 = vpop.permute.xlu1 %1412 }
 0x1a6   : > { %6038 = vst [vmem:[#allocation99_spill] sm:$0xff] %v4514_v40  ;;  %v4516_v22 = vpop.permute.xlu0 %1410  ;;  %v2005_v41 = vsel %vm424_vm1, %v2003_v63, %v2004_v55  ;;  %v2022_v18 = vsel %vm424_vm1, %v2020_v15, %v2021_v62  ;;  %v270_v15 = vstv %s4536_s19  ;;  %s4867_s19 = sld [smem:[#allocation3 + $0x49]] }
 0x1a7   : > { %6039 = vst [vmem:[#allocation100_spill] sm:$0xff] %v4516_v22  ;;  %1948 = vrot.lane.b32.xlu1 %v1944_v33, %s3685_s14 }
 0x1a8   : > { %1946 = vrot.lane.b32.xlu0 %v1945_v4, %s3685_s14  ;;  %v2032_v4 = vstv %s4504_s12  ;;  %s4751_s12 = sld [smem:[#allocation3 + $0xa9]] }
 0x1a9   : > { %v4531_v1 = vpop.permute.xlu1 %1429  ;;  %v2034_v54 = vmul.f32 %v4365_v26, %v2032_v4  ;;  %v2033_v22 = vmul.f32 %v4368_v48, %v2032_v4 }
 0x1aa   : > { %6040 = vst [vmem:[#allocation101_spill] sm:$0xff] %v4531_v1  ;;  %v4533_v33 = vpop.permute.xlu0 %1427  ;;  %v2049_v1 = vstv %s4512_s13  ;;  %s4766_s13 = sld [smem:[#allocation3 + $0x78]] }
 0x1ab   : > { %6041 = vst [vmem:[#allocation102_spill] sm:$0xff] %v4533_v33  ;;  %1965 = vrot.lane.b32.xlu1 %v1961_v61, %s3685_s14  ;;  %v132_v61 = vstv %s4518_s15  ;;  %v2051_v63 = vmul.f32 %v4365_v26, %v2049_v1  ;;  %v2050_v25 = vmul.f32 %v4368_v48, %v2049_v1  ;;  %v2038_v4 = vrot.slane %v2034_v54, 2  ;;  %s4776_s15 = sld [smem:[#allocation3 + $0x47]] }
 0x1ac   : > { %1963 = vrot.lane.b32.xlu0 %v1962_v56, %s3685_s14  ;;  %v138_v56 = vstv %s4520_s16  ;;  %s4804_s16 = sld [smem:[#allocation3 + $0xab]] }
 0x1ad   : > { %v4544_v40 = vpop.permute.xlu1 %1446  ;;  %v2055_v54 = vrot.slane %v2051_v63, 2  ;;  %v2054_v45 = vrot.slane %v2050_v25, 2  ;;  %v2083_v25 = vstv %s4548_s20  ;;  %s4873_s20 = sld [smem:[#allocation3 + $0x19]] }
 0x1ae   : > { %6042 = vst [vmem:[#allocation103_spill] sm:$0xff] %v4544_v40  ;;  %v4546_v33 = vpop.permute.xlu0 %1444  ;;  %v2037_v40 = vrot.slane %v2033_v22, 2  ;;  %v140_v22 = vmul.f32 %v4565_v8, %v138_v56 }
 0x1af   : > { %6043 = vst [vmem:[#allocation104_spill] sm:$0xff] %v4546_v33  ;;  %2008 = vrot.lane.b32.xlu1 %v2004_v55, %s3682_s30  ;;  %v4561_v33 = vld [vmem:[%s3726_s28] sm:$0xff]  ;;  %v134_v55 = vmul.f32 %v4565_v8, %v132_v61 }
 0x1b0   : > { %2006 = vrot.lane.b32.xlu0 %v2005_v41, %s3682_s30  ;;  %v133_v19 = vmul.f32 %v4561_v33, %v132_v61  ;;  %v256_v41 = vstv %s4529_s18  ;;  %v139_v1 = vmul.f32 %v4561_v33, %v138_v56  ;;  %v271_v14 = vmul.f32 %v4561_v33, %v270_v15  ;;  %s4839_s18 = sld [smem:[#allocation3 + $0xac]] }
 0x1b1   : > { %v4569_v34 = vpop.permute.xlu1 %1463  ;;  %v4580_v61 = vmul.f32 %v4565_v8, %v256_v41  ;;  %v156_v42 = vadd.f32 %v3898_v52, %v134_v55  ;;  %v2072_v55 = vrot.slane %v2068_v32, 2 }
 0x1b2   : > { %6044 = vst [vmem:[#allocation105_spill] sm:$0xff] %v4569_v34  ;;  %v4571_v7 = vpop.permute.xlu0 %1461  ;;  %v2039_v34 = vsel %vm424_vm1, %v2037_v40, %v2038_v4  ;;  %v155_v56 = vadd.f32 %v3889_v44, %v133_v19  ;;  %v169_v27 = vadd.f32 %v3887_v43, %v139_v1  ;;  %v170_v40 = vadd.f32 %v3896_v51, %v140_v22 }
 0x1b3   : > { %6045 = vst [vmem:[#allocation106_spill] sm:$0xff] %v4571_v7  ;;  %2025 = vrot.lane.b32.xlu1 %v2021_v62, %s3682_s30  ;;  %v2067_v7 = vmul.f32 %v4368_v48, %v2066_v39  ;;  %v257_v62 = vmul.f32 %v4561_v33, %v256_v41  ;;  %v272_v39 = vmul.f32 %v4565_v8, %v270_v15  ;;  %v2100_v1 = vstv %s4558_s0  ;;  %s4875_s0 = sld [smem:[#allocation3 + $0x7d]] }
 0x1b4   : > { %2023 = vrot.lane.b32.xlu0 %v2022_v18, %s3682_s30  ;;  %v184_v44 = vadd.f32 %v3905_v58, %v156_v42  ;;  %v183_v52 = vadd.f32 %v3907_v59, %v155_v56  ;;  %v2056_v19 = vsel %vm424_vm1, %v2054_v45, %v2055_v54  ;;  %v2085_v51 = vmul.f32 %v4365_v26, %v2083_v25 }
 0x1b5   : > { %v4589_v18 = vpop.permute.xlu1 %1480  ;;  %v2071_v43 = vrot.slane %v2067_v7, 2  ;;  %v2084_v41 = vmul.f32 %v4368_v48, %v2083_v25  ;;  %v198_v22 = vadd.f32 %v3914_v5, %v170_v40  ;;  %v263_v15 = vrot.slane %v4580_v61, 1 }
 0x1b6   : > { %v4591_v63 = vpop.permute.xlu0 %1478  ;;  %v262_v58 = vrot.slane %v257_v62, 1  ;;  %v197_v32 = vadd.f32 %v3916_v6, %v169_v27  ;;  %v212_v45 = vadd.f32 %v3925_v12, %v184_v44  ;;  %v211_v7 = vadd.f32 %v3927_v13, %v183_v52 }
 0x1b7   : > { %2042 = vrot.lane.b32.xlu1 %v2038_v4, %s3683_s6  ;;  %v226_v5 = vadd.f32 %v3934_v20, %v198_v22  ;;  %v275_v4 = vrot.slane %v271_v14, 1  ;;  %v2102_v61 = vmul.f32 %v4365_v26, %v2100_v1  ;;  %v2101_v56 = vmul.f32 %v4368_v48, %v2100_v1 }
 0x1b8   : > { %2040 = vrot.lane.b32.xlu0 %v2039_v34, %s3683_s6  ;;  %v276_v34 = vrot.slane %v272_v39, 1  ;;  %v2073_v6 = vsel %vm424_vm1, %v2071_v43, %v2072_v55  ;;  %v2089_v12 = vrot.slane %v2085_v51, 2  ;;  %v2088_v27 = vrot.slane %v2084_v41, 2 }
 0x1b9   : > { %v4610_v42 = vpop.permute.xlu1 %1497  ;;  %v2117_v13 = vstv %s4584_s22  ;;  %v225_v62 = vadd.f32 %v3936_v21, %v197_v32  ;;  %v264_v20 = vsel %vm261_vm0, %v262_v58, %v263_v15  ;;  %v240_v25 = vadd.f32 %v3944_v29, %v212_v45  ;;  %s4884_s22 = sld [smem:[#allocation3 + $0xad]] }
 0x1ba   : > { %v4612_v59 = vpop.permute.xlu0 %1495  ;;  %v239_v40 = vadd.f32 %v3946_v30, %v211_v7  ;;  %v254_v39 = vadd.f32 %v3953_v37, %v226_v5  ;;  %v419_v44 = vstv %s4598_s23  ;;  %v2106_v21 = vrot.slane %v2102_v61, 2  ;;  %s4892_s23 = sld [smem:[#allocation3 + $0x1e]] }
 0x1bb   : > { %2059 = vrot.lane.b32.xlu1 %v2055_v54, %s3683_s6  ;;  %v253_v52 = vadd.f32 %v3955_v38, %v225_v62  ;;  %v2119_v43 = vmul.f32 %v4365_v26, %v2117_v13  ;;  %v277_v51 = vsel %vm261_vm0, %v275_v4, %v276_v34  ;;  %v2090_v29 = vsel %vm424_vm1, %v2088_v27, %v2089_v12 }
 0x1bc   : > { %2057 = vrot.lane.b32.xlu0 %v2056_v19, %s3683_s6  ;;  %v2105_v19 = vrot.slane %v2101_v56, 2  ;;  %v2118_v30 = vmul.f32 %v4368_v48, %v2117_v13  ;;  %v268_v41 = vadd.f32 %v263_v15, %v240_v25  ;;  %v267_v1 = vadd.f32 %v264_v20, %v239_v40 }
 0x1bd   : > { %v4632_v14 = vpop.permute.xlu1 %1514  ;;  %v4655_v22 = vmul.f32 %v4565_v8, %v419_v44  ;;  %v433_v58 = vstv %s4619_s25  ;;  %v281_v32 = vadd.f32 %v276_v34, %v254_v39  ;;  %v280_v45 = vadd.f32 %v277_v51, %v253_v52  ;;  %s4916_s25 = sld [smem:[#allocation3 + $0x82]] }
 0x1be   : > { %v4634_v54 = vpop.permute.xlu0 %1512  ;;  %v2107_v7 = vsel %vm424_vm1, %v2105_v19, %v2106_v21  ;;  %v2123_v5 = vrot.slane %v2119_v43, 2  ;;  %v2122_v4 = vrot.slane %v2118_v30, 2  ;;  %v2177_v56 = vstv %s4628_s26  ;;  %s4943_s26 = sld [smem:[#allocation3 + $0xae]] }
 0x1bf   : > { %2076 = vrot.lane.b32.xlu1 %v2072_v55, %s3684_s11  ;;  %v2160_v55 = vstv %s4614_s24  ;;  %v420_v27 = vmul.f32 %v4561_v33, %v419_v44  ;;  %v4669_v34 = vmul.f32 %v4565_v8, %v433_v58  ;;  %v297_v20 = vadd.f32 %v3964_v47, %v267_v1  ;;  %s4908_s24 = sld [smem:[#allocation3 + $0x4a]] }
 0x1c0   : > { %2074 = vrot.lane.b32.xlu0 %v2073_v6, %s3684_s11  ;;  %v2162_v61 = vmul.f32 %v4365_v26, %v2160_v55  ;;  %v2161_v15 = vmul.f32 %v4368_v48, %v2160_v55  ;;  %v298_v6 = vadd.f32 %v3962_v46, %v268_v41  ;;  %v315_v25 = vadd.f32 %v3969_v50, %v281_v32 }
 0x1c1   : > { %v4649_v37 = vpop.permute.xlu1 %1557  ;;  %v314_v46 = vadd.f32 %v3971_v53, %v280_v45  ;;  %v426_v39 = vrot.slane %v4655_v22, 2  ;;  %v2179_v44 = vmul.f32 %v4365_v26, %v2177_v56  ;;  %v2178_v52 = vmul.f32 %v4368_v48, %v2177_v56 }
 0x1c2   : > { %v4651_v38 = vpop.permute.xlu0 %1555  ;;  %v332_v40 = vadd.f32 %v3982_v57, %v298_v6  ;;  %v2124_v19 = vsel %vm424_vm1, %v2122_v4, %v2123_v5  ;;  %v2166_v47 = vrot.slane %v2162_v61, 3  ;;  %v2165_v43 = vrot.slane %v2161_v15, 3 }
 0x1c3   : > { %2093 = vrot.lane.b32.xlu1 %v2089_v12, %s3684_s11  ;;  %v434_v12 = vmul.f32 %v4561_v33, %v433_v58  ;;  %v2194_v50 = vstv %s4647_s27  ;;  %v331_v53 = vadd.f32 %v3984_v60, %v297_v20  ;;  %v425_v57 = vrot.slane %v420_v27, 2  ;;  %s4968_s27 = sld [smem:[#allocation3 + $0x23]] }
 0x1c4   : > { %2091 = vrot.lane.b32.xlu0 %v2090_v29, %s3684_s11  ;;  %v439_v51 = vrot.slane %v4669_v34, 2  ;;  %v349_v55 = vadd.f32 %v3990_v2, %v315_v25  ;;  %v348_v41 = vadd.f32 %v3992_v3, %v314_v46  ;;  %v366_v1 = vadd.f32 %v3998_v9, %v332_v40 }
 0x1c5   : > { %v4672_v13 = vpop.permute.xlu1 %1574  ;;  %v582_v22 = vstv %s4658_s29  ;;  %v365_v58 = vadd.f32 %v4000_v10, %v331_v53  ;;  %v2183_v60 = vrot.slane %v2179_v44, 3  ;;  %v2182_v32 = vrot.slane %v2178_v52, 3  ;;  %s4986_s29 = sld [smem:[#allocation3 + $0x87]] }
 0x1c6   : > { %v4674_v62 = vpop.permute.xlu0 %1572  ;;  %v2196_v45 = vmul.f32 %v4365_v26, %v2194_v50  ;;  %v383_v2 = vadd.f32 %v4006_v16, %v349_v55  ;;  %v382_v3 = vadd.f32 %v4008_v17, %v348_v41  ;;  %v2167_v9 = vsel %vm587_vm2, %v2165_v43, %v2166_v47 }
 0x1c7   : > { %2110 = vrot.lane.b32.xlu1 %v2106_v21, %s3685_s14  ;;  %v438_v21 = vrot.slane %v434_v12, 2  ;;  %v400_v10 = vadd.f32 %v4014_v23, %v366_v1  ;;  %v583_v4 = vmul.f32 %v4561_v33, %v582_v22  ;;  %v2211_v16 = vstv %s4676_s4  ;;  %s4995_s4 = sld [smem:[#allocation3 + $0x4c]] }
 0x1c8   : > { %2108 = vrot.lane.b32.xlu0 %v2107_v7, %s3685_s14  ;;  %v2195_v7 = vmul.f32 %v4368_v48, %v2194_v50  ;;  %v399_v17 = vadd.f32 %v4016_v24, %v365_v58  ;;  %v417_v56 = vadd.f32 %v4022_v28, %v383_v2  ;;  %v416_v6 = vadd.f32 %v4024_v31, %v382_v3 }
 0x1c9   : > { %v4693_v29 = vpop.permute.xlu1 %1591  ;;  %v427_v27 = vsel %vm424_vm1, %v425_v57, %v426_v39  ;;  %v440_v23 = vsel %vm424_vm1, %v438_v21, %v439_v51  ;;  %v2184_v34 = vsel %vm587_vm2, %v2182_v32, %v2183_v60  ;;  %v2200_v12 = vrot.slane %v2196_v45, 3 }
 0x1ca   : > { %v4695_v30 = vpop.permute.xlu0 %1589  ;;  %v2199_v20 = vrot.slane %v2195_v7, 3  ;;  %v2213_v25 = vmul.f32 %v4365_v26, %v2211_v16  ;;  %v2212_v24 = vmul.f32 %v4368_v48, %v2211_v16  ;;  %v2228_v28 = vstv %s4689_s5  ;;  %v6048_v16 = vld [vmem:[#allocation9_spill] sm:$0xff]  ;;  %s5007_s5 = sld [smem:[#allocation3 + $0x28]] }
 0x1cb   : > { %2127 = vrot.lane.b32.xlu1 %v2123_v5, %s3685_s14  ;;  %v4715_v5 = vmul.f32 %v4565_v8, %v582_v22  ;;  %v431_v46 = vadd.f32 %v426_v39, %v400_v10  ;;  %v588_v40 = vrot.slane %v583_v4, 3  ;;  %v443_v43 = vadd.f32 %v440_v23, %v416_v6  ;;  %v6047_v4 = vld [vmem:[#allocation7_spill] sm:$0xff]  ;;  %v6049_v6 = vld [vmem:[#allocation8_spill] sm:$0xff]  ;;  %v6050_v23 = vld [vmem:[#allocation10_spill] sm:$0xff] }
 0x1cc   : > { %2125 = vrot.lane.b32.xlu0 %v2124_v19, %s3685_s14  ;;  %v430_v19 = vadd.f32 %v427_v27, %v399_v17  ;;  %v596_v50 = vstv %s4701_s7  ;;  %v2230_v39 = vmul.f32 %v4365_v26, %v2228_v28  ;;  %v2229_v57 = vmul.f32 %v4368_v48, %v2228_v28  ;;  %v6051_v28 = vld [vmem:[#allocation11_spill] sm:$0xff]  ;;  %s5016_s7 = sld [smem:[#allocation3 + $0xb0]] }
 0x1cd   : > { %v4718_v61 = vpop.permute.xlu1 %1608  ;;  %v589_v31 = vrot.slane %v4715_v5, 3  ;;  %v461_v53 = vadd.f32 %v4032_v35, %v431_v46  ;;  %v2201_v21 = vsel %vm587_vm2, %v2199_v20, %v2200_v12  ;;  %v2217_v55 = vrot.slane %v2213_v25, 3 }
 0x1ce   : > { %v4720_v15 = vpop.permute.xlu0 %1606  ;;  %v2216_v41 = vrot.slane %v2212_v24, 3  ;;  %v2245_v1 = vstv %s4711_s8  ;;  %v598_v22 = vmul.f32 %v4565_v8, %v596_v50  ;;  %v477_v45 = vadd.f32 %v4046_v49, %v443_v43  ;;  %s5033_s8 = sld [smem:[#allocation3 + $0x8c]] }
 0x1cf   : > { %2170 = vrot.lane.b32.xlu1 %v2166_v47, %s3682_s30  ;;  %v444_v47 = vadd.f32 %v439_v51, %v417_v56  ;;  %v460_v51 = vadd.f32 %v4034_v36, %v430_v19  ;;  %v590_v35 = vsel %vm587_vm2, %v588_v40, %v589_v31  ;;  %v495_v2 = vadd.f32 %v4055_v11, %v461_v53  ;;  %v6046_v36 = vld [vmem:[#allocation6_spill] sm:$0xff]  ;;  %v6052_v40 = vld [vmem:[#allocation13_spill] sm:$0xff] }
 0x1d0   : > { %2168 = vrot.lane.b32.xlu0 %v2167_v9, %s3682_s30  ;;  %v597_v3 = vmul.f32 %v4561_v33, %v596_v50  ;;  %v2234_v7 = vrot.slane %v2230_v39, 3  ;;  %v2233_v10 = vrot.slane %v2229_v57, 3  ;;  %v2218_v17 = vsel %vm587_vm2, %v2216_v41, %v2217_v55  ;;  %v6053_v50 = vld [vmem:[#allocation12_spill] sm:$0xff]  ;;  %v6054_v39 = vld [vmem:[#allocation14_spill] sm:$0xff] }
 0x1d1   : > { %v4735_v44 = vpop.permute.xlu1 %1625  ;;  %v478_v32 = vadd.f32 %v4044_v0, %v444_v47  ;;  %v494_v9 = vadd.f32 %v6046_v36, %v460_v51  ;;  %v2247_v0 = vmul.f32 %v4365_v26, %v2245_v1  ;;  %v529_v11 = vadd.f32 %v6048_v16, %v495_v2 }
 0x1d2   : > { %v4737_v52 = vpop.permute.xlu0 %1623  ;;  %v2246_v56 = vmul.f32 %v4368_v48, %v2245_v1  ;;  %v511_v27 = vadd.f32 %v6049_v6, %v477_v45  ;;  %v2262_v24 = vstv %s4739_s9  ;;  %v601_v47 = vrot.slane %v597_v3, 3  ;;  %v6055_v45 = vld [vmem:[#allocation15_spill] sm:$0xff]  ;;  %s5045_s9 = sld [smem:[#allocation3 + $0x4d]] }
 0x1d3   : > { %2187 = vrot.lane.b32.xlu1 %v2183_v60, %s3682_s30  ;;  %v512_v49 = vadd.f32 %v6047_v4, %v478_v32  ;;  %v563_v19 = vadd.f32 %v6052_v40, %v529_v11  ;;  %v745_v43 = vstv %s4742_s10  ;;  %v2251_v41 = vrot.slane %v2247_v0, 3  ;;  %v6056_v0 = vld [vmem:[#allocation16_spill] sm:$0xff]  ;;  %s5057_s10 = sld [smem:[#allocation3 + $0x2d]] }
 0x1d4   : > { %2185 = vrot.lane.b32.xlu0 %v2184_v34, %s3682_s30  ;;  %v528_v34 = vadd.f32 %v6050_v23, %v494_v9  ;;  %v545_v53 = vadd.f32 %v6053_v50, %v511_v27  ;;  %v2250_v1 = vrot.slane %v2246_v56, 3  ;;  %v2264_v51 = vmul.f32 %v4365_v26, %v2262_v24 }
 0x1d5   : > { %v4758_v58 = vpop.permute.xlu1 %1642  ;;  %v546_v46 = vadd.f32 %v6051_v28, %v512_v49  ;;  %v2279_v32 = vstv %s4751_s12  ;;  %v4798_v3 = vmul.f32 %v4565_v8, %v745_v43  ;;  %v594_v9 = vadd.f32 %v589_v31, %v563_v19  ;;  %v6058_v19 = vld [vmem:[#allocation18_spill] sm:$0xff]  ;;  %s5068_s12 = sld [smem:[#allocation3 + $0xb1]] }
 0x1d6   : > { %v4760_v60 = vpop.permute.xlu0 %1640  ;;  %v562_v57 = vadd.f32 %v6054_v39, %v528_v34  ;;  %v579_v4 = vadd.f32 %v6056_v0, %v545_v53  ;;  %v759_v49 = vstv %s4766_s13  ;;  %v2281_v11 = vmul.f32 %v4365_v26, %v2279_v32  ;;  %v6059_v53 = vld [vmem:[#allocation19_spill] sm:$0xff]  ;;  %s5085_s13 = sld [smem:[#allocation3 + $0x91]] }
 0x1d7   : > { %2204 = vrot.lane.b32.xlu1 %v2200_v12, %s3683_s6  ;;  %v602_v12 = vrot.slane %v598_v22, 3  ;;  %v2263_v22 = vmul.f32 %v4368_v48, %v2262_v24  ;;  %v580_v2 = vadd.f32 %v6055_v45, %v546_v46  ;;  %v2252_v56 = vsel %vm587_vm2, %v2250_v1, %v2251_v41  ;;  %v6057_v46 = vld [vmem:[#allocation17_spill] sm:$0xff] }
 0x1d8   : > { %2202 = vrot.lane.b32.xlu0 %v2201_v21, %s3683_s6  ;;  %v2235_v21 = vsel %vm587_vm2, %v2233_v10, %v2234_v7  ;;  %v593_v16 = vadd.f32 %v590_v35, %v562_v57  ;;  %v2268_v6 = vrot.slane %v2264_v51, 3  ;;  %v2322_v5 = vstv %s4776_s15  ;;  %v6060_v57 = vld [vmem:[#allocation20_spill] sm:$0xff]  ;;  %v6061_v1 = vld [vmem:[#allocation21_spill] sm:$0xff]  ;;  %s5097_s15 = sld [smem:[#allocation3 + $0x4e]] }
 0x1d9   : > { %v4780_v20 = vpop.permute.xlu1 %1659  ;;  %v603_v10 = vsel %vm587_vm2, %v601_v47, %v602_v12  ;;  %v2267_v27 = vrot.slane %v2263_v22, 3  ;;  %v607_v31 = vadd.f32 %v602_v12, %v580_v2  ;;  %v752_v23 = vrot.slane %v4798_v3, 4  ;;  %v6063_v2 = vld [vmem:[#allocation23_spill] sm:$0xff]  ;;  %v6076_v3 = vld [vmem:[#allocation34_spill] sm:$0xff] }
 0x1da   : > { %v4782_v25 = vpop.permute.xlu0 %1657  ;;  %v746_v35 = vmul.f32 %v4561_v33, %v745_v43  ;;  %v606_v28 = vadd.f32 %v603_v10, %v579_v4  ;;  %v624_v40 = vadd.f32 %v6057_v46, %v594_v9  ;;  %v623_v47 = vadd.f32 %v6058_v19, %v593_v16 }
 0x1db   : > { %2221 = vrot.lane.b32.xlu1 %v2217_v55, %s3683_s6  ;;  %v760_v50 = vmul.f32 %v4561_v33, %v759_v49  ;;  %v641_v12 = vadd.f32 %v6059_v53, %v607_v31  ;;  %v2324_v39 = vmul.f32 %v4365_v26, %v2322_v5  ;;  %v2269_v22 = vsel %vm587_vm2, %v2267_v27, %v2268_v6  ;;  %v6062_v33 = vld [vmem:[#allocation22_spill] sm:$0xff] }
 0x1dc   : > { %2219 = vrot.lane.b32.xlu0 %v2218_v17, %s3683_s6  ;;  %v2280_v17 = vmul.f32 %v4368_v48, %v2279_v32  ;;  %v658_v51 = vadd.f32 %v6061_v1, %v624_v40  ;;  %v2323_v32 = vmul.f32 %v4368_v48, %v2322_v5  ;;  %v657_v45 = vadd.f32 %v6062_v33, %v623_v47  ;;  %v6066_v5 = vld [vmem:[#allocation26_spill] sm:$0xff] }
 0x1dd   : > { %v4800_v36 = vpop.permute.xlu1 %1676  ;;  %v751_v9 = vrot.slane %v746_v35, 4  ;;  %v2339_v4 = vstv %s4804_s16  ;;  %v764_v27 = vrot.slane %v760_v50, 4  ;;  %v2328_v40 = vrot.slane %v2324_v39, 4  ;;  %v6072_v1 = vld [vmem:[#allocation30_spill] sm:$0xff]  ;;  %s5120_s16 = sld [smem:[#allocation3 + $0xb2]] }
 0x1de   : > { %v4802_v55 = vpop.permute.xlu0 %1674  ;;  %v2284_v43 = vrot.slane %v2280_v17, 3  ;;  %v691_v31 = vadd.f32 %v6066_v5, %v657_v45  ;;  %v2327_v19 = vrot.slane %v2323_v32, 4  ;;  %v2341_v47 = vmul.f32 %v4365_v26, %v2339_v4  ;;  %v6074_v45 = vld [vmem:[#allocation32_spill] sm:$0xff] }
 0x1df   : > { %2238 = vrot.lane.b32.xlu1 %v2234_v7, %s3684_s11  ;;  %v4822_v7 = vmul.f32 %v4565_v8, %v759_v49  ;;  %v2285_v8 = vrot.slane %v2281_v11, 3  ;;  %v6064_v49 = vld [vmem:[#allocation24_spill] sm:$0xff]  ;;  %v6065_v11 = vld [vmem:[#allocation25_spill] sm:$0xff]  ;;  %v2340_v53 = vmul.f32 %v4368_v48, %v2339_v4  ;;  %v753_v50 = vsel %vm750_vm3, %v751_v9, %v752_v23 }
 0x1e0   : > { %2236 = vrot.lane.b32.xlu0 %v2235_v21, %s3684_s11  ;;  %v640_v21 = vadd.f32 %v6060_v57, %v606_v28  ;;  %v692_v17 = vadd.f32 %v6065_v11, %v658_v51  ;;  %v6067_v28 = vld [vmem:[#allocation27_spill] sm:$0xff]  ;;  %v6068_v57 = vld [vmem:[#allocation28_spill] sm:$0xff]  ;;  %v725_v51 = vadd.f32 %v6072_v1, %v691_v31  ;;  %v2329_v4 = vsel %vm750_vm3, %v2327_v19, %v2328_v40 }
 0x1e1   : > { %v4824_v34 = vpop.permute.xlu1 %1705  ;;  %v2286_v35 = vsel %vm587_vm2, %v2284_v43, %v2285_v8  ;;  %v6071_v43 = vld [vmem:[#allocation29_spill] sm:$0xff]  ;;  %v2373_v11 = vstv %s4839_s18  ;;  %v2390_v1 = vstv %s4867_s19  ;;  %s5144_s18 = sld [smem:[#allocation3 + $0x4f]]  ;;  %s5146_s19 = sld [smem:[#allocation3 + $0x51]] }
 0x1e2   : > { %v4826_v24 = vpop.permute.xlu0 %1703  ;;  %v674_v16 = vadd.f32 %v6064_v49, %v640_v21  ;;  %v726_v39 = vadd.f32 %v6071_v43, %v692_v17  ;;  %v2345_v49 = vrot.slane %v2341_v47, 4  ;;  %v756_v5 = vadd.f32 %v753_v50, %v725_v51  ;;  %v6075_v47 = vld [vmem:[#allocation33_spill] sm:$0xff]  ;;  %v6078_v50 = vld [vmem:[#allocation36_spill] sm:$0xff] }
 0x1e3   : > { %2255 = vrot.lane.b32.xlu1 %v2251_v41, %s3684_s11  ;;  %v675_v41 = vadd.f32 %v6063_v2, %v641_v12  ;;  %v2356_v12 = vstv %s4817_s17  ;;  %v2375_v19 = vmul.f32 %v4365_v26, %v2373_v11  ;;  %s5132_s17 = sld [smem:[#allocation3 + $0x32]] }
 0x1e4   : > { %2253 = vrot.lane.b32.xlu0 %v2252_v56, %s3684_s11  ;;  %v765_v56 = vrot.slane %v4822_v7, 4  ;;  %v708_v7 = vadd.f32 %v6068_v57, %v674_v16  ;;  %v2357_v9 = vmul.f32 %v4368_v48, %v2356_v12  ;;  %v2344_v16 = vrot.slane %v2340_v53, 4  ;;  %v6077_v57 = vld [vmem:[#allocation35_spill] sm:$0xff] }
 0x1e5   : > { %v4843_v10 = vpop.permute.xlu1 %1719  ;;  %v709_v46 = vadd.f32 %v6067_v28, %v675_v41  ;;  %v2358_v41 = vmul.f32 %v4365_v26, %v2356_v12  ;;  %v2374_v12 = vmul.f32 %v4368_v48, %v2373_v11  ;;  %v6081_v26 = vld [vmem:[#allocation37_spill] sm:$0xff]  ;;  %v917_v48 = vstv %s4875_s0  ;;  %s5163_s0 = sld [smem:[#allocation3 + $0xb5]] }
 0x1e6   : > { %v4845_v0 = vpop.permute.xlu0 %1717  ;;  %v766_v33 = vsel %vm750_vm3, %v764_v27, %v765_v56  ;;  %v742_v2 = vadd.f32 %v6074_v45, %v708_v7  ;;  %v6083_v45 = vld [vmem:[#allocation39_spill] sm:$0xff] }
 0x1e7   : > { %2272 = vrot.lane.b32.xlu1 %v2268_v6, %s3685_s14  ;;  %v2378_v11 = vrot.slane %v2374_v12, 4 }
 0x1e8   : > { %2270 = vrot.lane.b32.xlu0 %v2269_v22, %s3685_s14  ;;  %v6073_v22 = vld [vmem:[#allocation31_spill] sm:$0xff]  ;;  %v769_v28 = vadd.f32 %v766_v33, %v742_v2  ;;  %v911_v33 = vstv %s4873_s20  ;;  %s5153_s20 = sld [smem:[#allocation3 + $0x37]] }
 0x1e9   : > { %v4863_v21 = vpop.permute.xlu1 %1733  ;;  %v743_v32 = vadd.f32 %v6073_v22, %v709_v46  ;;  %v2362_v46 = vrot.slane %v2358_v41, 4  ;;  %v6082_v22 = vld [vmem:[#allocation38_spill] sm:$0xff]  ;;  %v6084_v41 = vld [vmem:[#allocation40_spill] sm:$0xff] }
 0x1ea   : > { %6069 = vst [vmem:[#allocation6_spill] sm:$0xff] %v4863_v21  ;;  %v4865_v6 = vpop.permute.xlu0 %1731 }
 0x1eb   : > { %6070 = vst [vmem:[#allocation7_spill] sm:$0xff] %v4865_v6  ;;  %2289 = vrot.lane.b32.xlu1 %v2285_v8, %s3685_s14  ;;  %v757_v8 = vadd.f32 %v752_v23, %v726_v39  ;;  %v770_v31 = vadd.f32 %v765_v56, %v743_v32  ;;  %v786_v23 = vadd.f32 %v6076_v3, %v756_v5 }
 0x1ec   : > { %2287 = vrot.lane.b32.xlu0 %v2286_v35, %s3685_s14  ;;  %v2361_v35 = vrot.slane %v2357_v9, 4  ;;  %v2346_v56 = vsel %vm750_vm3, %v2344_v16, %v2345_v49  ;;  %v2379_v16 = vrot.slane %v2375_v19, 4 }
 0x1ed   : > { %v4886_v17 = vpop.permute.xlu1 %1747  ;;  %v787_v53 = vadd.f32 %v6075_v47, %v757_v8  ;;  %v804_v7 = vadd.f32 %v6077_v57, %v770_v31  ;;  %v820_v32 = vadd.f32 %v6082_v22, %v786_v23  ;;  %v4922_v8 = vld [vmem:[%s3726_s28 + $0x28] sm:$0xff]  ;;  %v4926_v31 = vld [vmem:[%s3726_s28 + $0x20] sm:$0xff]  ;;  %v2407_v47 = vstv %s4884_s22  ;;  %v4932_v23 = vld [vmem:[%s3726_s28 + $0x18] sm:$0xff]  ;;  %s5170_s22 = sld [smem:[#allocation3 + $0xb3]] }
 0x1ee   : > { %v4888_v27 = vpop.permute.xlu0 %1745  ;;  %v2392_v5 = vmul.f32 %v4922_v8, %v2390_v1  ;;  %v6088_v57 = vld [vmem:[#allocation42_spill] sm:$0xff]  ;;  %v6091_v22 = vld [vmem:[#allocation45_spill] sm:$0xff] }
 0x1ef   : > { %2332 = vrot.lane.b32.xlu1 %v2328_v40, %s3682_s30  ;;  %v803_v40 = vadd.f32 %v6078_v50, %v769_v28  ;;  %v821_v51 = vadd.f32 %v6081_v26, %v787_v53  ;;  %v838_v2 = vadd.f32 %v6083_v45, %v804_v7  ;;  %v2391_v28 = vmul.f32 %v4926_v31, %v2390_v1  ;;  %v6085_v53 = vld [vmem:[#allocation41_spill] sm:$0xff]  ;;  %v6089_v50 = vld [vmem:[#allocation43_spill] sm:$0xff]  ;;  %v6090_v1 = vld [vmem:[#allocation44_spill] sm:$0xff] }
 0x1f0   : > { %2330 = vrot.lane.b32.xlu0 %v2329_v4, %s3682_s30  ;;  %v2363_v4 = vsel %vm750_vm3, %v2361_v35, %v2362_v46  ;;  %v854_v7 = vadd.f32 %v6088_v57, %v820_v32  ;;  %v6092_v32 = vld [vmem:[#allocation46_spill] sm:$0xff] }
 0x1f1   : > { %v4903_v43 = vpop.permute.xlu1 %1761  ;;  %v837_v9 = vadd.f32 %v6084_v41, %v803_v40  ;;  %v855_v3 = vadd.f32 %v6085_v53, %v821_v51  ;;  %v872_v40 = vadd.f32 %v6089_v50, %v838_v2  ;;  %v919_v51 = vmul.f32 %v4932_v23, %v917_v48 }
 0x1f2   : > { %6079 = vst [vmem:[#allocation9_spill] sm:$0xff] %v4903_v43  ;;  %v4905_v39 = vpop.permute.xlu0 %1759  ;;  %v1035_v41 = vstv %s4892_s23  ;;  %v2408_v53 = vmul.f32 %v4926_v31, %v2407_v47  ;;  %v888_v57 = vadd.f32 %v6092_v32, %v854_v7  ;;  %v2380_v2 = vsel %vm750_vm3, %v2378_v11, %v2379_v16  ;;  %s5175_s23 = sld [smem:[#allocation3 + $0x96]] }
 0x1f3   : > { %6080 = vst [vmem:[#allocation8_spill] sm:$0xff] %v4905_v39  ;;  %2349 = vrot.lane.b32.xlu1 %v2345_v49, %s3682_s30  ;;  %v913_v49 = vmul.f32 %v4932_v23, %v911_v33  ;;  %v871_v26 = vadd.f32 %v6090_v1, %v837_v9  ;;  %v889_v45 = vadd.f32 %v6091_v22, %v855_v3  ;;  %v2396_v9 = vrot.slane %v2392_v5, 4  ;;  %v6093_v1 = vld [vmem:[#allocation47_spill] sm:$0xff]  ;;  %v6094_v22 = vld [vmem:[#allocation48_spill] sm:$0xff] }
 0x1f4   : > { %2347 = vrot.lane.b32.xlu0 %v2346_v56, %s3682_s30  ;;  %v4936_v56 = vld [vmem:[%s3726_s28 + $0x10] sm:$0xff]  ;;  %v2395_v50 = vrot.slane %v2391_v28, 4  ;;  %v906_v39 = vadd.f32 %v6093_v1, %v872_v40  ;;  %v1048_v5 = vstv %s4916_s25  ;;  %v2412_v28 = vrot.slane %v2408_v53, 4  ;;  %s5218_s25 = sld [smem:[#allocation3 + $0x9b]] }
 0x1f5   : > { %v912_v35 = vmul.f32 %v4936_v56, %v911_v33  ;;  %v4939_v19 = vpop.permute.xlu1 %1775  ;;  %v2409_v33 = vmul.f32 %v4922_v8, %v2407_v47  ;;  %v918_v3 = vmul.f32 %v4936_v56, %v917_v48  ;;  %v905_v43 = vadd.f32 %v6094_v22, %v871_v26 }
 0x1f6   : > { %6086 = vst [vmem:[#allocation10_spill] sm:$0xff] %v4939_v19  ;;  %v4941_v12 = vpop.permute.xlu0 %1773  ;;  %v4966_v19 = vmul.f32 %v4932_v23, %v1035_v41  ;;  %v915_v11 = vadd.f32 %v913_v49, %v889_v45  ;;  %v2397_v7 = vsel %vm750_vm3, %v2395_v50, %v2396_v9  ;;  %v921_v32 = vadd.f32 %v919_v51, %v906_v39  ;;  %v6099_v45 = vld [vmem:[#allocation49_spill] sm:$0xff] }
 0x1f7   : > { %6087 = vst [vmem:[#allocation11_spill] sm:$0xff] %v4941_v12  ;;  %2366 = vrot.lane.b32.xlu1 %v2362_v46, %s3683_s6  ;;  %v2424_v12 = vstv %s4908_s24  ;;  %v2413_v48 = vrot.slane %v2409_v33, 4  ;;  %v914_v47 = vadd.f32 %v912_v35, %v888_v57  ;;  %v920_v1 = vadd.f32 %v918_v3, %v905_v43  ;;  %v6100_v33 = vld [vmem:[#allocation50_spill] sm:$0xff]  ;;  %v6102_v43 = vld [vmem:[#allocation52_spill] sm:$0xff]  ;;  %s5203_s24 = sld [smem:[#allocation3 + $0x52]] }
 0x1f8   : > { %2364 = vrot.lane.b32.xlu0 %v2363_v4, %s3683_s6  ;;  %v2426_v40 = vmul.f32 %v4922_v8, %v2424_v12  ;;  %v2425_v26 = vmul.f32 %v4926_v31, %v2424_v12  ;;  %v1036_v22 = vmul.f32 %v4936_v56, %v1035_v41  ;;  %v1050_v35 = vmul.f32 %v4932_v23, %v1048_v5  ;;  %v6101_v12 = vld [vmem:[#allocation51_spill] sm:$0xff] }
 0x1f9   : > { %v4960_v46 = vpop.permute.xlu1 %1789  ;;  %v934_v53 = vadd.f32 %v6100_v33, %v914_v47  ;;  %v1049_v57 = vmul.f32 %v4936_v56, %v1048_v5  ;;  %v949_v39 = vadd.f32 %v6101_v12, %v921_v32  ;;  %v948_v51 = vadd.f32 %v6102_v43, %v920_v1  ;;  %v6103_v5 = vld [vmem:[#allocation53_spill] sm:$0xff]  ;;  %v6104_v32 = vld [vmem:[#allocation54_spill] sm:$0xff]  ;;  %v6105_v1 = vld [vmem:[#allocation55_spill] sm:$0xff] }
 0x1fa   : > { %6095 = vst [vmem:[#allocation13_spill] sm:$0xff] %v4960_v46  ;;  %v4962_v4 = vpop.permute.xlu0 %1787  ;;  %v2414_v41 = vsel %vm750_vm3, %v2412_v28, %v2413_v48  ;;  %v2430_v50 = vrot.slane %v2426_v40, 4  ;;  %v2429_v3 = vrot.slane %v2425_v26, 4  ;;  %v6108_v28 = vld [vmem:[#allocation56_spill] sm:$0xff]  ;;  %v1040_v26 = vrot.slane %v1036_v22, 1 }
 0x1fb   : > { %6096 = vst [vmem:[#allocation12_spill] sm:$0xff] %v4962_v4  ;;  %2383 = vrot.lane.b32.xlu1 %v2379_v16, %s3683_s6  ;;  %v2441_v16 = vstv %s4943_s26  ;;  %v962_v33 = vadd.f32 %v6104_v32, %v934_v53  ;;  %v977_v12 = vadd.f32 %v6105_v1, %v949_v39  ;;  %v976_v40 = vadd.f32 %v6108_v28, %v948_v51  ;;  %v6111_v53 = vld [vmem:[#allocation59_spill] sm:$0xff]  ;;  %v6113_v28 = vld [vmem:[#allocation61_spill] sm:$0xff]  ;;  %s5235_s26 = sld [smem:[#allocation3 + $0xb6]] }
 0x1fc   : > { %2381 = vrot.lane.b32.xlu0 %v2380_v2, %s3683_s6  ;;  %v935_v2 = vadd.f32 %v6099_v45, %v915_v11  ;;  %v2443_v11 = vmul.f32 %v4922_v8, %v2441_v16  ;;  %v2442_v47 = vmul.f32 %v4926_v31, %v2441_v16  ;;  %v1054_v46 = vrot.slane %v1050_v35, 1  ;;  %v6109_v16 = vld [vmem:[#allocation57_spill] sm:$0xff] }
 0x1fd   : > { %v4977_v4 = vpop.permute.xlu1 %1803  ;;  %v1005_v32 = vadd.f32 %v6111_v53, %v977_v12  ;;  %v1053_v39 = vrot.slane %v1049_v57, 1  ;;  %v2431_v22 = vsel %vm750_vm3, %v2429_v3, %v2430_v50  ;;  %v1823_v21 = vstv %s5218_s25  ;;  %s5640_s25 = sld [smem:[#allocation3 + $0x5c]] }
 0x1fe   : > { %6097 = vst [vmem:[#allocation14_spill] sm:$0xff] %v4977_v4  ;;  %v4979_v49 = vpop.permute.xlu0 %1801  ;;  %v963_v45 = vadd.f32 %v6103_v5, %v935_v2  ;;  %v6110_v2 = vld [vmem:[#allocation58_spill] sm:$0xff]  ;;  %v2447_v35 = vrot.slane %v2443_v11, 4  ;;  %v2446_v51 = vrot.slane %v2442_v47, 4  ;;  %v6118_v11 = vld [vmem:[#allocation64_spill] sm:$0xff] }
 0x1ff   : > { %6098 = vst [vmem:[#allocation15_spill] sm:$0xff] %v4979_v49  ;;  %2400 = vrot.lane.b32.xlu1 %v2396_v9, %s3684_s11  ;;  %v1041_v9 = vrot.slane %v4966_v19, 1  ;;  %v1197_v49 = vstv %s4968_s27  ;;  %v990_v5 = vadd.f32 %v6110_v2, %v962_v33  ;;  %v6112_v19 = vld [vmem:[#allocation60_spill] sm:$0xff]  ;;  %s5253_s27 = sld [smem:[#allocation3 + $0x53]] }
 0x200   : > { %2398 = vrot.lane.b32.xlu0 %v2397_v7, %s3684_s11  ;;  %v991_v4 = vadd.f32 %v6109_v16, %v963_v45  ;;  %v1004_v1 = vadd.f32 %v6112_v19, %v976_v40  ;;  %v5020_v33 = vmul.f32 %v4932_v23, %v1197_v49  ;;  %v6117_v40 = vld [vmem:[#allocation63_spill] sm:$0xff]  ;;  %v1210_v16 = vstv %s4986_s29  ;;  %v5039_v19 = vld [vmem:[%s3726_s28 + $0x38] sm:$0xff]  ;;  %s5283_s29 = sld [smem:[#allocation3 + $0xb7]] }
 0x201   : > { %v5001_v7 = vpop.permute.xlu1 %1846  ;;  %v1033_v3 = vadd.f32 %v6117_v40, %v1005_v32  ;;  %v1042_v2 = vsel %vm261_vm0, %v1040_v26, %v1041_v9  ;;  %v1198_v53 = vmul.f32 %v4936_v56, %v1197_v49  ;;  %v2473_v32 = vstv %s4995_s4  ;;  %s5297_s4 = sld [smem:[#allocation3 + $0x3c]] }
 0x202   : > { %6106 = vst [vmem:[#allocation16_spill] sm:$0xff] %v5001_v7  ;;  %v5003_v43 = vpop.permute.xlu0 %1844  ;;  %v1019_v45 = vadd.f32 %v6113_v28, %v991_v4  ;;  %v1032_v47 = vadd.f32 %v6118_v11, %v1004_v1  ;;  %v1055_v4 = vsel %vm261_vm0, %v1053_v39, %v1054_v46  ;;  %v5043_v1 = vld [vmem:[%s3726_s28 + $0x30] sm:$0xff]  ;;  %v1203_v39 = vrot.slane %v5020_v33, 2 }
 0x203   : > { %6107 = vst [vmem:[#allocation17_spill] sm:$0xff] %v5003_v43  ;;  %2417 = vrot.lane.b32.xlu1 %v2413_v48, %s3684_s11  ;;  %v5049_v49 = vmul.f32 %v4932_v23, %v1210_v16  ;;  %v1359_v11 = vstv %s5007_s5  ;;  %v6121_v43 = vld [vmem:[#allocation65_spill] sm:$0xff]  ;;  %v2475_v33 = vmul.f32 %v5039_v19, %v2473_v32  ;;  %s5317_s5 = sld [smem:[#allocation3 + $0x54]] }
 0x204   : > { %2415 = vrot.lane.b32.xlu0 %v2414_v41, %s3684_s11  ;;  %v6116_v41 = vld [vmem:[#allocation62_spill] sm:$0xff]  ;;  %v1046_v26 = vadd.f32 %v1041_v9, %v1019_v45  ;;  %v1058_v40 = vadd.f32 %v1055_v4, %v1032_v47  ;;  %v1202_v45 = vrot.slane %v1198_v53, 2  ;;  %v2487_v47 = vstv %s5016_s7  ;;  %s5321_s7 = sld [smem:[#allocation3 + $0xa0]] }
 0x205   : > { %v5022_v57 = vpop.permute.xlu1 %1863  ;;  %v1018_v12 = vadd.f32 %v6116_v41, %v990_v5  ;;  %v2448_v5 = vsel %vm750_vm3, %v2446_v51, %v2447_v35  ;;  %v1059_v41 = vadd.f32 %v1054_v46, %v1033_v3  ;;  %v6124_v46 = vld [vmem:[#allocation68_spill] sm:$0xff]  ;;  %v5073_v53 = vmul.f32 %v4932_v23, %v1359_v11 }
 0x206   : > { %6114 = vst [vmem:[#allocation18_spill] sm:$0xff] %v5022_v57  ;;  %v5024_v48 = vpop.permute.xlu0 %1861  ;;  %v1076_v9 = vadd.f32 %v6121_v43, %v1046_v26  ;;  %v1092_v3 = vadd.f32 %v6124_v46, %v1058_v40  ;;  %v6125_v43 = vld [vmem:[#allocation69_spill] sm:$0xff]  ;;  %v6128_v26 = vld [vmem:[#allocation70_spill] sm:$0xff]  ;;  %v5083_v46 = vmul.f32 %v4936_v56, %v1359_v11  ;;  %v6134_v11 = vld [vmem:[#allocation76_spill] sm:$0xff] }
 0x207   : > { %6115 = vst [vmem:[#allocation19_spill] sm:$0xff] %v5024_v48  ;;  %2434 = vrot.lane.b32.xlu1 %v2430_v50, %s3685_s14  ;;  %v1211_v50 = vmul.f32 %v4936_v56, %v1210_v16  ;;  %v1045_v51 = vadd.f32 %v1042_v2, %v1018_v12  ;;  %v2474_v16 = vmul.f32 %v5043_v1, %v2473_v32 }
 0x208   : > { %2432 = vrot.lane.b32.xlu0 %v2431_v22, %s3685_s14  ;;  %v1110_v2 = vadd.f32 %v6125_v43, %v1076_v9  ;;  %v1372_v9 = vstv %s5033_s8  ;;  %v2489_v43 = vmul.f32 %v5039_v19, %v2487_v47  ;;  %s5335_s8 = sld [smem:[#allocation3 + $0xb8]] }
 0x209   : > { %v5052_v28 = vpop.permute.xlu1 %1880  ;;  %v1215_v4 = vrot.slane %v1211_v50, 2  ;;  %v5111_v57 = vmul.f32 %v4932_v23, %v1372_v9 }
 0x20a   : > { %6119 = vst [vmem:[#allocation20_spill] sm:$0xff] %v5052_v28  ;;  %v5054_v22 = vpop.permute.xlu0 %1878  ;;  %v6122_v28 = vld [vmem:[#allocation66_spill] sm:$0xff] }
 0x20b   : > { %6120 = vst [vmem:[#allocation21_spill] sm:$0xff] %v5054_v22  ;;  %2451 = vrot.lane.b32.xlu1 %v2447_v35, %s3685_s14  ;;  %v1075_v7 = vadd.f32 %v6122_v28, %v1045_v51  ;;  %v6123_v22 = vld [vmem:[#allocation67_spill] sm:$0xff]  ;;  %v1216_v35 = vrot.slane %v5049_v49, 2  ;;  %v6131_v49 = vld [vmem:[#allocation73_spill] sm:$0xff] }
 0x20c   : > { %2449 = vrot.lane.b32.xlu0 %v2448_v5, %s3685_s14  ;;  %v1093_v12 = vadd.f32 %v6123_v22, %v1059_v41  ;;  %v6129_v22 = vld [vmem:[#allocation71_spill] sm:$0xff]  ;;  %v6130_v41 = vld [vmem:[#allocation72_spill] sm:$0xff]  ;;  %v1144_v50 = vadd.f32 %v6131_v49, %v1110_v2  ;;  %v6135_v2 = vld [vmem:[#allocation77_spill] sm:$0xff] }
 0x20d   : > { %v5075_v5 = vpop.permute.xlu1 %1897  ;;  %v1109_v28 = vadd.f32 %v6128_v26, %v1075_v7  ;;  %v1126_v40 = vadd.f32 %v6130_v41, %v1092_v3  ;;  %v2488_v7 = vmul.f32 %v5043_v1, %v2487_v47  ;;  %v6133_v3 = vld [vmem:[#allocation75_spill] sm:$0xff]  ;;  %v6138_v47 = vld [vmem:[#allocation78_spill] sm:$0xff] }
 0x20e   : > { %6126 = vst [vmem:[#allocation22_spill] sm:$0xff] %v5075_v5  ;;  %v5077_v32 = vpop.permute.xlu0 %1895  ;;  %v1127_v51 = vadd.f32 %v6129_v22, %v1093_v12  ;;  %v6132_v12 = vld [vmem:[#allocation74_spill] sm:$0xff]  ;;  %v1178_v49 = vadd.f32 %v6135_v2, %v1144_v50  ;;  %v1373_v2 = vmul.f32 %v4936_v56, %v1372_v9  ;;  %v1378_v9 = vrot.slane %v5111_v57, 3  ;;  %v6147_v57 = vld [vmem:[#allocation85_spill] sm:$0xff] }
 0x20f   : > { %6127 = vst [vmem:[#allocation23_spill] sm:$0xff] %v5077_v32  ;;  %2480 = vrot.lane.b32.xlu1 %v2475_v33, %s3682_s30  ;;  %v1143_v26 = vadd.f32 %v6132_v12, %v1109_v28  ;;  %v1160_v41 = vadd.f32 %v6134_v11, %v1126_v40  ;;  %v2501_v32 = vstv %s5045_s9  ;;  %v1204_v33 = vsel %vm424_vm1, %v1202_v45, %v1203_v39  ;;  %v6139_v12 = vld [vmem:[#allocation79_spill] sm:$0xff]  ;;  %s5364_s9 = sld [smem:[#allocation3 + $0x56]] }
 0x210   : > { %2478 = vrot.lane.b32.xlu0 %v2474_v16, %s3682_s30  ;;  %v1161_v22 = vadd.f32 %v6133_v3, %v1127_v51  ;;  %v1217_v16 = vsel %vm424_vm1, %v1215_v4, %v1216_v35  ;;  %v6140_v3 = vld [vmem:[#allocation80_spill] sm:$0xff]  ;;  %v1521_v11 = vstv %s5057_s10  ;;  %v2503_v45 = vmul.f32 %v5039_v19, %v2501_v32  ;;  %s5390_s10 = sld [smem:[#allocation3 + $0x41]] }
 0x211   : > { %v5102_v5 = vpop.permute.xlu1 %1914  ;;  %v1177_v28 = vadd.f32 %v6138_v47, %v1143_v26  ;;  %v1194_v40 = vadd.f32 %v6140_v3, %v1160_v41  ;;  %v2502_v4 = vmul.f32 %v5043_v1, %v2501_v32  ;;  %v1364_v26 = vrot.slane %v5083_v46, 3 }
 0x212   : > { %6136 = vst [vmem:[#allocation24_spill] sm:$0xff] %v5102_v5  ;;  %v5104_v48 = vpop.permute.xlu0 %1912  ;;  %v1195_v51 = vadd.f32 %v6139_v12, %v1161_v22  ;;  %v2515_v22 = vstv %s5068_s12  ;;  %v1208_v41 = vadd.f32 %v1203_v39, %v1178_v49  ;;  %v5124_v47 = vmul.f32 %v4932_v23, %v1521_v11  ;;  %v6144_v5 = vld [vmem:[#allocation82_spill] sm:$0xff]  ;;  %s5404_s12 = sld [smem:[#allocation3 + $0xba]] }
 0x213   : > { %6137 = vst [vmem:[#allocation25_spill] sm:$0xff] %v5104_v48  ;;  %2494 = vrot.lane.b32.xlu1 %v2489_v43, %s3682_s30  ;;  %v1522_v43 = vmul.f32 %v4936_v56, %v1521_v11  ;;  %v1207_v32 = vadd.f32 %v1204_v33, %v1177_v28  ;;  %v1220_v50 = vadd.f32 %v1217_v16, %v1194_v40  ;;  %v1534_v46 = vstv %s5085_s13  ;;  %v6143_v48 = vld [vmem:[#allocation81_spill] sm:$0xff]  ;;  %v6145_v33 = vld [vmem:[#allocation83_spill] sm:$0xff]  ;;  %v6146_v16 = vld [vmem:[#allocation84_spill] sm:$0xff]  ;;  %s5424_s13 = sld [smem:[#allocation3 + $0x57]] }
 0x214   : > { %2492 = vrot.lane.b32.xlu0 %v2488_v7, %s3682_s30  ;;  %v1221_v3 = vadd.f32 %v1216_v35, %v1195_v51  ;;  %v1238_v39 = vadd.f32 %v6143_v48, %v1208_v41  ;;  %v2517_v49 = vmul.f32 %v5039_v19, %v2515_v22  ;;  %v2516_v11 = vmul.f32 %v5043_v1, %v2515_v22 }
 0x215   : > { %v5127_v7 = vpop.permute.xlu1 %1931  ;;  %v1254_v28 = vadd.f32 %v6146_v16, %v1220_v50  ;;  %v2529_v51 = vstv %s5097_s15  ;;  %v1377_v40 = vrot.slane %v1373_v2, 3  ;;  %v6150_v50 = vld [vmem:[#allocation86_spill] sm:$0xff]  ;;  %s5442_s15 = sld [smem:[#allocation3 + $0xa5]] }
 0x216   : > { %6141 = vst [vmem:[#allocation26_spill] sm:$0xff] %v5127_v7  ;;  %v5129_v12 = vpop.permute.xlu0 %1929  ;;  %v1255_v35 = vadd.f32 %v6145_v33, %v1221_v3  ;;  %v1272_v48 = vadd.f32 %v6147_v57, %v1238_v39  ;;  %v6152_v33 = vld [vmem:[#allocation88_spill] sm:$0xff]  ;;  %v6155_v57 = vld [vmem:[#allocation91_spill] sm:$0xff] }
 0x217   : > { %6142 = vst [vmem:[#allocation27_spill] sm:$0xff] %v5129_v12  ;;  %2508 = vrot.lane.b32.xlu1 %v2503_v45, %s3683_s6  ;;  %v1237_v12 = vadd.f32 %v6144_v5, %v1207_v32  ;;  %v5150_v45 = vmul.f32 %v4932_v23, %v1534_v46  ;;  %v6151_v32 = vld [vmem:[#allocation87_spill] sm:$0xff]  ;;  %v1288_v16 = vadd.f32 %v6152_v33, %v1254_v28  ;;  %v6153_v23 = vld [vmem:[#allocation89_spill] sm:$0xff] }
 0x218   : > { %2506 = vrot.lane.b32.xlu0 %v2502_v4, %s3683_s6  ;;  %v1535_v4 = vmul.f32 %v4936_v56, %v1534_v46  ;;  %v1289_v3 = vadd.f32 %v6151_v32, %v1255_v35  ;;  %v1306_v39 = vadd.f32 %v6153_v23, %v1272_v48  ;;  %v1526_v56 = vrot.slane %v1522_v43, 4  ;;  %v6154_v35 = vld [vmem:[#allocation90_spill] sm:$0xff]  ;;  %v6156_v32 = vld [vmem:[#allocation92_spill] sm:$0xff]  ;;  %v6157_v48 = vld [vmem:[#allocation93_spill] sm:$0xff] }
 0x219   : > { %v5155_v5 = vpop.permute.xlu1 %1948  ;;  %v1271_v41 = vadd.f32 %v6150_v50, %v1237_v12  ;;  %v2531_v46 = vmul.f32 %v5039_v19, %v2529_v51  ;;  %v2530_v12 = vmul.f32 %v5043_v1, %v2529_v51  ;;  %v1322_v33 = vadd.f32 %v6156_v32, %v1288_v16 }
 0x21a   : > { %6148 = vst [vmem:[#allocation28_spill] sm:$0xff] %v5155_v5  ;;  %v5157_v22 = vpop.permute.xlu0 %1946  ;;  %v1323_v50 = vadd.f32 %v6155_v57, %v1289_v3  ;;  %v2543_v43 = vstv %s5120_s16  ;;  %v5944_v51 = vrot.slane %v5150_v45, 4  ;;  %v1539_v2 = vrot.slane %v1535_v4, 4  ;;  %v6161_v3 = vld [vmem:[#allocation94_spill] sm:$0xff]  ;;  %s5455_s16 = sld [smem:[#allocation3 + $0xbb]] }
 0x21b   : > { %6149 = vst [vmem:[#allocation29_spill] sm:$0xff] %v5157_v22  ;;  %2522 = vrot.lane.b32.xlu1 %v2517_v49, %s3683_s6  ;;  %v1305_v28 = vadd.f32 %v6154_v35, %v1271_v41  ;;  %v1340_v49 = vadd.f32 %v6157_v48, %v1306_v39  ;;  %v6162_v35 = vld [vmem:[#allocation95_spill] sm:$0xff]  ;;  %v6163_v39 = vld [vmem:[#allocation96_spill] sm:$0xff]  ;;  %v5943_v48 = vstv %s5132_s17  ;;  %v1379_v5 = vsel %vm587_vm2, %v1377_v40, %v1378_v9 }
 0x21c   : > { %2520 = vrot.lane.b32.xlu0 %v2516_v11, %s3683_s6  ;;  %v6158_v11 = vrot.slane %v5073_v53, 3  ;;  %v1357_v57 = vadd.f32 %v6162_v35, %v1323_v50  ;;  %v1356_v32 = vadd.f32 %v6163_v39, %v1322_v33  ;;  %v2544_v4 = vmul.f32 %v5043_v1, %v2543_v43 }
 0x21d   : > { %v5183_v22 = vpop.permute.xlu1 %1965  ;;  %v1339_v16 = vadd.f32 %v6161_v3, %v1305_v28  ;;  %v2557_v50 = vstv %s5144_s18  ;;  %v2611_v3 = vstv %s5146_s19  ;;  %v6165_v40 = vrot.slane %v5073_v53, 3  ;;  %s5503_s18 = sld [smem:[#allocation3 + $0xbc]]  ;;  %s5522_s19 = sld [smem:[#allocation3 + $0x46]] }
 0x21e   : > { %v1366_v23 = vsel %vm587_vm2, %v1364_v26, %v6158_v11  ;;  %6159 = vst [vmem:[#allocation30_spill] sm:$0xff] %v5183_v22  ;;  %v5185_v41 = vpop.permute.xlu0 %1963  ;;  %v2545_v26 = vmul.f32 %v5039_v19, %v2543_v43  ;;  %v6164_v11 = vrot.slane %v5124_v47, 4  ;;  %v5215_v33 = vmul.f32 %v4922_v8, %v5943_v48 }
 0x21f   : > { %6160 = vst [vmem:[#allocation31_spill] sm:$0xff] %v5185_v41  ;;  %2536 = vrot.lane.b32.xlu1 %v2531_v46, %s3684_s11  ;;  %v1370_v46 = vadd.f32 %v6165_v40, %v1340_v49  ;;  %v1810_v43 = vstv %s5153_s20  ;;  %v1369_v53 = vadd.f32 %v1366_v23, %v1339_v16  ;;  %v1383_v39 = vadd.f32 %v1378_v9, %v1357_v57  ;;  %v6168_v41 = vld [vmem:[#allocation99_spill] sm:$0xff]  ;;  %v6171_v16 = vld [vmem:[#allocation98_spill] sm:$0xff]  ;;  %s5537_s20 = sld [smem:[#allocation3 + $0x59]] }
 0x220   : > { %2534 = vrot.lane.b32.xlu0 %v2530_v12, %s3684_s11  ;;  %v5199_v28 = vsel %vm750_vm3, %v1526_v56, %v6164_v11  ;;  %v5210_v12 = vsel %vm750_vm3, %v1539_v2, %v5944_v51  ;;  %v1382_v49 = vadd.f32 %v1379_v5, %v1356_v32  ;;  %v2628_v11 = vstv %s5163_s0  ;;  %v6170_v5 = vld [vmem:[#allocation97_spill] sm:$0xff]  ;;  %s5559_s0 = sld [smem:[#allocation3 + $0xaa]] }
 0x221   : > { %v5220_v56 = vpop.permute.xlu1 %2008  ;;  %v2559_v2 = vmul.f32 %v5039_v19, %v2557_v50  ;;  %v2558_v40 = vmul.f32 %v5043_v1, %v2557_v50  ;;  %v2571_v48 = vstv %s5170_s22  ;;  %v2613_v51 = vmul.f32 %v5039_v19, %v2611_v3  ;;  %v6174_v50 = vld [vmem:[#allocation103_spill] sm:$0xff]  ;;  %s5574_s22 = sld [smem:[#allocation3 + $0xbd]] }
 0x222   : > { %6166 = vst [vmem:[#allocation32_spill] sm:$0xff] %v5220_v56  ;;  %v5222_v35 = vpop.permute.xlu0 %2006  ;;  %v1417_v22 = vadd.f32 %v6168_v41, %v1383_v39  ;;  %v6169_v56 = vld [vmem:[#allocation100_spill] sm:$0xff]  ;;  %v2612_v9 = vmul.f32 %v5043_v1, %v2611_v3  ;;  %v1400_v23 = vadd.f32 %v6170_v5, %v1370_v46  ;;  %v1399_v57 = vadd.f32 %v6171_v16, %v1369_v53  ;;  %v6176_v53 = vld [vmem:[#allocation101_spill] sm:$0xff]  ;;  %v6177_v16 = vld [vmem:[#allocation102_spill] sm:$0xff] }
 0x223   : > { %6167 = vst [vmem:[#allocation33_spill] sm:$0xff] %v5222_v35  ;;  %2550 = vrot.lane.b32.xlu1 %v2545_v26, %s3684_s11  ;;  %v1416_v7 = vadd.f32 %v6169_v56, %v1382_v49  ;;  %v1692_v35 = vstv %s5175_s23  ;;  %v2629_v41 = vmul.f32 %v5043_v1, %v2628_v11  ;;  %v6175_v39 = vld [vmem:[#allocation104_spill] sm:$0xff]  ;;  %v5250_v49 = vmul.f32 %v4922_v8, %v1810_v43  ;;  %s5589_s23 = sld [smem:[#allocation3 + $0x5b]] }
 0x224   : > { %2548 = vrot.lane.b32.xlu0 %v2544_v4, %s3684_s11  ;;  %v5244_v4 = vmul.f32 %v5039_v19, %v2628_v11  ;;  %v1451_v56 = vadd.f32 %v6174_v50, %v1417_v22  ;;  %v2573_v46 = vmul.f32 %v5039_v19, %v2571_v48  ;;  %v1434_v5 = vadd.f32 %v6176_v53, %v1400_v23  ;;  %v6179_v53 = vld [vmem:[#allocation106_spill] sm:$0xff] }
 0x225   : > { %v5239_v32 = vpop.permute.xlu1 %2025  ;;  %v1450_v3 = vadd.f32 %v6175_v39, %v1416_v7  ;;  %v2572_v22 = vmul.f32 %v5043_v1, %v2571_v48  ;;  %v2617_v11 = vrot.slane %v2613_v51, 1  ;;  %v2616_v39 = vrot.slane %v2612_v9, 1  ;;  %v6178_v48 = vld [vmem:[#allocation105_spill] sm:$0xff] }
 0x226   : > { %6172 = vst [vmem:[#allocation34_spill] sm:$0xff] %v5239_v32  ;;  %v5241_v26 = vpop.permute.xlu0 %2023  ;;  %v1485_v7 = vadd.f32 %v4589_v18, %v1451_v56  ;;  %v2645_v32 = vstv %s5203_s24  ;;  %v5264_v6 = vmul.f32 %v4926_v31, %v1810_v43  ;;  %v1468_v51 = vadd.f32 %v6178_v48, %v1434_v5  ;;  %s5608_s24 = sld [smem:[#allocation3 + $0xbf]] }
 0x227   : > { %6173 = vst [vmem:[#allocation35_spill] sm:$0xff] %v5241_v26  ;;  %v1433_v26 = vadd.f32 %v6177_v16, %v1399_v57  ;;  %2564 = vrot.lane.b32.xlu1 %v2559_v2, %s3685_s14  ;;  %v1484_v50 = vadd.f32 %v4591_v63, %v1450_v3  ;;  %v2634_v2 = vrot.slane %v5244_v4, 1  ;;  %v5277_v43 = vmul.f32 %v4922_v8, %v1692_v35 }
 0x228   : > { %2562 = vrot.lane.b32.xlu0 %v2558_v40, %s3685_s14  ;;  %v2633_v40 = vrot.slane %v2629_v41, 1  ;;  %v1519_v63 = vadd.f32 %v4632_v14, %v1485_v7  ;;  %v2647_v56 = vmul.f32 %v5039_v19, %v2645_v32  ;;  %v2646_v4 = vmul.f32 %v5043_v1, %v2645_v32 }
 0x229   : > { %v5267_v23 = vpop.permute.xlu1 %2042  ;;  %v1467_v18 = vadd.f32 %v6179_v53, %v1433_v26  ;;  %v1518_v9 = vadd.f32 %v4634_v54, %v1484_v50  ;;  %v1502_v26 = vadd.f32 %v4610_v42, %v1468_v51  ;;  %v2618_v54 = vsel %vm261_vm0, %v2616_v39, %v2617_v11 }
 0x22a   : > { %v5269_v57 = vpop.permute.xlu0 %2040  ;;  %v2662_v41 = vstv %s5235_s26  ;;  %v5290_v3 = vmul.f32 %v4926_v31, %v1692_v35  ;;  %v5295_v16 = vmul.f32 %v4922_v8, %v1823_v21  ;;  %v2635_v35 = vsel %vm261_vm0, %v2633_v40, %v2634_v2  ;;  %s5654_s26 = sld [smem:[#allocation3 + $0xc0]] }
 0x22b   : > { %2578 = vrot.lane.b32.xlu1 %v2573_v46, %s3685_s14  ;;  %v1501_v14 = vadd.f32 %v4612_v59, %v1467_v18  ;;  %v1816_v46 = vrot.slane %v5250_v49, 1  ;;  %v6180_v59 = vrot.slane %v5150_v45, 4  ;;  %v1544_v7 = vadd.f32 %v5210_v12, %v1518_v9 }
 0x22c   : > { %2576 = vrot.lane.b32.xlu0 %v2572_v22, %s3685_s14  ;;  %v2679_v50 = vstv %s5253_s27  ;;  %v2651_v39 = vrot.slane %v2647_v56, 1  ;;  %v2650_v48 = vrot.slane %v2646_v4, 1  ;;  %v2664_v51 = vmul.f32 %v5039_v19, %v2662_v41  ;;  %s5675_s27 = sld [smem:[#allocation3 + $0x5d]] }
 0x22d   : > { %v5299_v32 = vpop.permute.xlu1 %2059  ;;  %v1545_v22 = vadd.f32 %v6180_v59, %v1519_v63  ;;  %v2663_v53 = vmul.f32 %v5043_v1, %v2662_v41  ;;  %v6181_v18 = vrot.slane %v5124_v47, 4  ;;  %v1531_v45 = vadd.f32 %v5199_v28, %v1501_v14 }
 0x22e   : > { %v5301_v42 = vpop.permute.xlu0 %2057  ;;  %v1578_v40 = vadd.f32 %v4674_v62, %v1544_v7  ;;  %v1824_v63 = vmul.f32 %v4926_v31, %v1823_v21  ;;  %v5328_v47 = vmul.f32 %v5039_v19, %v2679_v50  ;;  %v2668_v14 = vrot.slane %v2664_v51, 1 }
 0x22f   : > { %2621 = vrot.lane.b32.xlu1 %v2617_v11, %s3682_s30  ;;  %v1532_v5 = vadd.f32 %v6181_v18, %v1502_v26  ;;  %v1579_v12 = vadd.f32 %v4672_v13, %v1545_v22  ;;  %v1829_v11 = vrot.slane %v5295_v16, 1  ;;  %v2680_v13 = vmul.f32 %v5043_v1, %v2679_v50 }
 0x230   : > { %2619 = vrot.lane.b32.xlu0 %v2618_v54, %s3682_s30  ;;  %v1561_v28 = vadd.f32 %v4651_v38, %v1531_v45  ;;  %v1612_v21 = vadd.f32 %v4720_v15, %v1578_v40  ;;  %v2652_v26 = vsel %vm261_vm0, %v2650_v48, %v2651_v39  ;;  %v2667_v54 = vrot.slane %v2663_v53, 1 }
 0x231   : > { %v5323_v9 = vpop.permute.xlu1 %2076  ;;  %v1562_v62 = vadd.f32 %v4649_v37, %v1532_v5  ;;  %v1613_v4 = vadd.f32 %v4718_v61, %v1579_v12  ;;  %v2696_v41 = vstv %s5283_s29  ;;  %v1828_v5 = vrot.slane %v1824_v63, 1  ;;  %s5691_s29 = sld [smem:[#allocation3 + $0xc1]] }
 0x232   : > { %v5325_v56 = vpop.permute.xlu0 %2074  ;;  %v1595_v38 = vadd.f32 %v4695_v30, %v1561_v28  ;;  %v1646_v15 = vadd.f32 %v4760_v60, %v1612_v21  ;;  %v1972_v59 = vstv %s5297_s4  ;;  %v2685_v7 = vrot.slane %v5328_v47, 1  ;;  %s5700_s4 = sld [smem:[#allocation3 + $0x5e]] }
 0x233   : > { %2638 = vrot.lane.b32.xlu1 %v2634_v2, %s3682_s30  ;;  %v1596_v37 = vadd.f32 %v4693_v29, %v1562_v62  ;;  %v1647_v61 = vadd.f32 %v4758_v58, %v1613_v4  ;;  %v6182_v60 = vstv %s5132_s17  ;;  %v5361_v51 = vmul.f32 %v5039_v19, %v2696_v41  ;;  %s5487_s17 = sld [smem:[#allocation3 + $0x58]] }
 0x234   : > { %2636 = vrot.lane.b32.xlu0 %v2635_v35, %s3682_s30  ;;  %v2684_v35 = vrot.slane %v2680_v13, 1  ;;  %v1629_v29 = vadd.f32 %v4737_v52, %v1595_v38  ;;  %v1680_v58 = vadd.f32 %v4802_v55, %v1646_v15  ;;  %v1687_v48 = vmul.f32 %v4926_v31, %v6182_v60 }
 0x235   : > { %v5346_v22 = vpop.permute.xlu1 %2093  ;;  %v1630_v50 = vadd.f32 %v4735_v44, %v1596_v37  ;;  %v1681_v30 = vadd.f32 %v4800_v36, %v1647_v61  ;;  %v2697_v53 = vmul.f32 %v5043_v1, %v2696_v41  ;;  %v2669_v36 = vsel %vm261_vm0, %v2667_v54, %v2668_v14 }
 0x236   : > { %v5348_v2 = vpop.permute.xlu0 %2091  ;;  %v1663_v52 = vadd.f32 %v4782_v25, %v1629_v29  ;;  %v2713_v55 = vstv %s5317_s5  ;;  %v5380_v45 = vsel %vm261_vm0, %v1828_v5, %v1829_v11  ;;  %v5383_v12 = vmul.f32 %v4922_v8, %v1972_v59  ;;  %s5706_s5 = sld [smem:[#allocation3 + $0xaf]] }
 0x237   : > { %2655 = vrot.lane.b32.xlu1 %v2651_v39, %s3683_s6  ;;  %v1664_v44 = vadd.f32 %v4780_v20, %v1630_v50  ;;  %v6183_v39 = vrot.slane %v5264_v6, 1  ;;  %v1985_v20 = vstv %s5321_s7  ;;  %v1696_v6 = vadd.f32 %v5277_v43, %v1681_v30  ;;  %v6184_v30 = vld [vmem:[#allocation6_spill] sm:$0xff]  ;;  %s5711_s7 = sld [smem:[#allocation3 + $0xc2]] }
 0x238   : > { %2653 = vrot.lane.b32.xlu0 %v2652_v26, %s3683_s6  ;;  %v1695_v63 = vadd.f32 %v5290_v3, %v1680_v58  ;;  %v2686_v47 = vsel %vm261_vm0, %v2684_v35, %v2685_v7  ;;  %v2730_v13 = vstv %s5335_s8  ;;  %v2702_v62 = vrot.slane %v5361_v51, 1  ;;  %v6185_v58 = vld [vmem:[#allocation7_spill] sm:$0xff]  ;;  %s5720_s8 = sld [smem:[#allocation3 + $0x60]] }
 0x239   : > { %v5375_v18 = vsel %vm261_vm0, %v6183_v39, %v1816_v46  ;;  %v5386_v25 = vpop.permute.xlu1 %2110  ;;  %v2701_v28 = vrot.slane %v2697_v53, 1  ;;  %v2715_v4 = vmul.f32 %v5039_v19, %v2713_v55  ;;  %v2714_v21 = vmul.f32 %v5043_v1, %v2713_v55  ;;  %v6188_v55 = vld [vmem:[#allocation9_spill] sm:$0xff] }
 0x23a   : > { %v5388_v40 = vpop.permute.xlu0 %2108  ;;  %v1690_v26 = vadd.f32 %v5215_v33, %v1664_v44  ;;  %v1689_v54 = vadd.f32 %v1687_v48, %v1663_v52  ;;  %v1724_v43 = vadd.f32 %v4843_v10, %v1696_v6  ;;  %v1723_v3 = vadd.f32 %v4845_v0, %v1695_v63  ;;  %v6189_v6 = vld [vmem:[#allocation8_spill] sm:$0xff] }
 0x23b   : > { %2672 = vrot.lane.b32.xlu1 %v2668_v14, %s3683_s6  ;;  %v5407_v14 = vmul.f32 %v4926_v31, %v1972_v59  ;;  %v5410_v41 = vmul.f32 %v4922_v8, %v1985_v20  ;;  %v5417_v33 = vmul.f32 %v5039_v19, %v2730_v13  ;;  %v2731_v10 = vmul.f32 %v5043_v1, %v2730_v13 }
 0x23c   : > { %2670 = vrot.lane.b32.xlu0 %v2669_v36, %s3683_s6  ;;  %v1710_v0 = vadd.f32 %v4824_v34, %v1690_v26  ;;  %v1709_v61 = vadd.f32 %v4826_v24, %v1689_v54  ;;  %v1752_v15 = vadd.f32 %v4886_v17, %v1724_v43  ;;  %v1751_v5 = vadd.f32 %v4888_v27, %v1723_v3  ;;  %v6186_v24 = vld [vmem:[#allocation10_spill] sm:$0xff]  ;;  %v6187_v17 = vld [vmem:[#allocation11_spill] sm:$0xff]  ;;  %v6192_v43 = vld [vmem:[#allocation13_spill] sm:$0xff] }
 0x23d   : > { %v5412_v37 = vpop.permute.xlu1 %2127  ;;  %v2703_v59 = vsel %vm261_vm0, %v2701_v28, %v2702_v62  ;;  %v2719_v35 = vrot.slane %v2715_v4, 1  ;;  %v2718_v50 = vrot.slane %v2714_v21, 1  ;;  %v2773_v29 = vstv %s5364_s9  ;;  %v6191_v28 = vld [vmem:[#allocation15_spill] sm:$0xff]  ;;  %s5731_s9 = sld [smem:[#allocation3 + $0xc4]] }
 0x23e   : > { %v5414_v38 = vpop.permute.xlu0 %2125  ;;  %v1738_v34 = vadd.f32 %v6184_v30, %v1710_v0  ;;  %v1737_v60 = vadd.f32 %v6185_v58, %v1709_v61  ;;  %v1780_v48 = vadd.f32 %v6186_v24, %v1752_v15  ;;  %v1779_v51 = vadd.f32 %v6187_v17, %v1751_v5 }
 0x23f   : > { %2689 = vrot.lane.b32.xlu1 %v2685_v7, %s3684_s11  ;;  %v5435_v27 = vmul.f32 %v4926_v31, %v1985_v20  ;;  %v2134_v53 = vstv %s5390_s10  ;;  %v2736_v52 = vrot.slane %v5417_v33, 1  ;;  %v2735_v36 = vrot.slane %v2731_v10, 1  ;;  %v6193_v33 = vld [vmem:[#allocation12_spill] sm:$0xff]  ;;  %s5741_s10 = sld [smem:[#allocation3 + $0x61]] }
 0x240   : > { %2687 = vrot.lane.b32.xlu0 %v2686_v47, %s3684_s11  ;;  %v1766_v39 = vadd.f32 %v6188_v55, %v1738_v34  ;;  %v1765_v63 = vadd.f32 %v6189_v6, %v1737_v60  ;;  %v6190_v47 = vld [vmem:[#allocation14_spill] sm:$0xff]  ;;  %v1807_v20 = vadd.f32 %v6191_v28, %v1779_v51  ;;  %v1978_v4 = vrot.slane %v5383_v12, 2 }
 0x241   : > { %v5438_v7 = vpop.permute.xlu1 %2170  ;;  %v1808_v13 = vadd.f32 %v6190_v47, %v1780_v48  ;;  %v1977_v21 = vrot.slane %v5407_v14, 2  ;;  %v2775_v26 = vmul.f32 %v5039_v19, %v2773_v29  ;;  %v2774_v54 = vmul.f32 %v5043_v1, %v2773_v29  ;;  %v6197_v47 = vld [vmem:[#allocation17_spill] sm:$0xff]  ;;  %v6198_v28 = vld [vmem:[#allocation22_spill] sm:$0xff] }
 0x242   : > { %v5440_v44 = vpop.permute.xlu0 %2168  ;;  %v1794_v3 = vadd.f32 %v6192_v43, %v1766_v39  ;;  %v1793_v10 = vadd.f32 %v6193_v33, %v1765_v63  ;;  %v2720_v0 = vsel %vm261_vm0, %v2718_v50, %v2719_v35  ;;  %v2790_v61 = vstv %s5404_s12  ;;  %s5748_s12 = sld [smem:[#allocation3 + $0xc5]] }
 0x243   : > { %2706 = vrot.lane.b32.xlu1 %v2702_v62, %s3684_s11  ;;  %v1991_v15 = vrot.slane %v5410_v41, 2  ;;  %v1990_v62 = vrot.slane %v5435_v27, 2  ;;  %v5464_v5 = vmul.f32 %v4922_v8, %v2134_v53  ;;  %v1834_v34 = vadd.f32 %v1829_v11, %v1808_v13  ;;  %v6194_v27 = vld [vmem:[#allocation18_spill] sm:$0xff] }
 0x244   : > { %2704 = vrot.lane.b32.xlu0 %v2703_v59, %s3684_s11  ;;  %v5467_v59 = vmul.f32 %v4926_v31, %v2134_v53  ;;  %v1833_v50 = vadd.f32 %v5380_v45, %v1807_v20  ;;  %v2737_v58 = vsel %vm261_vm0, %v2735_v36, %v2736_v52  ;;  %v2807_v60 = vstv %s5424_s13  ;;  %v6195_v53 = vld [vmem:[#allocation19_spill] sm:$0xff]  ;;  %s5757_s13 = sld [smem:[#allocation3 + $0x62]] }
 0x245   : > { %v5469_v29 = vpop.permute.xlu1 %2187  ;;  %v2779_v24 = vrot.slane %v2775_v26, 2  ;;  %v2778_v48 = vrot.slane %v2774_v54, 2  ;;  %v2792_v17 = vmul.f32 %v5039_v19, %v2790_v61  ;;  %v2791_v51 = vmul.f32 %v5043_v1, %v2790_v61  ;;  %v6199_v26 = vld [vmem:[#allocation23_spill] sm:$0xff] }
 0x246   : > { %v5471_v30 = vpop.permute.xlu0 %2185  ;;  %v1821_v16 = vadd.f32 %v1816_v46, %v1794_v3  ;;  %v1820_v11 = vadd.f32 %v5375_v18, %v1793_v10  ;;  %v1868_v45 = vadd.f32 %v6194_v27, %v1834_v34  ;;  %v1867_v36 = vadd.f32 %v6195_v53, %v1833_v50  ;;  %v6196_v46 = vld [vmem:[#allocation16_spill] sm:$0xff]  ;;  %v6201_v34 = vld [vmem:[#allocation21_spill] sm:$0xff] }
 0x247   : > { %2723 = vrot.lane.b32.xlu1 %v2719_v35, %s3685_s14  ;;  %v2140_v35 = vrot.slane %v5464_v5, 3  ;;  %v2147_v55 = vstv %s5442_s15  ;;  %v5496_v63 = vmul.f32 %v5039_v19, %v2807_v60  ;;  %v2808_v49 = vmul.f32 %v5043_v1, %v2807_v60  ;;  %v6202_v60 = vld [vmem:[#allocation26_spill] sm:$0xff]  ;;  %s5759_s15 = sld [smem:[#allocation3 + $0x50]] }
 0x248   : > { %2721 = vrot.lane.b32.xlu0 %v2720_v0, %s3685_s14  ;;  %v1851_v18 = vadd.f32 %v6196_v46, %v1821_v16  ;;  %v1850_v13 = vadd.f32 %v6197_v47, %v1820_v11  ;;  %v1902_v20 = vadd.f32 %v6198_v28, %v1868_v45  ;;  %v1901_v54 = vadd.f32 %v6199_v26, %v1867_v36  ;;  %v6200_v0 = vld [vmem:[#allocation20_spill] sm:$0xff]  ;;  %v6203_v11 = vld [vmem:[#allocation27_spill] sm:$0xff]  ;;  %v6205_v46 = vld [vmem:[#allocation25_spill] sm:$0xff] }
 0x249   : > { %v5491_v39 = vpop.permute.xlu1 %2204  ;;  %v2780_v43 = vsel %vm424_vm1, %v2778_v48, %v2779_v24  ;;  %v2796_v3 = vrot.slane %v2792_v17, 2  ;;  %v2795_v33 = vrot.slane %v2791_v51, 2  ;;  %v2824_v10 = vstv %s5455_s16  ;;  %v6204_v51 = vld [vmem:[#allocation24_spill] sm:$0xff]  ;;  %v6206_v47 = vld [vmem:[#allocation30_spill] sm:$0xff]  ;;  %s5767_s16 = sld [smem:[#allocation3 + $0xc6]] }
 0x24a   : > { %v5493_v6 = vpop.permute.xlu0 %2202  ;;  %v1885_v61 = vadd.f32 %v6200_v0, %v1851_v18  ;;  %v1884_v50 = vadd.f32 %v6201_v34, %v1850_v13  ;;  %v1936_v16 = vadd.f32 %v6202_v60, %v1902_v20  ;;  %v1935_v27 = vadd.f32 %v6203_v11, %v1901_v54  ;;  %v6208_v20 = vld [vmem:[#allocation28_spill] sm:$0xff]  ;;  %v6209_v54 = vld [vmem:[#allocation29_spill] sm:$0xff] }
 0x24b   : > { %2740 = vrot.lane.b32.xlu1 %v2736_v52, %s3685_s14  ;;  %v2139_v45 = vrot.slane %v5467_v59, 3  ;;  %v5515_v53 = vmul.f32 %v4922_v8, %v2147_v55  ;;  %v2813_v48 = vrot.slane %v5496_v63, 2  ;;  %v2812_v17 = vrot.slane %v2808_v49, 2  ;;  %v6207_v59 = vld [vmem:[#allocation31_spill] sm:$0xff] }
 0x24c   : > { %2738 = vrot.lane.b32.xlu0 %v2737_v58, %s3685_s14  ;;  %v1919_v36 = vadd.f32 %v6204_v51, %v1885_v61  ;;  %v1918_v18 = vadd.f32 %v6205_v46, %v1884_v50  ;;  %v1970_v13 = vadd.f32 %v6206_v47, %v1936_v16  ;;  %v1969_v28 = vadd.f32 %v6207_v59, %v1935_v27 }
 0x24d   : > { %v5517_v52 = vpop.permute.xlu1 %2221  ;;  %v1992_v8 = vsel %vm424_vm1, %v1990_v62, %v1991_v15  ;;  %v5534_v63 = vmul.f32 %v5039_v19, %v2824_v10  ;;  %v2825_v49 = vmul.f32 %v5043_v1, %v2824_v10  ;;  %v2797_v61 = vsel %vm424_vm1, %v2795_v33, %v2796_v3 }
 0x24e   : > { %v5519_v58 = vpop.permute.xlu0 %2219  ;;  %v1953_v26 = vadd.f32 %v6208_v20, %v1919_v36  ;;  %v1952_v0 = vadd.f32 %v6209_v54, %v1918_v18  ;;  %v2841_v34 = vstv %s5487_s17  ;;  %v1979_v62 = vsel %vm424_vm1, %v1977_v21, %v1978_v4  ;;  %s5769_s17 = sld [smem:[#allocation3 + $0xb4]] }
 0x24f   : > { %2783 = vrot.lane.b32.xlu1 %v2779_v24, %s3682_s30  ;;  %v5551_v24 = vsel %vm587_vm2, %v2139_v45, %v2140_v35  ;;  %v2148_v10 = vmul.f32 %v4926_v31, %v2147_v55  ;;  %v1996_v14 = vadd.f32 %v1991_v15, %v1970_v13  ;;  %v1995_v33 = vadd.f32 %v1992_v8, %v1969_v28  ;;  %v6210_v45 = vld [vmem:[#allocation34_spill] sm:$0xff]  ;;  %v6213_v28 = vld [vmem:[#allocation33_spill] sm:$0xff] }
 0x250   : > { %2781 = vrot.lane.b32.xlu0 %v2780_v43, %s3682_s30  ;;  %v2153_v43 = vrot.slane %v5515_v53, 3  ;;  %v2814_v21 = vsel %vm424_vm1, %v2812_v17, %v2813_v48  ;;  %v2858_v16 = vstv %s5503_s18  ;;  %v2830_v31 = vrot.slane %v5534_v63, 2  ;;  %v6211_v17 = vld [vmem:[#allocation35_spill] sm:$0xff]  ;;  %s5776_s18 = sld [smem:[#allocation3 + $0x63]] }
 0x251   : > { %v5555_v50 = vpop.permute.xlu1 %2238  ;;  %v2829_v55 = vrot.slane %v2825_v49, 2  ;;  %v2843_v11 = vmul.f32 %v5039_v19, %v2841_v34  ;;  %v2842_v27 = vmul.f32 %v5043_v1, %v2841_v34  ;;  %v1983_v41 = vadd.f32 %v1978_v4, %v1953_v26  ;;  %v6212_v4 = vld [vmem:[#allocation32_spill] sm:$0xff] }
 0x252   : > { %v5557_v60 = vpop.permute.xlu0 %2236  ;;  %v1982_v15 = vadd.f32 %v1979_v62, %v1952_v0  ;;  %v2030_v51 = vadd.f32 %v6210_v45, %v1996_v14  ;;  %v2029_v36 = vadd.f32 %v6211_v17, %v1995_v33  ;;  %v2296_v47 = vstv %s5522_s19  ;;  %s5788_s19 = sld [smem:[#allocation3 + $0xc7]] }
 0x253   : > { %2800 = vrot.lane.b32.xlu1 %v2796_v3, %s3682_s30  ;;  %v2152_v3 = vrot.slane %v2148_v10, 3  ;;  %v5582_v13 = vmul.f32 %v5039_v19, %v2858_v16  ;;  %v2859_v12 = vmul.f32 %v5043_v1, %v2858_v16  ;;  %v2013_v59 = vadd.f32 %v6212_v4, %v1983_v41 }
 0x254   : > { %2798 = vrot.lane.b32.xlu0 %v2797_v61, %s3682_s30  ;;  %v2012_v8 = vadd.f32 %v6213_v28, %v1982_v15  ;;  %v2064_v63 = vadd.f32 %v5299_v32, %v2030_v51  ;;  %v2063_v49 = vadd.f32 %v5301_v42, %v2029_v36  ;;  %v2831_v20 = vsel %vm424_vm1, %v2829_v55, %v2830_v31  ;;  %v3643_v51 = vld [vmem:[%s3726_s28 + $0x20] sm:$0xff] }
 0x255   : > { %v5576_v46 = vpop.permute.xlu1 %2255  ;;  %v2847_v26 = vrot.slane %v2843_v11, 2  ;;  %v2846_v54 = vrot.slane %v2842_v27, 2  ;;  %v2875_v0 = vstv %s5537_s20  ;;  %v2047_v61 = vadd.f32 %v5267_v23, %v2013_v59  ;;  %s3580_s20 = sld [smem:[#allocation3 + $0xbe]] }
 0x256   : > { %v5578_v18 = vpop.permute.xlu0 %2253  ;;  %v2046_v34 = vadd.f32 %v5269_v57, %v2012_v8  ;;  %v2098_v32 = vadd.f32 %v5346_v22, %v2064_v63  ;;  %v2097_v42 = vadd.f32 %v5348_v2, %v2063_v49  ;;  %v2864_v33 = vrot.slane %v5582_v13, 2 }
 0x257   : > { %2817 = vrot.lane.b32.xlu1 %v2813_v48, %s3683_s6  ;;  %v3642_v48 = vld [vmem:[%s3726_s28 + $0x28] sm:$0xff]  ;;  %v2309_v16 = vstv %s5559_s0  ;;  %v2081_v23 = vadd.f32 %v5323_v9, %v2047_v61  ;;  %v2154_v55 = vsel %vm587_vm2, %v2152_v3, %v2153_v43  ;;  %v2877_v11 = vmul.f32 %v5039_v19, %v2875_v0  ;;  %s5872_s0 = sld [smem:[#allocation3 + $0x5f]] }
 0x258   : > { %2815 = vrot.lane.b32.xlu0 %v2814_v21, %s3683_s6  ;;  %v5604_v14 = vmul.f32 %v3642_v48, %v2296_v47  ;;  %v2863_v21 = vrot.slane %v2859_v12, 2  ;;  %v2080_v57 = vadd.f32 %v5325_v56, %v2046_v34  ;;  %v2132_v22 = vadd.f32 %v5412_v37, %v2098_v32 }
 0x259   : > { %v5599_v62 = vpop.permute.xlu1 %2272  ;;  %v2131_v2 = vadd.f32 %v5414_v38, %v2097_v42  ;;  %v2876_v9 = vmul.f32 %v5043_v1, %v2875_v0  ;;  %v2115_v27 = vadd.f32 %v5386_v25, %v2081_v23  ;;  %v2848_v37 = vsel %vm424_vm1, %v2846_v54, %v2847_v26 }
 0x25a   : > { %v5601_v10 = vpop.permute.xlu0 %2270  ;;  %v2114_v56 = vadd.f32 %v5388_v40, %v2080_v57  ;;  %v2892_v38 = vstv %s5574_s22  ;;  %v2302_v45 = vrot.slane %v5604_v14, 4  ;;  %v2311_v17 = vmul.f32 %v3642_v48, %v2309_v16  ;;  %s5882_s22 = sld [smem:[#allocation3 + $0xc3]] }
 0x25b   : > { %2834 = vrot.lane.b32.xlu1 %v2830_v31, %s3683_s6  ;;  %v2297_v31 = vmul.f32 %v3643_v51, %v2296_v47  ;;  %v2310_v36 = vmul.f32 %v3643_v51, %v2309_v16  ;;  %v2158_v3 = vadd.f32 %v2153_v43, %v2132_v22  ;;  %v2157_v13 = vadd.f32 %v2154_v55, %v2131_v2 }
 0x25c   : > { %2832 = vrot.lane.b32.xlu0 %v2831_v20, %s3683_s6  ;;  %v2865_v12 = vsel %vm424_vm1, %v2863_v21, %v2864_v33  ;;  %v2935_v25 = vstv %s5589_s23  ;;  %v2881_v40 = vrot.slane %v2877_v11, 2  ;;  %v2880_v4 = vrot.slane %v2876_v9, 2  ;;  %s3267_s23 = sld [smem:[#allocation4]] }
 0x25d   : > { %v2290_v41 = vpop.permute.xlu1 %2289  ;;  %v2894_v59 = vmul.f32 %v5039_v19, %v2892_v38  ;;  %v2893_v47 = vmul.f32 %v5043_v1, %v2892_v38  ;;  %v2145_v28 = vadd.f32 %v2140_v35, %v2115_v27  ;;  %v2144_v53 = vadd.f32 %v5551_v24, %v2114_v56 }
 0x25e   : > { %v2288_v15 = vpop.permute.xlu0 %2287  ;;  %v2192_v43 = vadd.f32 %v5469_v29, %v2158_v3  ;;  %v2191_v8 = vadd.f32 %v5471_v30, %v2157_v13  ;;  %v2315_v20 = vrot.slane %v2311_v17, 4  ;;  %v2936_v54 = vmul.f32 %v5043_v1, %v2935_v25 }
 0x25f   : > { %2851 = vrot.lane.b32.xlu1 %v2847_v26, %s3684_s11  ;;  %v5643_v26 = vmul.f32 %v5039_v19, %v2935_v25  ;;  %v2952_v0 = vstv %s5608_s24  ;;  %v2175_v5 = vadd.f32 %v5438_v7, %v2145_v28  ;;  %v2174_v35 = vadd.f32 %v5440_v44, %v2144_v53  ;;  %s3599_s24 = sld [smem:[#allocation4 + $0x1]] }
 0x260   : > { %2849 = vrot.lane.b32.xlu0 %v2848_v37, %s3684_s11  ;;  %v2226_v24 = vadd.f32 %v5517_v52, %v2192_v43  ;;  %v2225_v29 = vadd.f32 %v5519_v58, %v2191_v8  ;;  %v2314_v30 = vrot.slane %v2310_v36, 4  ;;  %v2882_v61 = vsel %vm424_vm1, %v2880_v4, %v2881_v40  ;;  %v5681_v37 = vld [vmem:[%s3726_s28 + $0x38] sm:$0xff] }
 0x261   : > { %v2333_v63 = vpop.permute.xlu1 %2332  ;;  %v2898_v34 = vrot.slane %v2894_v59, 2  ;;  %v2897_v32 = vrot.slane %v2893_v47, 2  ;;  %v2209_v42 = vadd.f32 %v5491_v39, %v2175_v5  ;;  %v2208_v7 = vadd.f32 %v5493_v6, %v2174_v35 }
 0x262   : > { %v2331_v49 = vpop.permute.xlu0 %2330  ;;  %v2260_v44 = vadd.f32 %v5576_v46, %v2226_v24  ;;  %v2259_v52 = vadd.f32 %v5578_v18, %v2225_v29  ;;  %v2301_v58 = vrot.slane %v2297_v31, 4  ;;  %v2941_v21 = vrot.slane %v5643_v26, 3 }
 0x263   : > { %2868 = vrot.lane.b32.xlu1 %v2864_v33, %s3684_s11  ;;  %v2940_v16 = vrot.slane %v2936_v54, 3  ;;  %v2954_v23 = vmul.f32 %v5039_v19, %v2952_v0  ;;  %v2243_v57 = vadd.f32 %v5555_v50, %v2209_v42  ;;  %v2242_v22 = vadd.f32 %v5557_v60, %v2208_v7 }
 0x264   : > { %2866 = vrot.lane.b32.xlu0 %v2865_v12, %s3684_s11  ;;  %v2294_v39 = vadd.f32 %v2290_v41, %v2260_v44  ;;  %v2293_v2 = vadd.f32 %v2288_v15, %v2259_v52  ;;  %v2316_v6 = vsel %vm750_vm3, %v2314_v30, %v2315_v20  ;;  %v2953_v46 = vmul.f32 %v5043_v1, %v2952_v0  ;;  %v5685_v41 = vld [vmem:[%s3726_s28 + $0x30] sm:$0xff]  ;;  %s5696_s28 = sld [smem:[#allocation3 + $0x4b]] }
 0x265   : > { %v2350_v48 = vpop.permute.xlu1 %2349  ;;  %v2277_v18 = vadd.f32 %v5599_v62, %v2243_v57  ;;  %v2276_v55 = vadd.f32 %v5601_v10, %v2242_v22  ;;  %v2899_v19 = vsel %vm424_vm1, %v2897_v32, %v2898_v34  ;;  %v2969_v50 = vstv %s5640_s25 }
 0x266   : > { %v2348_v33 = vpop.permute.xlu0 %2347  ;;  %v2303_v60 = vsel %vm750_vm3, %v2301_v58, %v2302_v45  ;;  %v2320_v27 = vadd.f32 %v2315_v20, %v2294_v39  ;;  %v2319_v1 = vadd.f32 %v2316_v6, %v2293_v2  ;;  %v2942_v56 = vsel %vm587_vm2, %v2940_v16, %v2941_v21 }
 0x267   : > { %2885 = vrot.lane.b32.xlu1 %v2881_v40, %s3685_s14  ;;  %v2958_v62 = vrot.slane %v2954_v23, 3  ;;  %v2957_v10 = vrot.slane %v2953_v46, 3  ;;  %v2971_v38 = vmul.f32 %v5681_v37, %v2969_v50  ;;  %v2970_v15 = vmul.f32 %v5685_v41, %v2969_v50 }
 0x268   : > { %2883 = vrot.lane.b32.xlu0 %v2882_v61, %s3685_s14  ;;  %v2986_v51 = vstv %s5654_s26  ;;  %v2307_v31 = vadd.f32 %v2302_v45, %v2277_v18  ;;  %v2306_v17 = vadd.f32 %v2303_v60, %v2276_v55  ;;  %v2354_v36 = vadd.f32 %v2350_v48, %v2320_v27 }
 0x269   : > { %v2367_v11 = vpop.permute.xlu1 %2366  ;;  %v2353_v3 = vadd.f32 %v2348_v33, %v2319_v1  ;;  %v2975_v47 = vrot.slane %v2971_v38, 3  ;;  %v2974_v28 = vrot.slane %v2970_v15, 3  ;;  %v2988_v14 = vmul.f32 %v5681_v37, %v2986_v51 }
 0x26a   : > { %v2365_v9 = vpop.permute.xlu0 %2364  ;;  %v2337_v25 = vadd.f32 %v2333_v63, %v2307_v31  ;;  %v2336_v40 = vadd.f32 %v2331_v49, %v2306_v17  ;;  %v2959_v43 = vsel %vm587_vm2, %v2957_v10, %v2958_v62  ;;  %v2987_v8 = vmul.f32 %v5685_v41, %v2986_v51 }
 0x26b   : > { %2902 = vrot.lane.b32.xlu1 %v2898_v34, %s3685_s14  ;;  %v3003_v20 = vstv %s5675_s27  ;;  %v2976_v0 = vsel %vm587_vm2, %v2974_v28, %v2975_v47  ;;  %v2992_v5 = vrot.slane %v2988_v14, 3  ;;  %v3020_v30 = vstv %s5691_s29 }
 0x26c   : > { %2900 = vrot.lane.b32.xlu0 %v2899_v19, %s3685_s14  ;;  %v2371_v45 = vadd.f32 %v2367_v11, %v2337_v25  ;;  %v2370_v53 = vadd.f32 %v2365_v9, %v2336_v40  ;;  %v2991_v35 = vrot.slane %v2987_v8, 3  ;;  %v3005_v24 = vmul.f32 %v5681_v37, %v3003_v20 }
 0x26d   : > { %v2384_v13 = vpop.permute.xlu1 %2383  ;;  %v3004_v29 = vmul.f32 %v5685_v41, %v3003_v20  ;;  %v2461_v7 = vstv %s5696_s28  ;;  %v3022_v44 = vmul.f32 %v5681_v37, %v3020_v30  ;;  %v3021_v52 = vmul.f32 %v5685_v41, %v3020_v30 }
 0x26e   : > { %v2382_v12 = vpop.permute.xlu0 %2381  ;;  %v2388_v4 = vadd.f32 %v2384_v13, %v2354_v36  ;;  %v2993_v58 = vsel %vm587_vm2, %v2991_v35, %v2992_v5  ;;  %v3009_v48 = vrot.slane %v3005_v24, 3  ;;  %v2463_v39 = vmul.f32 %v5681_v37, %v2461_v7 }
 0x26f   : > { %v2387_v59 = vadd.f32 %v2382_v12, %v2353_v3  ;;  %2945 = vrot.lane.b32.xlu1 %v2941_v21, %s3682_s30  ;;  %v3008_v33 = vrot.slane %v3004_v29, 3  ;;  %v3037_v21 = vstv %s5700_s4  ;;  %v3026_v2 = vrot.slane %v3022_v44, 3 }
 0x270   : > { %2943 = vrot.lane.b32.xlu0 %v2942_v56, %s3682_s30  ;;  %v3025_v6 = vrot.slane %v3021_v52, 3  ;;  %v2467_v46 = vstv %s5706_s5  ;;  %v3039_v18 = vmul.f32 %v5681_v37, %v3037_v21  ;;  %v2462_v19 = vmul.f32 %v5685_v41, %v2461_v7 }
 0x271   : > { %v2401_v63 = vpop.permute.xlu1 %2400  ;;  %v3010_v55 = vsel %vm587_vm2, %v3008_v33, %v3009_v48  ;;  %v3038_v50 = vmul.f32 %v5685_v41, %v3037_v21  ;;  %v3054_v60 = vstv %s5711_s7  ;;  %v2469_v56 = vmul.f32 %v5681_v37, %v2467_v46 }
 0x272   : > { %v2399_v49 = vpop.permute.xlu0 %2398  ;;  %v2405_v26 = vadd.f32 %v2401_v63, %v2371_v45  ;;  %v3027_v10 = vsel %vm587_vm2, %v3025_v6, %v3026_v2  ;;  %v3043_v38 = vrot.slane %v3039_v18, 3  ;;  %v3056_v15 = vmul.f32 %v5681_v37, %v3054_v60 }
 0x273   : > { %v2404_v54 = vadd.f32 %v2399_v49, %v2370_v53  ;;  %2962 = vrot.lane.b32.xlu1 %v2958_v62, %s3682_s30  ;;  %v2468_v62 = vmul.f32 %v5685_v41, %v2467_v46  ;;  %v3055_v51 = vmul.f32 %v5685_v41, %v3054_v60  ;;  %v3042_v36 = vrot.slane %v3038_v50, 3 }
 0x274   : > { %2960 = vrot.lane.b32.xlu0 %v2959_v43, %s3682_s30  ;;  %v3097_v3 = vstv %s5720_s8  ;;  %v3114_v63 = vstv %s5731_s9  ;;  %v3131_v24 = vstv %s5741_s10 }
 0x275   : > { %v2418_v61 = vpop.permute.xlu1 %2417  ;;  %v3044_v45 = vsel %vm587_vm2, %v3042_v36, %v3043_v38  ;;  %v3098_v53 = vmul.f32 %v5685_v41, %v3097_v3  ;;  %v3115_v35 = vmul.f32 %v5685_v41, %v3114_v63  ;;  %v3165_v18 = vstv %s5757_s13 }
 0x276   : > { %v2416_v34 = vpop.permute.xlu0 %2415  ;;  %v2422_v32 = vadd.f32 %v2418_v61, %v2388_v4  ;;  %v3060_v4 = vrot.slane %v3056_v15, 3  ;;  %v2585_v50 = vstv %s5759_s15 }
 0x277   : > { %v2421_v42 = vadd.f32 %v2416_v34, %v2387_v59  ;;  %2979 = vrot.lane.b32.xlu1 %v2975_v47, %s3683_s6  ;;  %v3059_v59 = vrot.slane %v3055_v51, 3  ;;  %v3099_v47 = vmul.f32 %v5681_v37, %v3097_v3  ;;  %v3119_v52 = vrot.slane %v3115_v35, 4 }
 0x278   : > { %2977 = vrot.lane.b32.xlu0 %v2976_v0, %s3683_s6  ;;  %v3102_v0 = vrot.slane %v3098_v53, 4  ;;  %v2586_v15 = vmul.f32 %v5685_v41, %v2585_v50 }
 0x279   : > { %v2435_v16 = vpop.permute.xlu1 %2434 }
 0x27a   : > { %v2433_v23 = vpop.permute.xlu0 %2432  ;;  %v2439_v57 = vadd.f32 %v2435_v16, %v2405_v26  ;;  %v3061_v26 = vsel %vm587_vm2, %v3059_v59, %v3060_v4 }
 0x27b   : > { %v2438_v22 = vadd.f32 %v2433_v23, %v2404_v54  ;;  %2996 = vrot.lane.b32.xlu1 %v2992_v5, %s3683_s6  ;;  %v3103_v54 = vrot.slane %v3099_v47, 4  ;;  %v3116_v5 = vmul.f32 %v5681_v37, %v3114_v63 }
 0x27c   : > { %2994 = vrot.lane.b32.xlu0 %v2993_v58, %s3683_s6  ;;  %v2465_v31 = vadd.f32 %v2463_v39, %v2439_v57  ;;  %v3148_v58 = vstv %s5748_s12 }
 0x27d   : > { %v2452_v11 = vpop.permute.xlu1 %2451  ;;  %v2464_v17 = vadd.f32 %v2462_v19, %v2438_v22  ;;  %v3104_v7 = vsel %vm750_vm3, %v3102_v0, %v3103_v54  ;;  %v3120_v44 = vrot.slane %v3116_v5, 4  ;;  %v3150_v22 = vmul.f32 %v5681_v37, %v3148_v58 }
 0x27e   : > { %v2450_v9 = vpop.permute.xlu0 %2449  ;;  %v2456_v27 = vadd.f32 %v2452_v11, %v2422_v32  ;;  %v3133_v32 = vmul.f32 %v5681_v37, %v3131_v24 }
 0x27f   : > { %v2455_v1 = vadd.f32 %v2450_v9, %v2421_v42  ;;  %3013 = vrot.lane.b32.xlu1 %v3009_v48, %s3684_s11  ;;  %v3132_v42 = vmul.f32 %v5685_v41, %v3131_v24  ;;  %v3121_v39 = vsel %vm750_vm3, %v3119_v52, %v3120_v44  ;;  %v3154_v11 = vrot.slane %v3150_v22, 4 }
 0x280   : > { %3011 = vrot.lane.b32.xlu0 %v3010_v55, %s3684_s11  ;;  %v2471_v28 = vadd.f32 %v2469_v56, %v2456_v27  ;;  %v3137_v23 = vrot.slane %v3133_v32, 4  ;;  %v3167_v27 = vmul.f32 %v5681_v37, %v3165_v18  ;;  %v3182_v56 = vstv %s5767_s16 }
 0x281   : > { %v2481_v13 = vpop.permute.xlu1 %2480  ;;  %v2470_v14 = vadd.f32 %v2468_v62, %v2455_v1  ;;  %v3136_v57 = vrot.slane %v3132_v42, 4  ;;  %v3166_v1 = vmul.f32 %v5685_v41, %v3165_v18  ;;  %v3184_v36 = vmul.f32 %v5681_v37, %v3182_v56 }
 0x282   : > { %v2479_v12 = vpop.permute.xlu0 %2478  ;;  %v2485_v25 = vadd.f32 %v2481_v13, %v2465_v31  ;;  %v3183_v3 = vmul.f32 %v5685_v41, %v3182_v56 }
 0x283   : > { %v2484_v40 = vadd.f32 %v2479_v12, %v2464_v17  ;;  %3030 = vrot.lane.b32.xlu1 %v3026_v2, %s3684_s11  ;;  %v3149_v2 = vmul.f32 %v5685_v41, %v3148_v58  ;;  %v3138_v60 = vsel %vm750_vm3, %v3136_v57, %v3137_v23  ;;  %v2598_v17 = vstv %s5769_s17 }
 0x284   : > { %3028 = vrot.lane.b32.xlu0 %v3027_v10, %s3684_s11  ;;  %v3171_v12 = vrot.slane %v3167_v27, 4  ;;  %v3187_v63 = vrot.slane %v3183_v3, 4 }
 0x285   : > { %v2495_v43 = vpop.permute.xlu1 %2494  ;;  %v3153_v9 = vrot.slane %v3149_v2, 4 }
 0x286   : > { %v2493_v8 = vpop.permute.xlu0 %2492  ;;  %v2499_v49 = vadd.f32 %v2495_v43, %v2471_v28  ;;  %v2590_v28 = vrot.slane %v2586_v15, 1 }
 0x287   : > { %v2498_v20 = vadd.f32 %v2493_v8, %v2470_v14  ;;  %3047 = vrot.lane.b32.xlu1 %v3043_v38, %s3685_s14  ;;  %v2587_v38 = vmul.f32 %v5681_v37, %v2585_v50  ;;  %v3155_v13 = vsel %vm750_vm3, %v3153_v9, %v3154_v11  ;;  %v2600_v14 = vmul.f32 %v5681_v37, %v2598_v17 }
 0x288   : > { %3045 = vrot.lane.b32.xlu0 %v3044_v45, %s3685_s14  ;;  %v2599_v45 = vmul.f32 %v5685_v41, %v2598_v17  ;;  %v3188_v8 = vrot.slane %v3184_v36, 4 }
 0x289   : > { %v2509_v29 = vpop.permute.xlu1 %2508  ;;  %v2591_v47 = vrot.slane %v2587_v38, 1  ;;  %v2604_v35 = vrot.slane %v2600_v14, 1 }
 0x28a   : > { %v2507_v30 = vpop.permute.xlu0 %2506  ;;  %v2513_v61 = vadd.f32 %v2509_v29, %v2485_v25  ;;  %v3170_v25 = vrot.slane %v3166_v1, 4  ;;  %v2603_v24 = vrot.slane %v2599_v45, 1  ;;  %v3216_v29 = vstv %s5788_s19 }
 0x28b   : > { %v2512_v34 = vadd.f32 %v2507_v30, %v2484_v40  ;;  %3064 = vrot.lane.b32.xlu1 %v3060_v4, %s3685_s14  ;;  %v3199_v40 = vstv %s5776_s18  ;;  %v2592_v5 = vsel %vm261_vm0, %v2590_v28, %v2591_v47  ;;  %v3218_v52 = vmul.f32 %v5681_v37, %v3216_v29 }
 0x28c   : > { %3062 = vrot.lane.b32.xlu0 %v3061_v26, %s3685_s14  ;;  %v3172_v26 = vsel %vm750_vm3, %v3170_v25, %v3171_v12  ;;  %v3217_v58 = vmul.f32 %v5685_v41, %v3216_v29 }
 0x28d   : > { %v2523_v48 = vpop.permute.xlu1 %2522  ;;  %v3222_v2 = vrot.slane %v3218_v52, 4 }
 0x28e   : > { %v2521_v33 = vpop.permute.xlu0 %2520  ;;  %v2527_v21 = vadd.f32 %v2523_v48, %v2499_v49  ;;  %v3201_v49 = vmul.f32 %v5681_v37, %v3199_v40 }
 0x28f   : > { %v2526_v16 = vadd.f32 %v2521_v33, %v2498_v20  ;;  %3107 = vrot.lane.b32.xlu1 %v3103_v54, %s3682_s30  ;;  %v3200_v20 = vmul.f32 %v5685_v41, %v3199_v40 }
 0x290   : > { %3105 = vrot.lane.b32.xlu0 %v3104_v7, %s3682_s30  ;;  %v3205_v32 = vrot.slane %v3201_v49, 4 }
 0x291   : > { %v2537_v6 = vpop.permute.xlu1 %2536  ;;  %v3204_v42 = vrot.slane %v3200_v20, 4 }
 0x292   : > { %v2535_v46 = vpop.permute.xlu0 %2534  ;;  %v2541_v55 = vadd.f32 %v2537_v6, %v2513_v61  ;;  %v3221_v6 = vrot.slane %v3217_v58, 4 }
 0x293   : > { %v2540_v19 = vadd.f32 %v2535_v46, %v2512_v34  ;;  %3124 = vrot.lane.b32.xlu1 %v3120_v44, %s3682_s30  ;;  %v3189_v34 = vsel %vm750_vm3, %v3187_v63, %v3188_v8  ;;  %v3206_v57 = vsel %vm750_vm3, %v3204_v42, %v3205_v32 }
 0x294   : > { %3122 = vrot.lane.b32.xlu0 %v3121_v39, %s3682_s30  ;;  %v3223_v50 = vsel %vm750_vm3, %v3221_v6, %v3222_v2 }
 0x295   : > { %v2551_v62 = vpop.permute.xlu1 %2550 }
 0x296   : > { %v2549_v10 = vpop.permute.xlu0 %2548  ;;  %v2555_v51 = vadd.f32 %v2551_v62, %v2527_v21  ;;  %v2605_v21 = vsel %vm261_vm0, %v2603_v24, %v2604_v35 }
 0x297   : > { %v2554_v31 = vadd.f32 %v2549_v10, %v2526_v16  ;;  %3141 = vrot.lane.b32.xlu1 %v3137_v23, %s3683_s6 }
 0x298   : > { %3139 = vrot.lane.b32.xlu0 %v3138_v60, %s3683_s6 }
 0x299   : > { %v2565_v4 = vpop.permute.xlu1 %2564 }
 0x29a   : > { %v2563_v59 = vpop.permute.xlu0 %2562  ;;  %v2569_v53 = vadd.f32 %v2565_v4, %v2541_v55 }
 0x29b   : > { %v2568_v43 = vadd.f32 %v2563_v59, %v2540_v19  ;;  %3158 = vrot.lane.b32.xlu1 %v3154_v11, %s3683_s6 }
 0x29c   : > { %3156 = vrot.lane.b32.xlu0 %v3155_v13, %s3683_s6  ;;  %v2596_v7 = vadd.f32 %v2591_v47, %v2569_v53  ;;  %s3569_s6 = sld [smem:[#allocation3 + $0x55]] }
 0x29d   : > { %v2579_v54 = vpop.permute.xlu1 %2578  ;;  %v2595_v44 = vadd.f32 %v2592_v5, %v2568_v43 }
 0x29e   : > { %v2577_v0 = vpop.permute.xlu0 %2576  ;;  %v2583_v30 = vadd.f32 %v2579_v54, %v2555_v51 }
 0x29f   : > { %v2582_v61 = vadd.f32 %v2577_v0, %v2554_v31  ;;  %3175 = vrot.lane.b32.xlu1 %v3171_v12, %s3684_s11 }
 0x2a0   : > { %3173 = vrot.lane.b32.xlu0 %v3172_v26, %s3684_s11  ;;  %v2609_v22 = vadd.f32 %v2604_v35, %v2583_v30 }
 0x2a1   : > { %v2622_v48 = vpop.permute.xlu1 %2621  ;;  %v2608_v39 = vadd.f32 %v2605_v21, %v2582_v61 }
 0x2a2   : > { %v2620_v33 = vpop.permute.xlu0 %2619  ;;  %v2626_v16 = vadd.f32 %v2622_v48, %v2596_v7  ;;  %v2747_v58 = vstv %s3569_s6 }
 0x2a3   : > { %v2625_v23 = vadd.f32 %v2620_v33, %v2595_v44  ;;  %3192 = vrot.lane.b32.xlu1 %v3188_v8, %s3684_s11  ;;  %v2748_v21 = vmul.f32 %v5685_v41, %v2747_v58 }
 0x2a4   : > { %3190 = vrot.lane.b32.xlu0 %v3189_v34, %s3684_s11  ;;  %s3570_s11 = sld [smem:[#allocation3 + $0xb9]] }
 0x2a5   : > { %v2639_v46 = vpop.permute.xlu1 %2638 }
 0x2a6   : > { %v2637_v18 = vpop.permute.xlu0 %2636  ;;  %v2643_v55 = vadd.f32 %v2639_v46, %v2609_v22 }
 0x2a7   : > { %v2642_v19 = vadd.f32 %v2637_v18, %v2608_v39  ;;  %3209 = vrot.lane.b32.xlu1 %v3205_v32, %s3685_s14  ;;  %v2752_v39 = vrot.slane %v2748_v21, 2 }
 0x2a8   : > { %3207 = vrot.lane.b32.xlu0 %v3206_v57, %s3685_s14 }
 0x2a9   : > { %v2656_v60 = vpop.permute.xlu1 %2655 }
 0x2aa   : > { %v2654_v11 = vpop.permute.xlu0 %2653  ;;  %v2660_v9 = vadd.f32 %v2656_v60, %v2626_v16  ;;  %v2749_v16 = vmul.f32 %v5681_v37, %v2747_v58 }
 0x2ab   : > { %v2659_v27 = vadd.f32 %v2654_v11, %v2625_v23  ;;  %3226 = vrot.lane.b32.xlu1 %v3222_v2, %s3685_s14  ;;  %v2760_v23 = vstv %s3570_s11 }
 0x2ac   : > { %3224 = vrot.lane.b32.xlu0 %v3223_v50, %s3685_s14  ;;  %s3579_s14 = sld [smem:[#allocation3 + $0x5a]]  ;;  %v2753_v2 = vrot.slane %v2749_v16, 2  ;;  %v2761_v6 = vmul.f32 %v5685_v41, %v2760_v23  ;;  %v2762_v46 = vmul.f32 %v5681_v37, %v2760_v23 }
 0x2ad   : > { %v2673_v1 = vpop.permute.xlu1 %2672 }
 0x2ae   : > { %v2671_v56 = vpop.permute.xlu0 %2670  ;;  %v2677_v62 = vadd.f32 %v2673_v1, %v2643_v55  ;;  %v2765_v50 = vrot.slane %v2761_v6, 2  ;;  %v2766_v60 = vrot.slane %v2762_v46, 2 }
 0x2af   : > { %v2676_v10 = vadd.f32 %v2671_v56, %v2642_v19  ;;  %v2754_v19 = vsel %vm424_vm1, %v2752_v39, %v2753_v2 }
 0x2b1   : > { %v2690_v38 = vpop.permute.xlu1 %2689 }
 0x2b2   : > { %v2688_v15 = vpop.permute.xlu0 %2687  ;;  %v2694_v51 = vadd.f32 %v2690_v38, %v2660_v9  ;;  %v2909_v11 = vstv %s3579_s14 }
 0x2b3   : > { %v2693_v31 = vadd.f32 %v2688_v15, %v2659_v27  ;;  %v2911_v38 = vmul.f32 %v5681_v37, %v2909_v11 }
 0x2b5   : > { %v2707_v17 = vpop.permute.xlu1 %2706 }
 0x2b6   : > { %v2705_v36 = vpop.permute.xlu0 %2704  ;;  %v2711_v3 = vadd.f32 %v2707_v17, %v2677_v62  ;;  %v2767_v62 = vsel %vm424_vm1, %v2765_v50, %v2766_v60 }
 0x2b7   : > { %v2710_v13 = vadd.f32 %v2705_v36, %v2676_v10  ;;  %v2910_v10 = vmul.f32 %v5685_v41, %v2909_v11 }
 0x2b9   : > { %v2724_v12 = vpop.permute.xlu1 %2723 }
 0x2ba   : > { %v2722_v25 = vpop.permute.xlu0 %2721  ;;  %v2728_v40 = vadd.f32 %v2724_v12, %v2694_v51 }
 0x2bb   : > { %v2727_v4 = vadd.f32 %v2722_v25, %v2693_v31  ;;  %v2922_v31 = vstv %s3580_s20 }
 0x2bc   : > { %v2758_v1 = vadd.f32 %v2753_v2, %v2728_v40  ;;  %v2914_v40 = vrot.slane %v2910_v10, 3 }
 0x2bd   : > { %v2741_v59 = vpop.permute.xlu1 %2740  ;;  %v2757_v56 = vadd.f32 %v2754_v19, %v2727_v4  ;;  %v2915_v4 = vrot.slane %v2911_v38, 3 }
 0x2be   : > { %v2739_v47 = vpop.permute.xlu0 %2738  ;;  %v2745_v28 = vadd.f32 %v2741_v59, %v2711_v3  ;;  %v2923_v59 = vmul.f32 %v5685_v41, %v2922_v31 }
 0x2bf   : > { %v2744_v14 = vadd.f32 %v2739_v47, %v2710_v13  ;;  %v2924_v47 = vmul.f32 %v5681_v37, %v2922_v31  ;;  %v2916_v39 = vsel %vm587_vm2, %v2914_v40, %v2915_v4 }
 0x2c0   : > { %v2771_v3 = vadd.f32 %v2766_v60, %v2745_v28  ;;  %v2927_v2 = vrot.slane %v2923_v59, 3 }
 0x2c1   : > { %v2784_v45 = vpop.permute.xlu1 %2783  ;;  %v2770_v13 = vadd.f32 %v2767_v62, %v2744_v14 }
 0x2c2   : > { %v2782_v53 = vpop.permute.xlu0 %2781  ;;  %v2788_v15 = vadd.f32 %v2784_v45, %v2758_v1 }
 0x2c3   : > { %v2787_v51 = vadd.f32 %v2782_v53, %v2757_v56 }
 0x2c5   : > { %v5820_v43 = vpop.permute.xlu1 %2800 }
 0x2c6   : > { %v5822_v8 = vpop.permute.xlu0 %2798  ;;  %v2805_v45 = vadd.f32 %v5820_v43, %v2771_v3  ;;  %v2928_v43 = vrot.slane %v2924_v47, 3 }
 0x2c7   : > { %v2804_v53 = vadd.f32 %v5822_v8, %v2770_v13 }
 0x2c9   : > { %v2818_v63 = vpop.permute.xlu1 %2817 }
 0x2ca   : > { %v2816_v49 = vpop.permute.xlu0 %2815  ;;  %v2822_v12 = vadd.f32 %v2818_v63, %v2788_v15 }
 0x2cb   : > { %v2821_v25 = vadd.f32 %v2816_v49, %v2787_v51 }
 0x2cd   : > { %v5824_v20 = vpop.permute.xlu1 %2834 }
 0x2ce   : > { %v5826_v26 = vpop.permute.xlu0 %2832  ;;  %v2839_v14 = vadd.f32 %v5824_v20, %v2805_v45 }
 0x2cf   : > { %v2838_v63 = vadd.f32 %v5826_v26, %v2804_v53 }
 0x2d1   : > { %v2852_v54 = vpop.permute.xlu1 %2851 }
 0x2d2   : > { %v2850_v0 = vpop.permute.xlu0 %2849  ;;  %v2856_v58 = vadd.f32 %v2852_v54, %v2822_v12  ;;  %v3071_v54 = vstv %s5872_s0 }
 0x2d3   : > { %v2855_v21 = vadd.f32 %v2850_v0, %v2821_v25  ;;  %v3073_v60 = vmul.f32 %v5681_v37, %v3071_v54 }
 0x2d5   : > { %v5828_v5 = vpop.permute.xlu1 %2868  ;;  %v3077_v15 = vrot.slane %v3073_v60, 4 }
 0x2d6   : > { %v5830_v35 = vpop.permute.xlu0 %2866  ;;  %v2873_v6 = vadd.f32 %v5828_v5, %v2839_v14 }
 0x2d7   : > { %v2872_v8 = vadd.f32 %v5830_v35, %v2838_v63  ;;  %v3084_v35 = vstv %s5882_s22 }
 0x2d8   : > { %v3085_v51 = vmul.f32 %v5685_v41, %v3084_v35  ;;  %v3086_v31 = vmul.f32 %v5681_v37, %v3084_v35 }
 0x2d9   : > { %v2886_v24 = vpop.permute.xlu1 %2885 }
 0x2da   : > { %v2884_v29 = vpop.permute.xlu0 %2883  ;;  %v2890_v49 = vadd.f32 %v2886_v24, %v2856_v58  ;;  %v2929_v24 = vsel %vm587_vm2, %v2927_v2, %v2928_v43 }
 0x2db   : > { %v2889_v23 = vadd.f32 %v2884_v29, %v2855_v21  ;;  %v3072_v29 = vmul.f32 %v5685_v41, %v3071_v54 }
 0x2dc   : > { %v2920_v50 = vadd.f32 %v2915_v4, %v2890_v49  ;;  %v3089_v4 = vrot.slane %v3085_v51, 4 }
 0x2dd   : > { %v5832_v30 = vpop.permute.xlu1 %2902  ;;  %v2919_v26 = vadd.f32 %v2916_v39, %v2889_v23  ;;  %v3076_v38 = vrot.slane %v3072_v29, 4 }
 0x2de   : > { %v5834_v61 = vpop.permute.xlu0 %2900  ;;  %v2907_v19 = vadd.f32 %v5832_v30, %v2873_v6 }
 0x2df   : > { %v2906_v20 = vadd.f32 %v5834_v61, %v2872_v8  ;;  %v3078_v37 = vsel %vm750_vm3, %v3076_v38, %v3077_v15  ;;  %v3300_v38 = vstv %s3599_s24 }
 0x2e0   : > { %v2933_v62 = vadd.f32 %v2928_v43, %v2907_v19 }
 0x2e1   : > { %v5836_v34 = vpop.permute.xlu1 %2945  ;;  %v2932_v10 = vadd.f32 %v2929_v24, %v2906_v20 }
 0x2e2   : > { %v5838_v32 = vpop.permute.xlu0 %2943  ;;  %v2950_v11 = vadd.f32 %v5836_v34, %v2920_v50 }
 0x2e3   : > { %v2949_v5 = vadd.f32 %v5838_v32, %v2919_v26 }
 0x2e5   : > { %v5840_v42 = vpop.permute.xlu1 %2962 }
 0x2e6   : > { %v5842_v7 = vpop.permute.xlu0 %2960  ;;  %v2967_v3 = vadd.f32 %v5840_v42, %v2933_v62  ;;  %v3090_v42 = vrot.slane %v3086_v31, 4 }
 0x2e7   : > { %v2966_v34 = vadd.f32 %v5842_v7, %v2932_v10 }
 0x2e9   : > { %v5844_v44 = vpop.permute.xlu1 %2979 }
 0x2ea   : > { %v5846_v52 = vpop.permute.xlu0 %2977  ;;  %v2984_v30 = vadd.f32 %v5844_v44, %v2950_v11 }
 0x2eb   : > { %v2983_v61 = vadd.f32 %v5846_v52, %v2949_v5 }
 0x2ed   : > { %v5848_v48 = vpop.permute.xlu1 %2996 }
 0x2ee   : > { %v5850_v33 = vpop.permute.xlu0 %2994  ;;  %v3001_v44 = vadd.f32 %v5848_v48, %v2967_v3 }
 0x2ef   : > { %v3000_v52 = vadd.f32 %v5850_v33, %v2966_v34 }
 0x2f1   : > { %v5854_v57 = vpop.permute.xlu1 %3013 }
 0x2f2   : > { %v5856_v22 = vpop.permute.xlu0 %3011  ;;  %v3018_v32 = vadd.f32 %v5854_v57, %v2984_v30 }
 0x2f3   : > { %v3017_v13 = vadd.f32 %v5856_v22, %v2983_v61 }
 0x2f5   : > { %v5860_v18 = vpop.permute.xlu1 %3030 }
 0x2f6   : > { %v5862_v55 = vpop.permute.xlu0 %3028  ;;  %v3035_v7 = vadd.f32 %v5860_v18, %v3001_v44 }
 0x2f7   : > { %v3034_v57 = vadd.f32 %v5862_v55, %v3000_v52 }
 0x2f9   : > { %v5865_v9 = vpop.permute.xlu1 %3047 }
 0x2fa   : > { %v5867_v27 = vpop.permute.xlu0 %3045  ;;  %v3052_v40 = vadd.f32 %v5865_v9, %v3018_v32  ;;  %v3091_v9 = vsel %vm750_vm3, %v3089_v4, %v3090_v42 }
 0x2fb   : > { %v3051_v41 = vadd.f32 %v5867_v27, %v3017_v13 }
 0x2fc   : > { %v3082_v45 = vadd.f32 %v3077_v15, %v3052_v40 }
 0x2fd   : > { %v5874_v17 = vpop.permute.xlu1 %3064  ;;  %v3081_v33 = vadd.f32 %v3078_v37, %v3051_v41 }
 0x2fe   : > { %v5876_v36 = vpop.permute.xlu0 %3062  ;;  %v3069_v47 = vadd.f32 %v5874_v17, %v3035_v7 }
 0x2ff   : > { %v3068_v48 = vadd.f32 %v5876_v36, %v3034_v57 }
 0x300   : > { %v3095_v14 = vadd.f32 %v3090_v42, %v3069_v47 }
 0x301   : > { %v3108_v16 = vpop.permute.xlu1 %3107  ;;  %v3094_v63 = vadd.f32 %v3091_v9, %v3068_v48 }
 0x302   : > { %v3106_v28 = vpop.permute.xlu0 %3105  ;;  %v3112_v53 = vadd.f32 %v3108_v16, %v3082_v45 }
 0x303   : > { %v3111_v27 = vadd.f32 %v3106_v28, %v3081_v33 }
 0x305   : > { %v3125_v0 = vpop.permute.xlu1 %3124 }
 0x306   : > { %v3123_v46 = vpop.permute.xlu0 %3122  ;;  %v3129_v23 = vadd.f32 %v3125_v0, %v3095_v14 }
 0x307   : > { %v3128_v55 = vadd.f32 %v3123_v46, %v3094_v63 }
 0x309   : > { %v3142_v1 = vpop.permute.xlu1 %3141 }
 0x30a   : > { %v3140_v56 = vpop.permute.xlu0 %3139  ;;  %v3146_v49 = vadd.f32 %v3142_v1, %v3112_v53  ;;  %v3268_v1 = vstv %s3267_s23 }
 0x30b   : > { %v3145_v18 = vadd.f32 %v3140_v56, %v3111_v27 }
 0x30d   : > { %v3159_v12 = vpop.permute.xlu1 %3158 }
 0x30e   : > { %v3157_v25 = vpop.permute.xlu0 %3156  ;;  %v3163_v6 = vadd.f32 %v3159_v12, %v3129_v23 }
 0x30f   : > { %v3162_v36 = vadd.f32 %v3157_v25, %v3128_v55 }
 0x311   : > { %v3176_v59 = vpop.permute.xlu1 %3175 }
 0x312   : > { %v3174_v22 = vpop.permute.xlu0 %3173  ;;  %v3180_v39 = vadd.f32 %v3176_v59, %v3146_v49 }
 0x313   : > { %v3179_v2 = vadd.f32 %v3174_v22, %v3145_v18 }
 0x315   : > { %v3193_v58 = vpop.permute.xlu1 %3192 }
 0x316   : > { %v3191_v21 = vpop.permute.xlu0 %3190  ;;  %v3197_v19 = vadd.f32 %v3193_v58, %v3163_v6 }
 0x317   : > { %v3196_v20 = vadd.f32 %v3191_v21, %v3162_v36 }
 0x319   : > { %v3210_v43 = vpop.permute.xlu1 %3209 }
 0x31a   : > { %v3208_v17 = vpop.permute.xlu0 %3207  ;;  %v3214_v8 = vadd.f32 %v3210_v43, %v3180_v39 }
 0x31b   : > { %v3213_v54 = vadd.f32 %v3208_v17, %v3179_v2 }
 0x31c   : > { %v3235_v16 = vrot.slane %v3214_v8, 1 }
 0x31d   : > { %v3234_v28 = vrot.slane %v3213_v54, 1  ;;  %v3227_v50 = vpop.permute.xlu1 %3226 }
 0x31e   : > { %v3225_v26 = vpop.permute.xlu0 %3224  ;;  %v3231_v24 = vadd.f32 %v3227_v50, %v3197_v19  ;;  %3243 = vrot.lane.b32.xlu1 %v3235_v16, %s3682_s30 }
 0x31f   : > { %v3230_v29 = vadd.f32 %v3225_v26, %v3196_v20  ;;  %v3236_v0 = vsel %vm261_vm0, %v3234_v28, %v3235_v16 }
 0x320   : > { %v3239_v46 = vsel %vm587_vm2, %v3213_v54, %v3236_v0  ;;  %v3253_v60 = vrot.slane %v3231_v24, 1 }
 0x321   : > { %v3252_v11 = vrot.slane %v3230_v29, 1  ;;  %3241 = vrot.lane.b32.xlu0 %v3239_v46, %s3682_s30 }
 0x322   : > { %3261 = vrot.lane.b32.xlu1 %v3253_v60, %s3682_s30 }
 0x323   : > { %v3254_v5 = vsel %vm261_vm0, %v3252_v11, %v3253_v60 }
 0x324   : > { %v3257_v35 = vsel %vm587_vm2, %v3230_v29, %v3254_v5 }
 0x325   : > { %3259 = vrot.lane.b32.xlu0 %v3257_v35, %s3682_s30  ;;  %s3605_s30 = sshll.u32 %s6215_s21, 5 }
 0x326   : > { %s128_s27 = scalar_lea.vmem %s5941_s3, %s3605_s30 }
 0x390   : > { %v3244_v56 = vpop.permute.xlu1 %3243 }
 0x391   : > { %v3249_v62 = vsel %vm3247_vm4, %v3235_v16, %v3244_v56 }
 0x392   : > { %v3270_v10 = vadd.f32 %v3268_v1, %v3249_v62 }
 0x393   : > { %v3242_v30 = vpop.permute.xlu0 %3241 }
 0x394   : > { %v3248_v61 = vsel %vm3247_vm4, %v3239_v46, %v3242_v30  ;;  %v3272_v15 = vand.u32 2147483647, %v3270_v10  ;;  %v3262_v31 = vpop.permute.xlu1 %3261  ;;  %vm3290_vm6 = vcmp.ge.f32.partialorder %v3270_v10, 0.0 }
 0x395   : > { %v3269_v51 = vadd.f32 %v3268_v1, %v3248_v61  ;;  %v3266_v3 = vsel %vm3247_vm4, %v3253_v60, %v3262_v31 }
 0x396   : > { %v3274_v34 = vsub.f32 0.0, %v3272_v15  ;;  %v3302_v13 = vadd.f32 %v3300_v38, %v3266_v3 }
 0x397   : > { %v3271_v32 = vand.u32 2147483647, %v3269_v51  ;;  %v3260_v12 = vpop.permute.xlu0 %3259  ;;  %vm3289_vm8 = vcmp.ge.f32.partialorder %v3269_v51, 0.0 }
 0x398   : > { %v3265_v25 = vsel %vm3247_vm4, %v3257_v35, %v3260_v12  ;;  %v3277_v44 = vmul.f32 1.442695, %v3274_v34  ;;  %v3304_v40 = vand.u32 2147483647, %v3302_v13  ;;  %vm3322_vm9 = vcmp.ge.f32.partialorder %v3302_v13, 0.0 }
 0x399   : > { %v3273_v52 = vsub.f32 0.0, %v3271_v32  ;;  %v3301_v41 = vadd.f32 %v3300_v38, %v3265_v25 }
 0x39a   : > { %3620 = vpow2.f32 %v3277_v44  ;;  %v3306_v4 = vsub.f32 0.0, %v3304_v40 }
 0x39b   : > { %v3275_v37 = vmul.f32 1.442695, %v3273_v52  ;;  %v3303_v42 = vand.u32 2147483647, %v3301_v41  ;;  %vm3321_vm10 = vcmp.ge.f32.partialorder %v3301_v41, 0.0 }
 0x39c   : > { %v3309_v7 = vmul.f32 1.442695, %v3306_v4 }
 0x39d   : > { %3622 = vpow2.f32 %v3275_v37  ;;  %v3305_v57 = vsub.f32 0.0, %v3303_v42 }
 0x39e   : > { %3624 = vpow2.f32 %v3309_v7 }
 0x39f   : > { %v3307_v59 = vmul.f32 1.442695, %v3305_v57 }
 0x3a1   : > { %3626 = vpow2.f32 %v3307_v59 }
 0x3a4   : > { %v3621_v22 = vpop.eup %3620 }
 0x3a5   : > { %v3280_v47 = vadd.f32 1.0, %v3621_v22 }
 0x3a7   : > { %v3623_v48 = vpop.eup %3622  ;;  %3628 = vrcp.f32 %v3280_v47 }
 0x3a8   : > { %v3279_v45 = vadd.f32 1.0, %v3623_v48  ;;  %v3625_v33 = vpop.eup %3624 }
 0x3a9   : > { %v3312_v9 = vadd.f32 1.0, %v3625_v33 }
 0x3aa   : > { %3630 = vrcp.f32 %v3279_v45 }
 0x3ab   : > { %v3627_v53 = vpop.eup %3626  ;;  %3632 = vrcp.f32 %v3312_v9 }
 0x3ac   : > { %v3311_v27 = vadd.f32 1.0, %v3627_v53 }
 0x3ae   : > { %3634 = vrcp.f32 %v3311_v27 }
 0x3b1   : > { %v3629_v58 = vpop.eup %3628 }
 0x3b2   : > { %v3284_v21 = vmul.f32 %v3629_v58, %v3280_v47 }
 0x3b4   : > { %v3631_v14 = vpop.eup %3630  ;;  %v3286_v63 = vsub.f32 2.0, %v3284_v21 }
 0x3b5   : > { %v3283_v49 = vmul.f32 %v3631_v14, %v3279_v45  ;;  %v3633_v18 = vpop.eup %3632 }
 0x3b6   : > { %v3288_v23 = vmul.f32 %v3629_v58, %v3286_v63  ;;  %v3316_v39 = vmul.f32 %v3633_v18, %v3312_v9 }
 0x3b7   : > { %v3285_v55 = vsub.f32 2.0, %v3283_v49 }
 0x3b8   : > { %v3635_v2 = vpop.eup %3634  ;;  %v3292_v43 = vmul.f32 %v3621_v22, %v3288_v23  ;;  %v3318_v6 = vsub.f32 2.0, %v3316_v39 }
 0x3b9   : > { %v3287_v17 = vmul.f32 %v3631_v14, %v3285_v55  ;;  %v3315_v36 = vmul.f32 %v3635_v2, %v3311_v27 }
 0x3ba   : > { %v3294_v8 = vsel %vm3290_vm6, %v3288_v23, %v3292_v43  ;;  %v3320_v19 = vmul.f32 %v3633_v18, %v3318_v6 }
 0x3bb   : > { %v3291_v54 = vmul.f32 %v3623_v48, %v3287_v17  ;;  %3298 = vst.msk [vmem:[%s128_s27 + $0x8] sm:$0x3] %vm3297_vm5, %v3294_v8  ;;  %v3317_v20 = vsub.f32 2.0, %v3315_v36 }
 0x3bc   : > { %v3324_v28 = vmul.f32 %v3625_v33, %v3320_v19 }
 0x3bd   : > { %v3293_v16 = vsel %vm3289_vm8, %v3287_v17, %v3291_v54  ;;  %v3319_v50 = vmul.f32 %v3635_v2, %v3317_v20 }
 0x3be   : > { %3296 = vst.msk [vmem:[%s128_s27] sm:$0xff] %vm3295_vm7, %v3293_v16  ;;  %v3326_v26 = vsel %vm3322_vm9, %v3320_v19, %v3324_v28 }
 0x3bf   : > { %3601 = vst.msk [vmem:[%s128_s27 + $0x18] sm:$0x3] %vm3297_vm5, %v3326_v26  ;;  %v3323_v24 = vmul.f32 %v3627_v53, %v3319_v50 }
 0x3c1   : > { %v3325_v29 = vsel %vm3321_vm10, %v3319_v50, %v3323_v24 }
 0x3c2   : > { %3600 = vst.msk [vmem:[%s128_s27 + $0x10] sm:$0xff] %vm3295_vm7, %v3325_v29 }
 0x3c3 PF: > { %s23_s1 = sadd.s32 1, %s3678_s1  }
 0x3c4   : > { %p20_p0 = scmp.ge.s32.totalorder %s23_s1, 4  }
 0x3c6   :  { %22 = sbr.rel (!%p20_p0) target bundleno = 26 (0x1a), region = 58 }

</bundles_post_ra>
